<compile_context>
chip_gen: v7x
topology: tpu7x:2x2x1
jax: 0.10.0
libtpu: 0.0.40
codegen_flags: <defaults>
</compile_context>

<pallas_src>
import jax
import jax.numpy as jnp
import numpy as np
from jax.experimental import pallas as pl
from jax.experimental.pallas import tpu as pltpu

VOCAB   = 21
EMB_DIM = 32            # nn.Embedding(21, 32)
SEQ_LEN = 40            # Conv1d(40, ...): embedding "sequence" dim is the conv C_in
C1_OUT  = 64
C2_OUT  = 64
KW      = 3
W0      = EMB_DIM       # conv spatial width = 32
W1      = W0 - (KW - 1) # 30
W2      = W1 - (KW - 1) # 28
FC1_IN  = C2_OUT * W2   # 1792 (see TODO above)
FC1_OUT = 512
FC2_OUT = 32
FC3_OUT = 2
OUT_PAD = 128           # lane-padded final output width
BN_EPS  = 1e-5
LEAKY   = 0.01          # nn.LeakyReLU default negative_slope


# ------------------------------ Pallas kernel -------------------------------

def fused_kernel(x_ref, w1_ref, o1_ref, w2_ref, o2_ref,
                 fw1_ref, fo1_ref, fw2_ref, fo2_ref, fw3_ref, fb3_ref,
                 out_ref):
    """Conv stack + MLP for one block of BT samples (rows are w-major)."""
    bt = out_ref.shape[0]          # samples in this block (multiple of 16)
    rows1 = W1 * bt                # valid conv1 output rows
    rows2 = W2 * bt                # valid conv2 output rows
    f32 = jnp.float32

    # x rows: row = w*bt + b, already bf16.
    x = x_ref[...].reshape(W0 * bt, SEQ_LEN)

    # ---- conv1: Conv1d(40, 64, 3) + folded BN + ReLU ------------------------
    h1 = jnp.dot(x[:rows1], w1_ref[0], preferred_element_type=f32)
    for k in range(1, KW):
        h1 = h1 + jnp.dot(x[k * bt:k * bt + rows1], w1_ref[k],
                          preferred_element_type=f32)
    h1 = jnp.maximum(h1 + o1_ref[...], 0.0).astype(jnp.bfloat16)   # (30*bt, 64)

    # ---- conv2: Conv1d(64, 64, 3) + folded BN + ReLU ------------------------
    h2 = jnp.dot(h1[:rows2], w2_ref[0], preferred_element_type=f32)
    for k in range(1, KW):
        h2 = h2 + jnp.dot(h1[k * bt:k * bt + rows2], w2_ref[k],
                          preferred_element_type=f32)
    h2 = jnp.maximum(h2 + o2_ref[...], 0.0).astype(jnp.bfloat16)   # (28*bt, 64)

    # ---- fc1 (1792->512)+BN+LeakyReLU: accumulate per w-position slab -------
    # z[b,:] = sum_w h2[w*bt + b, :] @ fw1[w]  -- no lane concat / flatten slab.
    z = jnp.dot(h2[:bt], fw1_ref[0], preferred_element_type=f32)
    for w in range(1, W2):
        z = z + jnp.dot(h2[w * bt:(w + 1) * bt], fw1_ref[w],
                        preferred_element_type=f32)
    z = z + fo1_ref[...]
    z = jnp.where(z > 0, z, LEAKY * z).astype(jnp.bfloat16)        # (bt, 512)

    # ---- fc2 (512->32)+BN+LeakyReLU ------------------------------------------
    z = jnp.dot(z, fw2_ref[...], preferred_element_type=f32) + fo2_ref[...]
    z = jnp.where(z > 0, z, LEAKY * z).astype(jnp.bfloat16)        # (bt, 32)

    # ---- fc3 (32->2), lane-padded to 128 -------------------------------------
    out_ref[...] = jnp.dot(z, fw3_ref[...],
                           preferred_element_type=f32) + fb3_ref[...]


# --------------------------------- wrapper -----------------------------------

def _round_up(n, m):
    return ((n + m - 1) // m) * m


def _pick_block(batch):
    """Batch tile.

    Multiple of 16 (bf16 sublane tile alignment of every k*bt slice), capped at
    256.  One maximal block whenever B <= 256 (fills the MXU M dim on all
    generations, no wasted grid-step overhead on v5e/v6e's single TC); larger
    batches stream 256-row blocks which dimension_semantics=("parallel",)
    shards across v7x's two TensorCores — blocks are only ever split when each
    half still has M >= 256.
    """
    return int(min(256, _round_up(max(batch, 1), 16)))


def deepms_forward(x_tokens, params):
    B = x_tokens.shape[0]
    bt = _pick_block(B)
    b_pad = _round_up(B, bt)
    if b_pad != B:
        pad = jnp.zeros((b_pad - B, SEQ_LEN), x_tokens.dtype)   # token 0 = pad
        x_tokens = jnp.concatenate([x_tokens, pad], axis=0)

    # Embedding lookup (gather) + eval-mode Dropout (identity): plain-JAX glue.
    # Table is bf16 so the gather output and the relayout pass move half the
    # bytes.  TODO(synk): gather + (B,40,32)->(32,B,40) relayout stay in XLA.
    e = jnp.take(params["emb"], x_tokens, axis=0)   # (B_pad, 40, 32) bf16
    x_wbc = jnp.transpose(e, (2, 0, 1))             # (32, B_pad, 40) = (w, b, c)

    out = pl.pallas_call(
        fused_kernel,
        out_shape=jax.ShapeDtypeStruct((b_pad, OUT_PAD), jnp.float32),
        grid=(b_pad // bt,),
        in_specs=[
            pl.BlockSpec((W0, bt, SEQ_LEN), lambda i: (0, i, 0)),       # x block
            pl.BlockSpec((KW, SEQ_LEN, C1_OUT), lambda i: (0, 0, 0)),   # conv1 w
            pl.BlockSpec((1, C1_OUT), lambda i: (0, 0)),                # conv1 off
            pl.BlockSpec((KW, C1_OUT, C2_OUT), lambda i: (0, 0, 0)),    # conv2 w
            pl.BlockSpec((1, C2_OUT), lambda i: (0, 0)),                # conv2 off
            pl.BlockSpec((W2, C2_OUT, FC1_OUT), lambda i: (0, 0, 0)),   # fc1 w
            pl.BlockSpec((1, FC1_OUT), lambda i: (0, 0)),               # fc1 off
            pl.BlockSpec((FC1_OUT, FC2_OUT), lambda i: (0, 0)),         # fc2 w
            pl.BlockSpec((1, FC2_OUT), lambda i: (0, 0)),               # fc2 off
            pl.BlockSpec((FC2_OUT, OUT_PAD), lambda i: (0, 0)),         # fc3 w (padded)
            pl.BlockSpec((1, OUT_PAD), lambda i: (0, 0)),               # fc3 bias (padded)
        ],
        out_specs=pl.BlockSpec((bt, OUT_PAD), lambda i: (i, 0)),
        compiler_params=pltpu.CompilerParams(
            dimension_semantics=("parallel",),
            vmem_limit_bytes=32 * 1024 * 1024),
    )(x_wbc, params["w1"], params["o1"], params["w2"], params["o2"],
      params["fw1"], params["fo1"], params["fw2"], params["fo2"],
      params["fw3"], params["fb3"])
    return out[:B, :FC3_OUT]


# --------------------------- parameter construction --------------------------

def make_params(key):
    ks = jax.random.split(key, 16)

    def nrm(k, shape, scale=0.05):
        return scale * jax.random.normal(k, shape, jnp.float32)

    emb = jax.random.normal(ks[0], (VOCAB, EMB_DIM), jnp.float32)
    emb = emb.at[0].set(0.0)                         # padding_idx=0

    def bn_stats(kk, n):
        k1, k2, k3, k4 = jax.random.split(kk, 4)
        gamma = 1.0 + 0.1 * jax.random.normal(k1, (n,), jnp.float32)
        beta  = 0.1 * jax.random.normal(k2, (n,), jnp.float32)
        mean  = 0.1 * jax.random.normal(k3, (n,), jnp.float32)
        var   = 1.0 + 0.1 * jax.random.uniform(k4, (n,), jnp.float32)
        return gamma, beta, mean, var

    def fold(bn, bias):
        g, b, m, v = bn
        s = g / jnp.sqrt(v + BN_EPS)                 # scale -> folded into weights
        o = b + s * (bias - m)                       # offset -> added in kernel
        return s, o

    cw1 = nrm(ks[1], (C1_OUT, SEQ_LEN, KW));  cb1 = nrm(ks[2], (C1_OUT,))
    bn1 = bn_stats(ks[3], C1_OUT);            cs1, co1 = fold(bn1, cb1)
    cw2 = nrm(ks[4], (C2_OUT, C1_OUT, KW));   cb2 = nrm(ks[5], (C2_OUT,))
    bn2 = bn_stats(ks[6], C2_OUT);            cs2, co2 = fold(bn2, cb2)

    fw1 = nrm(ks[7], (FC1_OUT, FC1_IN), 0.02);  fb1 = nrm(ks[8], (FC1_OUT,))
    bn3 = bn_stats(ks[9], FC1_OUT);             fs1, fo1 = fold(bn3, fb1)
    fw2 = nrm(ks[10], (FC2_OUT, FC1_OUT));      fb2 = nrm(ks[11], (FC2_OUT,))
    bn4 = bn_stats(ks[12], FC2_OUT);            fs2, fo2 = fold(bn4, fb2)
    fw3 = nrm(ks[13], (FC3_OUT, FC2_OUT), 0.1); fb3 = nrm(ks[14], (FC3_OUT,))

    bf16 = jnp.bfloat16
    # Conv weights -> (K, C_in, C_out) with the BN scale folded into C_out.
    w1 = (jnp.transpose(cw1, (2, 1, 0)) * cs1[None, None, :]).astype(bf16)
    w2 = (jnp.transpose(cw2, (2, 1, 0)) * cs2[None, None, :]).astype(bf16)
    # fc1 weight kept as (W2, C2_OUT, FC1_OUT): per-w slab for the accumulate
    # form of the flatten (PyTorch flatten index = co*W2 + w), BN scale folded.
    fw1_k = jnp.transpose(fw1.reshape(FC1_OUT, C2_OUT, W2), (2, 1, 0))
    fw1_k = (fw1_k * fs1[None, None, :]).astype(bf16)
    fw2_k = (fw2.T * fs2[None, :]).astype(bf16)
    # fc3 weight/bias lane-padded to 128 outputs (unmasked stores in-kernel).
    fw3_k = jnp.zeros((FC2_OUT, OUT_PAD), jnp.float32).at[:, :FC3_OUT].set(fw3.T)
    fb3_k = jnp.zeros((1, OUT_PAD), jnp.float32).at[0, :FC3_OUT].set(fb3)

    params = dict(
        emb=emb.astype(bf16),
        w1=w1, o1=co1.reshape(1, C1_OUT),
        w2=w2, o2=co2.reshape(1, C2_OUT),
        fw1=fw1_k, fo1=fo1.reshape(1, FC1_OUT),
        fw2=fw2_k, fo2=fo2.reshape(1, FC2_OUT),
        fw3=fw3_k.astype(bf16), fb3=fb3_k,
    )
    raw = dict(emb=emb, cw1=cw1, cb1=cb1, bn1=bn1, cw2=cw2, cb2=cb2, bn2=bn2,
               fw1=fw1, fb1=fb1, bn3=bn3, fw2=fw2, fb2=fb2, bn4=bn4,
               fw3=fw3, fb3=fb3)
    return params, raw


# ------------------------- pure-JAX reference (check) ------------------------

def reference_forward(x_tokens, raw):
    def bn_eval(h, bn, axis):
        g, b, m, v = bn
        shp = [1] * h.ndim; shp[axis] = -1
        return (h - m.reshape(shp)) / jnp.sqrt(v.reshape(shp) + BN_EPS) \
               * g.reshape(shp) + b.reshape(shp)

    e = jnp.take(raw["emb"], x_tokens, axis=0)                       # (B,40,32)
    h = jax.lax.conv_general_dilated(e, raw["cw1"], (1,), "VALID",
                                     dimension_numbers=("NCH", "OIH", "NCH"))
    h = jnp.maximum(bn_eval(h + raw["cb1"][None, :, None], raw["bn1"], 1), 0.0)
    h = jax.lax.conv_general_dilated(h, raw["cw2"], (1,), "VALID",
                                     dimension_numbers=("NCH", "OIH", "NCH"))
    h = jnp.maximum(bn_eval(h + raw["cb2"][None, :, None], raw["bn2"], 1), 0.0)
    h = h.reshape(h.shape[0], -1)
    h = bn_eval(h @ raw["fw1"].T + raw["fb1"], raw["bn3"], 1)
    h = jnp.where(h > 0, h, LEAKY * h)
    h = bn_eval(h @ raw["fw2"].T + raw["fb2"], raw["bn4"], 1)
    h = jnp.where(h > 0, h, LEAKY * h)
    return h @ raw["fw3"].T + raw["fb3"]


if __name__ == "__main__":
    key = jax.random.PRNGKey(0)
    kp, kx = jax.random.split(key)
    params, raw = make_params(kp)

    B = 16                                   # small test batch -> single block
    x = jax.random.randint(kx, (B, SEQ_LEN), 0, VOCAB, dtype=jnp.int32)

    fwd = jax.jit(deepms_forward)
    out = jax.block_until_ready(fwd(x, params))
    assert out.shape == (B, FC3_OUT)

    ref = reference_forward(x, raw)
    # bf16 embedding/weights/activations in the kernel vs f32 reference.
    np.testing.assert_allclose(np.asarray(out), np.asarray(ref),
                               rtol=2e-2, atol=2e-2)
    print("KERNEL_OK")
</pallas_src>

<mosaic_0001>
module attributes {stable_mosaic.version = 11 : i64} {
  func.func @fused_kernel(%arg0: i32, %arg1: memref<32x16x40xbf16, #tpu.memory_space<vmem>>, %arg2: memref<3x40x64xbf16, #tpu.memory_space<vmem>>, %arg3: memref<1x64xf32, #tpu.memory_space<vmem>>, %arg4: memref<3x64x64xbf16, #tpu.memory_space<vmem>>, %arg5: memref<1x64xf32, #tpu.memory_space<vmem>>, %arg6: memref<28x64x512xbf16, #tpu.memory_space<vmem>>, %arg7: memref<1x512xf32, #tpu.memory_space<vmem>>, %arg8: memref<512x32xbf16, #tpu.memory_space<vmem>>, %arg9: memref<1x32xf32, #tpu.memory_space<vmem>>, %arg10: memref<32x128xbf16, #tpu.memory_space<vmem>>, %arg11: memref<1x128xf32, #tpu.memory_space<vmem>>, %arg12: memref<16x128xf32, #tpu.memory_space<vmem>>) attributes {dimension_semantics = [#tpu.dimension_semantics<parallel>], iteration_bounds = array<i64: 1>, scalar_prefetch = 0 : i64, scratch_operands = 0 : i64, tpu.core_type = #tpu.core_type<tc>, window_params = [{transform_indices = @transform_0, window_bounds = array<i64: 32, 16, 40>}, {pipeline_mode = #tpu.pipeline_mode<synchronous>, transform_indices = @transform_1, window_bounds = array<i64: 3, 40, 64>}, {pipeline_mode = #tpu.pipeline_mode<synchronous>, transform_indices = @transform_2, window_bounds = array<i64: 1, 64>}, {pipeline_mode = #tpu.pipeline_mode<synchronous>, transform_indices = @transform_3, window_bounds = array<i64: 3, 64, 64>}, {pipeline_mode = #tpu.pipeline_mode<synchronous>, transform_indices = @transform_4, window_bounds = array<i64: 1, 64>}, {pipeline_mode = #tpu.pipeline_mode<synchronous>, transform_indices = @transform_5, window_bounds = array<i64: 28, 64, 512>}, {pipeline_mode = #tpu.pipeline_mode<synchronous>, transform_indices = @transform_6, window_bounds = array<i64: 1, 512>}, {pipeline_mode = #tpu.pipeline_mode<synchronous>, transform_indices = @transform_7, window_bounds = array<i64: 512, 32>}, {pipeline_mode = #tpu.pipeline_mode<synchronous>, transform_indices = @transform_8, window_bounds = array<i64: 1, 32>}, {pipeline_mode = #tpu.pipeline_mode<synchronous>, transform_indices = @transform_9, window_bounds = array<i64: 32, 128>}, {pipeline_mode = #tpu.pipeline_mode<synchronous>, transform_indices = @transform_10, window_bounds = array<i64: 1, 128>}, {transform_indices = @transform_11, window_bounds = array<i64: 16, 128>}]} {
    %c0 = arith.constant 0 : index
    %c0_0 = arith.constant 0 : index
    %c0_1 = arith.constant 0 : index
    %0 = vector.load %arg1[%c0, %c0_0, %c0_1] : memref<32x16x40xbf16, #tpu.memory_space<vmem>>, vector<32x16x40xbf16>
    %1 = vector.shape_cast %0 : vector<32x16x40xbf16> to vector<512x40xbf16>
    %2 = vector.extract_strided_slice %1 {offsets = [0, 0], sizes = [480, 40], strides = [1, 1]} : vector<512x40xbf16> to vector<480x40xbf16>
    %c0_2 = arith.constant 0 : index
    %c0_3 = arith.constant 0 : index
    %c0_4 = arith.constant 0 : index
    %3 = vector.load %arg2[%c0_2, %c0_3, %c0_4] : memref<3x40x64xbf16, #tpu.memory_space<vmem>>, vector<1x40x64xbf16>
    %4 = vector.shape_cast %3 : vector<1x40x64xbf16> to vector<40x64xbf16>
    %cst = arith.constant dense<0.000000e+00> : vector<480x64xf32>
    %5 = tpu.matmul %2, %4, %cst {dimension_numbers = #tpu.dot_dimension_numbers<[1], [0], [0], [1], [0, 0, 1, 1], [], []>} : vector<480x40xbf16>, vector<40x64xbf16>, vector<480x64xf32> -> vector<480x64xf32>
    %6 = vector.extract_strided_slice %1 {offsets = [16, 0], sizes = [480, 40], strides = [1, 1]} : vector<512x40xbf16> to vector<480x40xbf16>
    %c1 = arith.constant 1 : index
    %c0_5 = arith.constant 0 : index
    %c0_6 = arith.constant 0 : index
    %7 = vector.load %arg2[%c1, %c0_5, %c0_6] : memref<3x40x64xbf16, #tpu.memory_space<vmem>>, vector<1x40x64xbf16>
    %8 = vector.shape_cast %7 : vector<1x40x64xbf16> to vector<40x64xbf16>
    %cst_7 = arith.constant dense<0.000000e+00> : vector<480x64xf32>
    %9 = tpu.matmul %6, %8, %cst_7 {dimension_numbers = #tpu.dot_dimension_numbers<[1], [0], [0], [1], [0, 0, 1, 1], [], []>} : vector<480x40xbf16>, vector<40x64xbf16>, vector<480x64xf32> -> vector<480x64xf32>
    %10 = arith.addf %5, %9 : vector<480x64xf32>
    %11 = vector.extract_strided_slice %1 {offsets = [32, 0], sizes = [480, 40], strides = [1, 1]} : vector<512x40xbf16> to vector<480x40xbf16>
    %c2 = arith.constant 2 : index
    %c0_8 = arith.constant 0 : index
    %c0_9 = arith.constant 0 : index
    %12 = vector.load %arg2[%c2, %c0_8, %c0_9] : memref<3x40x64xbf16, #tpu.memory_space<vmem>>, vector<1x40x64xbf16>
    %13 = vector.shape_cast %12 : vector<1x40x64xbf16> to vector<40x64xbf16>
    %cst_10 = arith.constant dense<0.000000e+00> : vector<480x64xf32>
    %14 = tpu.matmul %11, %13, %cst_10 {dimension_numbers = #tpu.dot_dimension_numbers<[1], [0], [0], [1], [0, 0, 1, 1], [], []>} : vector<480x40xbf16>, vector<40x64xbf16>, vector<480x64xf32> -> vector<480x64xf32>
    %15 = arith.addf %10, %14 : vector<480x64xf32>
    %c0_11 = arith.constant 0 : index
    %c0_12 = arith.constant 0 : index
    %16 = vector.load %arg3[%c0_11, %c0_12] : memref<1x64xf32, #tpu.memory_space<vmem>>, vector<1x64xf32>
    %17 = vector.broadcast %16 : vector<1x64xf32> to vector<480x64xf32>
    %18 = arith.addf %15, %17 : vector<480x64xf32>
    %cst_13 = arith.constant 0.000000e+00 : f32
    %19 = vector.broadcast %cst_13 : f32 to vector<480x64xf32>
    %20 = arith.maximumf %18, %19 : vector<480x64xf32>
    %21 = arith.truncf %20 : vector<480x64xf32> to vector<480x64xbf16>
    %22 = vector.extract_strided_slice %21 {offsets = [0, 0], sizes = [448, 64], strides = [1, 1]} : vector<480x64xbf16> to vector<448x64xbf16>
    %c0_14 = arith.constant 0 : index
    %c0_15 = arith.constant 0 : index
    %c0_16 = arith.constant 0 : index
    %23 = vector.load %arg4[%c0_14, %c0_15, %c0_16] : memref<3x64x64xbf16, #tpu.memory_space<vmem>>, vector<1x64x64xbf16>
    %24 = vector.shape_cast %23 : vector<1x64x64xbf16> to vector<64x64xbf16>
    %cst_17 = arith.constant dense<0.000000e+00> : vector<448x64xf32>
    %25 = tpu.matmul %22, %24, %cst_17 {dimension_numbers = #tpu.dot_dimension_numbers<[1], [0], [0], [1], [0, 0, 1, 1], [], []>} : vector<448x64xbf16>, vector<64x64xbf16>, vector<448x64xf32> -> vector<448x64xf32>
    %26 = vector.extract_strided_slice %21 {offsets = [16, 0], sizes = [448, 64], strides = [1, 1]} : vector<480x64xbf16> to vector<448x64xbf16>
    %c1_18 = arith.constant 1 : index
    %c0_19 = arith.constant 0 : index
    %c0_20 = arith.constant 0 : index
    %27 = vector.load %arg4[%c1_18, %c0_19, %c0_20] : memref<3x64x64xbf16, #tpu.memory_space<vmem>>, vector<1x64x64xbf16>
    %28 = vector.shape_cast %27 : vector<1x64x64xbf16> to vector<64x64xbf16>
    %cst_21 = arith.constant dense<0.000000e+00> : vector<448x64xf32>
    %29 = tpu.matmul %26, %28, %cst_21 {dimension_numbers = #tpu.dot_dimension_numbers<[1], [0], [0], [1], [0, 0, 1, 1], [], []>} : vector<448x64xbf16>, vector<64x64xbf16>, vector<448x64xf32> -> vector<448x64xf32>
    %30 = arith.addf %25, %29 : vector<448x64xf32>
    %31 = vector.extract_strided_slice %21 {offsets = [32, 0], sizes = [448, 64], strides = [1, 1]} : vector<480x64xbf16> to vector<448x64xbf16>
    %c2_22 = arith.constant 2 : index
    %c0_23 = arith.constant 0 : index
    %c0_24 = arith.constant 0 : index
    %32 = vector.load %arg4[%c2_22, %c0_23, %c0_24] : memref<3x64x64xbf16, #tpu.memory_space<vmem>>, vector<1x64x64xbf16>
    %33 = vector.shape_cast %32 : vector<1x64x64xbf16> to vector<64x64xbf16>
    %cst_25 = arith.constant dense<0.000000e+00> : vector<448x64xf32>
    %34 = tpu.matmul %31, %33, %cst_25 {dimension_numbers = #tpu.dot_dimension_numbers<[1], [0], [0], [1], [0, 0, 1, 1], [], []>} : vector<448x64xbf16>, vector<64x64xbf16>, vector<448x64xf32> -> vector<448x64xf32>
    %35 = arith.addf %30, %34 : vector<448x64xf32>
    %c0_26 = arith.constant 0 : index
    %c0_27 = arith.constant 0 : index
    %36 = vector.load %arg5[%c0_26, %c0_27] : memref<1x64xf32, #tpu.memory_space<vmem>>, vector<1x64xf32>
    %37 = vector.broadcast %36 : vector<1x64xf32> to vector<448x64xf32>
    %38 = arith.addf %35, %37 : vector<448x64xf32>
    %cst_28 = arith.constant 0.000000e+00 : f32
    %39 = vector.broadcast %cst_28 : f32 to vector<448x64xf32>
    %40 = arith.maximumf %38, %39 : vector<448x64xf32>
    %41 = arith.truncf %40 : vector<448x64xf32> to vector<448x64xbf16>
    %42 = vector.extract_strided_slice %41 {offsets = [0, 0], sizes = [16, 64], strides = [1, 1]} : vector<448x64xbf16> to vector<16x64xbf16>
    %c0_29 = arith.constant 0 : index
    %c0_30 = arith.constant 0 : index
    %c0_31 = arith.constant 0 : index
    %43 = vector.load %arg6[%c0_29, %c0_30, %c0_31] : memref<28x64x512xbf16, #tpu.memory_space<vmem>>, vector<1x64x512xbf16>
    %44 = vector.shape_cast %43 : vector<1x64x512xbf16> to vector<64x512xbf16>
    %cst_32 = arith.constant dense<0.000000e+00> : vector<16x512xf32>
    %45 = tpu.matmul %42, %44, %cst_32 {dimension_numbers = #tpu.dot_dimension_numbers<[1], [0], [0], [1], [0, 0, 1, 1], [], []>} : vector<16x64xbf16>, vector<64x512xbf16>, vector<16x512xf32> -> vector<16x512xf32>
    %46 = vector.extract_strided_slice %41 {offsets = [16, 0], sizes = [16, 64], strides = [1, 1]} : vector<448x64xbf16> to vector<16x64xbf16>
    %c1_33 = arith.constant 1 : index
    %c0_34 = arith.constant 0 : index
    %c0_35 = arith.constant 0 : index
    %47 = vector.load %arg6[%c1_33, %c0_34, %c0_35] : memref<28x64x512xbf16, #tpu.memory_space<vmem>>, vector<1x64x512xbf16>
    %48 = vector.shape_cast %47 : vector<1x64x512xbf16> to vector<64x512xbf16>
    %cst_36 = arith.constant dense<0.000000e+00> : vector<16x512xf32>
    %49 = tpu.matmul %46, %48, %cst_36 {dimension_numbers = #tpu.dot_dimension_numbers<[1], [0], [0], [1], [0, 0, 1, 1], [], []>} : vector<16x64xbf16>, vector<64x512xbf16>, vector<16x512xf32> -> vector<16x512xf32>
    %50 = arith.addf %45, %49 : vector<16x512xf32>
    %51 = vector.extract_strided_slice %41 {offsets = [32, 0], sizes = [16, 64], strides = [1, 1]} : vector<448x64xbf16> to vector<16x64xbf16>
    %c2_37 = arith.constant 2 : index
    %c0_38 = arith.constant 0 : index
    %c0_39 = arith.constant 0 : index
    %52 = vector.load %arg6[%c2_37, %c0_38, %c0_39] : memref<28x64x512xbf16, #tpu.memory_space<vmem>>, vector<1x64x512xbf16>
    %53 = vector.shape_cast %52 : vector<1x64x512xbf16> to vector<64x512xbf16>
    %cst_40 = arith.constant dense<0.000000e+00> : vector<16x512xf32>
    %54 = tpu.matmul %51, %53, %cst_40 {dimension_numbers = #tpu.dot_dimension_numbers<[1], [0], [0], [1], [0, 0, 1, 1], [], []>} : vector<16x64xbf16>, vector<64x512xbf16>, vector<16x512xf32> -> vector<16x512xf32>
    %55 = arith.addf %50, %54 : vector<16x512xf32>
    %56 = vector.extract_strided_slice %41 {offsets = [48, 0], sizes = [16, 64], strides = [1, 1]} : vector<448x64xbf16> to vector<16x64xbf16>
    %c3 = arith.constant 3 : index
    %c0_41 = arith.constant 0 : index
    %c0_42 = arith.constant 0 : index
    %57 = vector.load %arg6[%c3, %c0_41, %c0_42] : memref<28x64x512xbf16, #tpu.memory_space<vmem>>, vector<1x64x512xbf16>
    %58 = vector.shape_cast %57 : vector<1x64x512xbf16> to vector<64x512xbf16>
    %cst_43 = arith.constant dense<0.000000e+00> : vector<16x512xf32>
    %59 = tpu.matmul %56, %58, %cst_43 {dimension_numbers = #tpu.dot_dimension_numbers<[1], [0], [0], [1], [0, 0, 1, 1], [], []>} : vector<16x64xbf16>, vector<64x512xbf16>, vector<16x512xf32> -> vector<16x512xf32>
    %60 = arith.addf %55, %59 : vector<16x512xf32>
    %61 = vector.extract_strided_slice %41 {offsets = [64, 0], sizes = [16, 64], strides = [1, 1]} : vector<448x64xbf16> to vector<16x64xbf16>
    %c4 = arith.constant 4 : index
    %c0_44 = arith.constant 0 : index
    %c0_45 = arith.constant 0 : index
    %62 = vector.load %arg6[%c4, %c0_44, %c0_45] : memref<28x64x512xbf16, #tpu.memory_space<vmem>>, vector<1x64x512xbf16>
    %63 = vector.shape_cast %62 : vector<1x64x512xbf16> to vector<64x512xbf16>
    %cst_46 = arith.constant dense<0.000000e+00> : vector<16x512xf32>
    %64 = tpu.matmul %61, %63, %cst_46 {dimension_numbers = #tpu.dot_dimension_numbers<[1], [0], [0], [1], [0, 0, 1, 1], [], []>} : vector<16x64xbf16>, vector<64x512xbf16>, vector<16x512xf32> -> vector<16x512xf32>
    %65 = arith.addf %60, %64 : vector<16x512xf32>
    %66 = vector.extract_strided_slice %41 {offsets = [80, 0], sizes = [16, 64], strides = [1, 1]} : vector<448x64xbf16> to vector<16x64xbf16>
    %c5 = arith.constant 5 : index
    %c0_47 = arith.constant 0 : index
    %c0_48 = arith.constant 0 : index
    %67 = vector.load %arg6[%c5, %c0_47, %c0_48] : memref<28x64x512xbf16, #tpu.memory_space<vmem>>, vector<1x64x512xbf16>
    %68 = vector.shape_cast %67 : vector<1x64x512xbf16> to vector<64x512xbf16>
    %cst_49 = arith.constant dense<0.000000e+00> : vector<16x512xf32>
    %69 = tpu.matmul %66, %68, %cst_49 {dimension_numbers = #tpu.dot_dimension_numbers<[1], [0], [0], [1], [0, 0, 1, 1], [], []>} : vector<16x64xbf16>, vector<64x512xbf16>, vector<16x512xf32> -> vector<16x512xf32>
    %70 = arith.addf %65, %69 : vector<16x512xf32>
    %71 = vector.extract_strided_slice %41 {offsets = [96, 0], sizes = [16, 64], strides = [1, 1]} : vector<448x64xbf16> to vector<16x64xbf16>
    %c6 = arith.constant 6 : index
    %c0_50 = arith.constant 0 : index
    %c0_51 = arith.constant 0 : index
    %72 = vector.load %arg6[%c6, %c0_50, %c0_51] : memref<28x64x512xbf16, #tpu.memory_space<vmem>>, vector<1x64x512xbf16>
    %73 = vector.shape_cast %72 : vector<1x64x512xbf16> to vector<64x512xbf16>
    %cst_52 = arith.constant dense<0.000000e+00> : vector<16x512xf32>
    %74 = tpu.matmul %71, %73, %cst_52 {dimension_numbers = #tpu.dot_dimension_numbers<[1], [0], [0], [1], [0, 0, 1, 1], [], []>} : vector<16x64xbf16>, vector<64x512xbf16>, vector<16x512xf32> -> vector<16x512xf32>
    %75 = arith.addf %70, %74 : vector<16x512xf32>
    %76 = vector.extract_strided_slice %41 {offsets = [112, 0], sizes = [16, 64], strides = [1, 1]} : vector<448x64xbf16> to vector<16x64xbf16>
    %c7 = arith.constant 7 : index
    %c0_53 = arith.constant 0 : index
    %c0_54 = arith.constant 0 : index
    %77 = vector.load %arg6[%c7, %c0_53, %c0_54] : memref<28x64x512xbf16, #tpu.memory_space<vmem>>, vector<1x64x512xbf16>
    %78 = vector.shape_cast %77 : vector<1x64x512xbf16> to vector<64x512xbf16>
    %cst_55 = arith.constant dense<0.000000e+00> : vector<16x512xf32>
    %79 = tpu.matmul %76, %78, %cst_55 {dimension_numbers = #tpu.dot_dimension_numbers<[1], [0], [0], [1], [0, 0, 1, 1], [], []>} : vector<16x64xbf16>, vector<64x512xbf16>, vector<16x512xf32> -> vector<16x512xf32>
    %80 = arith.addf %75, %79 : vector<16x512xf32>
    %81 = vector.extract_strided_slice %41 {offsets = [128, 0], sizes = [16, 64], strides = [1, 1]} : vector<448x64xbf16> to vector<16x64xbf16>
    %c8 = arith.constant 8 : index
    %c0_56 = arith.constant 0 : index
    %c0_57 = arith.constant 0 : index
    %82 = vector.load %arg6[%c8, %c0_56, %c0_57] : memref<28x64x512xbf16, #tpu.memory_space<vmem>>, vector<1x64x512xbf16>
    %83 = vector.shape_cast %82 : vector<1x64x512xbf16> to vector<64x512xbf16>
    %cst_58 = arith.constant dense<0.000000e+00> : vector<16x512xf32>
    %84 = tpu.matmul %81, %83, %cst_58 {dimension_numbers = #tpu.dot_dimension_numbers<[1], [0], [0], [1], [0, 0, 1, 1], [], []>} : vector<16x64xbf16>, vector<64x512xbf16>, vector<16x512xf32> -> vector<16x512xf32>
    %85 = arith.addf %80, %84 : vector<16x512xf32>
    %86 = vector.extract_strided_slice %41 {offsets = [144, 0], sizes = [16, 64], strides = [1, 1]} : vector<448x64xbf16> to vector<16x64xbf16>
    %c9 = arith.constant 9 : index
    %c0_59 = arith.constant 0 : index
    %c0_60 = arith.constant 0 : index
    %87 = vector.load %arg6[%c9, %c0_59, %c0_60] : memref<28x64x512xbf16, #tpu.memory_space<vmem>>, vector<1x64x512xbf16>
    %88 = vector.shape_cast %87 : vector<1x64x512xbf16> to vector<64x512xbf16>
    %cst_61 = arith.constant dense<0.000000e+00> : vector<16x512xf32>
    %89 = tpu.matmul %86, %88, %cst_61 {dimension_numbers = #tpu.dot_dimension_numbers<[1], [0], [0], [1], [0, 0, 1, 1], [], []>} : vector<16x64xbf16>, vector<64x512xbf16>, vector<16x512xf32> -> vector<16x512xf32>
    %90 = arith.addf %85, %89 : vector<16x512xf32>
    %91 = vector.extract_strided_slice %41 {offsets = [160, 0], sizes = [16, 64], strides = [1, 1]} : vector<448x64xbf16> to vector<16x64xbf16>
    %c10 = arith.constant 10 : index
    %c0_62 = arith.constant 0 : index
    %c0_63 = arith.constant 0 : index
    %92 = vector.load %arg6[%c10, %c0_62, %c0_63] : memref<28x64x512xbf16, #tpu.memory_space<vmem>>, vector<1x64x512xbf16>
    %93 = vector.shape_cast %92 : vector<1x64x512xbf16> to vector<64x512xbf16>
    %cst_64 = arith.constant dense<0.000000e+00> : vector<16x512xf32>
    %94 = tpu.matmul %91, %93, %cst_64 {dimension_numbers = #tpu.dot_dimension_numbers<[1], [0], [0], [1], [0, 0, 1, 1], [], []>} : vector<16x64xbf16>, vector<64x512xbf16>, vector<16x512xf32> -> vector<16x512xf32>
    %95 = arith.addf %90, %94 : vector<16x512xf32>
    %96 = vector.extract_strided_slice %41 {offsets = [176, 0], sizes = [16, 64], strides = [1, 1]} : vector<448x64xbf16> to vector<16x64xbf16>
    %c11 = arith.constant 11 : index
    %c0_65 = arith.constant 0 : index
    %c0_66 = arith.constant 0 : index
    %97 = vector.load %arg6[%c11, %c0_65, %c0_66] : memref<28x64x512xbf16, #tpu.memory_space<vmem>>, vector<1x64x512xbf16>
    %98 = vector.shape_cast %97 : vector<1x64x512xbf16> to vector<64x512xbf16>
    %cst_67 = arith.constant dense<0.000000e+00> : vector<16x512xf32>
    %99 = tpu.matmul %96, %98, %cst_67 {dimension_numbers = #tpu.dot_dimension_numbers<[1], [0], [0], [1], [0, 0, 1, 1], [], []>} : vector<16x64xbf16>, vector<64x512xbf16>, vector<16x512xf32> -> vector<16x512xf32>
    %100 = arith.addf %95, %99 : vector<16x512xf32>
    %101 = vector.extract_strided_slice %41 {offsets = [192, 0], sizes = [16, 64], strides = [1, 1]} : vector<448x64xbf16> to vector<16x64xbf16>
    %c12 = arith.constant 12 : index
    %c0_68 = arith.constant 0 : index
    %c0_69 = arith.constant 0 : index
    %102 = vector.load %arg6[%c12, %c0_68, %c0_69] : memref<28x64x512xbf16, #tpu.memory_space<vmem>>, vector<1x64x512xbf16>
    %103 = vector.shape_cast %102 : vector<1x64x512xbf16> to vector<64x512xbf16>
    %cst_70 = arith.constant dense<0.000000e+00> : vector<16x512xf32>
    %104 = tpu.matmul %101, %103, %cst_70 {dimension_numbers = #tpu.dot_dimension_numbers<[1], [0], [0], [1], [0, 0, 1, 1], [], []>} : vector<16x64xbf16>, vector<64x512xbf16>, vector<16x512xf32> -> vector<16x512xf32>
    %105 = arith.addf %100, %104 : vector<16x512xf32>
    %106 = vector.extract_strided_slice %41 {offsets = [208, 0], sizes = [16, 64], strides = [1, 1]} : vector<448x64xbf16> to vector<16x64xbf16>
    %c13 = arith.constant 13 : index
    %c0_71 = arith.constant 0 : index
    %c0_72 = arith.constant 0 : index
    %107 = vector.load %arg6[%c13, %c0_71, %c0_72] : memref<28x64x512xbf16, #tpu.memory_space<vmem>>, vector<1x64x512xbf16>
    %108 = vector.shape_cast %107 : vector<1x64x512xbf16> to vector<64x512xbf16>
    %cst_73 = arith.constant dense<0.000000e+00> : vector<16x512xf32>
    %109 = tpu.matmul %106, %108, %cst_73 {dimension_numbers = #tpu.dot_dimension_numbers<[1], [0], [0], [1], [0, 0, 1, 1], [], []>} : vector<16x64xbf16>, vector<64x512xbf16>, vector<16x512xf32> -> vector<16x512xf32>
    %110 = arith.addf %105, %109 : vector<16x512xf32>
    %111 = vector.extract_strided_slice %41 {offsets = [224, 0], sizes = [16, 64], strides = [1, 1]} : vector<448x64xbf16> to vector<16x64xbf16>
    %c14 = arith.constant 14 : index
    %c0_74 = arith.constant 0 : index
    %c0_75 = arith.constant 0 : index
    %112 = vector.load %arg6[%c14, %c0_74, %c0_75] : memref<28x64x512xbf16, #tpu.memory_space<vmem>>, vector<1x64x512xbf16>
    %113 = vector.shape_cast %112 : vector<1x64x512xbf16> to vector<64x512xbf16>
    %cst_76 = arith.constant dense<0.000000e+00> : vector<16x512xf32>
    %114 = tpu.matmul %111, %113, %cst_76 {dimension_numbers = #tpu.dot_dimension_numbers<[1], [0], [0], [1], [0, 0, 1, 1], [], []>} : vector<16x64xbf16>, vector<64x512xbf16>, vector<16x512xf32> -> vector<16x512xf32>
    %115 = arith.addf %110, %114 : vector<16x512xf32>
    %116 = vector.extract_strided_slice %41 {offsets = [240, 0], sizes = [16, 64], strides = [1, 1]} : vector<448x64xbf16> to vector<16x64xbf16>
    %c15 = arith.constant 15 : index
    %c0_77 = arith.constant 0 : index
    %c0_78 = arith.constant 0 : index
    %117 = vector.load %arg6[%c15, %c0_77, %c0_78] : memref<28x64x512xbf16, #tpu.memory_space<vmem>>, vector<1x64x512xbf16>
    %118 = vector.shape_cast %117 : vector<1x64x512xbf16> to vector<64x512xbf16>
    %cst_79 = arith.constant dense<0.000000e+00> : vector<16x512xf32>
    %119 = tpu.matmul %116, %118, %cst_79 {dimension_numbers = #tpu.dot_dimension_numbers<[1], [0], [0], [1], [0, 0, 1, 1], [], []>} : vector<16x64xbf16>, vector<64x512xbf16>, vector<16x512xf32> -> vector<16x512xf32>
    %120 = arith.addf %115, %119 : vector<16x512xf32>
    %121 = vector.extract_strided_slice %41 {offsets = [256, 0], sizes = [16, 64], strides = [1, 1]} : vector<448x64xbf16> to vector<16x64xbf16>
    %c16 = arith.constant 16 : index
    %c0_80 = arith.constant 0 : index
    %c0_81 = arith.constant 0 : index
    %122 = vector.load %arg6[%c16, %c0_80, %c0_81] : memref<28x64x512xbf16, #tpu.memory_space<vmem>>, vector<1x64x512xbf16>
    %123 = vector.shape_cast %122 : vector<1x64x512xbf16> to vector<64x512xbf16>
    %cst_82 = arith.constant dense<0.000000e+00> : vector<16x512xf32>
    %124 = tpu.matmul %121, %123, %cst_82 {dimension_numbers = #tpu.dot_dimension_numbers<[1], [0], [0], [1], [0, 0, 1, 1], [], []>} : vector<16x64xbf16>, vector<64x512xbf16>, vector<16x512xf32> -> vector<16x512xf32>
    %125 = arith.addf %120, %124 : vector<16x512xf32>
    %126 = vector.extract_strided_slice %41 {offsets = [272, 0], sizes = [16, 64], strides = [1, 1]} : vector<448x64xbf16> to vector<16x64xbf16>
    %c17 = arith.constant 17 : index
    %c0_83 = arith.constant 0 : index
    %c0_84 = arith.constant 0 : index
    %127 = vector.load %arg6[%c17, %c0_83, %c0_84] : memref<28x64x512xbf16, #tpu.memory_space<vmem>>, vector<1x64x512xbf16>
    %128 = vector.shape_cast %127 : vector<1x64x512xbf16> to vector<64x512xbf16>
    %cst_85 = arith.constant dense<0.000000e+00> : vector<16x512xf32>
    %129 = tpu.matmul %126, %128, %cst_85 {dimension_numbers = #tpu.dot_dimension_numbers<[1], [0], [0], [1], [0, 0, 1, 1], [], []>} : vector<16x64xbf16>, vector<64x512xbf16>, vector<16x512xf32> -> vector<16x512xf32>
    %130 = arith.addf %125, %129 : vector<16x512xf32>
    %131 = vector.extract_strided_slice %41 {offsets = [288, 0], sizes = [16, 64], strides = [1, 1]} : vector<448x64xbf16> to vector<16x64xbf16>
    %c18 = arith.constant 18 : index
    %c0_86 = arith.constant 0 : index
    %c0_87 = arith.constant 0 : index
    %132 = vector.load %arg6[%c18, %c0_86, %c0_87] : memref<28x64x512xbf16, #tpu.memory_space<vmem>>, vector<1x64x512xbf16>
    %133 = vector.shape_cast %132 : vector<1x64x512xbf16> to vector<64x512xbf16>
    %cst_88 = arith.constant dense<0.000000e+00> : vector<16x512xf32>
    %134 = tpu.matmul %131, %133, %cst_88 {dimension_numbers = #tpu.dot_dimension_numbers<[1], [0], [0], [1], [0, 0, 1, 1], [], []>} : vector<16x64xbf16>, vector<64x512xbf16>, vector<16x512xf32> -> vector<16x512xf32>
    %135 = arith.addf %130, %134 : vector<16x512xf32>
    %136 = vector.extract_strided_slice %41 {offsets = [304, 0], sizes = [16, 64], strides = [1, 1]} : vector<448x64xbf16> to vector<16x64xbf16>
    %c19 = arith.constant 19 : index
    %c0_89 = arith.constant 0 : index
    %c0_90 = arith.constant 0 : index
    %137 = vector.load %arg6[%c19, %c0_89, %c0_90] : memref<28x64x512xbf16, #tpu.memory_space<vmem>>, vector<1x64x512xbf16>
    %138 = vector.shape_cast %137 : vector<1x64x512xbf16> to vector<64x512xbf16>
    %cst_91 = arith.constant dense<0.000000e+00> : vector<16x512xf32>
    %139 = tpu.matmul %136, %138, %cst_91 {dimension_numbers = #tpu.dot_dimension_numbers<[1], [0], [0], [1], [0, 0, 1, 1], [], []>} : vector<16x64xbf16>, vector<64x512xbf16>, vector<16x512xf32> -> vector<16x512xf32>
    %140 = arith.addf %135, %139 : vector<16x512xf32>
    %141 = vector.extract_strided_slice %41 {offsets = [320, 0], sizes = [16, 64], strides = [1, 1]} : vector<448x64xbf16> to vector<16x64xbf16>
    %c20 = arith.constant 20 : index
    %c0_92 = arith.constant 0 : index
    %c0_93 = arith.constant 0 : index
    %142 = vector.load %arg6[%c20, %c0_92, %c0_93] : memref<28x64x512xbf16, #tpu.memory_space<vmem>>, vector<1x64x512xbf16>
    %143 = vector.shape_cast %142 : vector<1x64x512xbf16> to vector<64x512xbf16>
    %cst_94 = arith.constant dense<0.000000e+00> : vector<16x512xf32>
    %144 = tpu.matmul %141, %143, %cst_94 {dimension_numbers = #tpu.dot_dimension_numbers<[1], [0], [0], [1], [0, 0, 1, 1], [], []>} : vector<16x64xbf16>, vector<64x512xbf16>, vector<16x512xf32> -> vector<16x512xf32>
    %145 = arith.addf %140, %144 : vector<16x512xf32>
    %146 = vector.extract_strided_slice %41 {offsets = [336, 0], sizes = [16, 64], strides = [1, 1]} : vector<448x64xbf16> to vector<16x64xbf16>
    %c21 = arith.constant 21 : index
    %c0_95 = arith.constant 0 : index
    %c0_96 = arith.constant 0 : index
    %147 = vector.load %arg6[%c21, %c0_95, %c0_96] : memref<28x64x512xbf16, #tpu.memory_space<vmem>>, vector<1x64x512xbf16>
    %148 = vector.shape_cast %147 : vector<1x64x512xbf16> to vector<64x512xbf16>
    %cst_97 = arith.constant dense<0.000000e+00> : vector<16x512xf32>
    %149 = tpu.matmul %146, %148, %cst_97 {dimension_numbers = #tpu.dot_dimension_numbers<[1], [0], [0], [1], [0, 0, 1, 1], [], []>} : vector<16x64xbf16>, vector<64x512xbf16>, vector<16x512xf32> -> vector<16x512xf32>
    %150 = arith.addf %145, %149 : vector<16x512xf32>
    %151 = vector.extract_strided_slice %41 {offsets = [352, 0], sizes = [16, 64], strides = [1, 1]} : vector<448x64xbf16> to vector<16x64xbf16>
    %c22 = arith.constant 22 : index
    %c0_98 = arith.constant 0 : index
    %c0_99 = arith.constant 0 : index
    %152 = vector.load %arg6[%c22, %c0_98, %c0_99] : memref<28x64x512xbf16, #tpu.memory_space<vmem>>, vector<1x64x512xbf16>
    %153 = vector.shape_cast %152 : vector<1x64x512xbf16> to vector<64x512xbf16>
    %cst_100 = arith.constant dense<0.000000e+00> : vector<16x512xf32>
    %154 = tpu.matmul %151, %153, %cst_100 {dimension_numbers = #tpu.dot_dimension_numbers<[1], [0], [0], [1], [0, 0, 1, 1], [], []>} : vector<16x64xbf16>, vector<64x512xbf16>, vector<16x512xf32> -> vector<16x512xf32>
    %155 = arith.addf %150, %154 : vector<16x512xf32>
    %156 = vector.extract_strided_slice %41 {offsets = [368, 0], sizes = [16, 64], strides = [1, 1]} : vector<448x64xbf16> to vector<16x64xbf16>
    %c23 = arith.constant 23 : index
    %c0_101 = arith.constant 0 : index
    %c0_102 = arith.constant 0 : index
    %157 = vector.load %arg6[%c23, %c0_101, %c0_102] : memref<28x64x512xbf16, #tpu.memory_space<vmem>>, vector<1x64x512xbf16>
    %158 = vector.shape_cast %157 : vector<1x64x512xbf16> to vector<64x512xbf16>
    %cst_103 = arith.constant dense<0.000000e+00> : vector<16x512xf32>
    %159 = tpu.matmul %156, %158, %cst_103 {dimension_numbers = #tpu.dot_dimension_numbers<[1], [0], [0], [1], [0, 0, 1, 1], [], []>} : vector<16x64xbf16>, vector<64x512xbf16>, vector<16x512xf32> -> vector<16x512xf32>
    %160 = arith.addf %155, %159 : vector<16x512xf32>
    %161 = vector.extract_strided_slice %41 {offsets = [384, 0], sizes = [16, 64], strides = [1, 1]} : vector<448x64xbf16> to vector<16x64xbf16>
    %c24 = arith.constant 24 : index
    %c0_104 = arith.constant 0 : index
    %c0_105 = arith.constant 0 : index
    %162 = vector.load %arg6[%c24, %c0_104, %c0_105] : memref<28x64x512xbf16, #tpu.memory_space<vmem>>, vector<1x64x512xbf16>
    %163 = vector.shape_cast %162 : vector<1x64x512xbf16> to vector<64x512xbf16>
    %cst_106 = arith.constant dense<0.000000e+00> : vector<16x512xf32>
    %164 = tpu.matmul %161, %163, %cst_106 {dimension_numbers = #tpu.dot_dimension_numbers<[1], [0], [0], [1], [0, 0, 1, 1], [], []>} : vector<16x64xbf16>, vector<64x512xbf16>, vector<16x512xf32> -> vector<16x512xf32>
    %165 = arith.addf %160, %164 : vector<16x512xf32>
    %166 = vector.extract_strided_slice %41 {offsets = [400, 0], sizes = [16, 64], strides = [1, 1]} : vector<448x64xbf16> to vector<16x64xbf16>
    %c25 = arith.constant 25 : index
    %c0_107 = arith.constant 0 : index
    %c0_108 = arith.constant 0 : index
    %167 = vector.load %arg6[%c25, %c0_107, %c0_108] : memref<28x64x512xbf16, #tpu.memory_space<vmem>>, vector<1x64x512xbf16>
    %168 = vector.shape_cast %167 : vector<1x64x512xbf16> to vector<64x512xbf16>
    %cst_109 = arith.constant dense<0.000000e+00> : vector<16x512xf32>
    %169 = tpu.matmul %166, %168, %cst_109 {dimension_numbers = #tpu.dot_dimension_numbers<[1], [0], [0], [1], [0, 0, 1, 1], [], []>} : vector<16x64xbf16>, vector<64x512xbf16>, vector<16x512xf32> -> vector<16x512xf32>
    %170 = arith.addf %165, %169 : vector<16x512xf32>
    %171 = vector.extract_strided_slice %41 {offsets = [416, 0], sizes = [16, 64], strides = [1, 1]} : vector<448x64xbf16> to vector<16x64xbf16>
    %c26 = arith.constant 26 : index
    %c0_110 = arith.constant 0 : index
    %c0_111 = arith.constant 0 : index
    %172 = vector.load %arg6[%c26, %c0_110, %c0_111] : memref<28x64x512xbf16, #tpu.memory_space<vmem>>, vector<1x64x512xbf16>
    %173 = vector.shape_cast %172 : vector<1x64x512xbf16> to vector<64x512xbf16>
    %cst_112 = arith.constant dense<0.000000e+00> : vector<16x512xf32>
    %174 = tpu.matmul %171, %173, %cst_112 {dimension_numbers = #tpu.dot_dimension_numbers<[1], [0], [0], [1], [0, 0, 1, 1], [], []>} : vector<16x64xbf16>, vector<64x512xbf16>, vector<16x512xf32> -> vector<16x512xf32>
    %175 = arith.addf %170, %174 : vector<16x512xf32>
    %176 = vector.extract_strided_slice %41 {offsets = [432, 0], sizes = [16, 64], strides = [1, 1]} : vector<448x64xbf16> to vector<16x64xbf16>
    %c27 = arith.constant 27 : index
    %c0_113 = arith.constant 0 : index
    %c0_114 = arith.constant 0 : index
    %177 = vector.load %arg6[%c27, %c0_113, %c0_114] : memref<28x64x512xbf16, #tpu.memory_space<vmem>>, vector<1x64x512xbf16>
    %178 = vector.shape_cast %177 : vector<1x64x512xbf16> to vector<64x512xbf16>
    %cst_115 = arith.constant dense<0.000000e+00> : vector<16x512xf32>
    %179 = tpu.matmul %176, %178, %cst_115 {dimension_numbers = #tpu.dot_dimension_numbers<[1], [0], [0], [1], [0, 0, 1, 1], [], []>} : vector<16x64xbf16>, vector<64x512xbf16>, vector<16x512xf32> -> vector<16x512xf32>
    %180 = arith.addf %175, %179 : vector<16x512xf32>
    %c0_116 = arith.constant 0 : index
    %c0_117 = arith.constant 0 : index
    %181 = vector.load %arg7[%c0_116, %c0_117] : memref<1x512xf32, #tpu.memory_space<vmem>>, vector<1x512xf32>
    %182 = vector.broadcast %181 : vector<1x512xf32> to vector<16x512xf32>
    %183 = arith.addf %180, %182 : vector<16x512xf32>
    %cst_118 = arith.constant 0.000000e+00 : f32
    %184 = vector.broadcast %cst_118 : f32 to vector<16x512xf32>
    %185 = arith.cmpf ogt, %183, %184 : vector<16x512xf32>
    %cst_119 = arith.constant 0.00999999977 : f32
    %186 = vector.broadcast %cst_119 : f32 to vector<16x512xf32>
    %187 = arith.mulf %186, %183 : vector<16x512xf32>
    %188 = arith.select %185, %183, %187 : vector<16x512xi1>, vector<16x512xf32>
    %189 = arith.truncf %188 : vector<16x512xf32> to vector<16x512xbf16>
    %c0_120 = arith.constant 0 : index
    %c0_121 = arith.constant 0 : index
    %190 = vector.load %arg8[%c0_120, %c0_121] : memref<512x32xbf16, #tpu.memory_space<vmem>>, vector<512x32xbf16>
    %cst_122 = arith.constant dense<0.000000e+00> : vector<16x32xf32>
    %191 = tpu.matmul %189, %190, %cst_122 {dimension_numbers = #tpu.dot_dimension_numbers<[1], [0], [0], [1], [0, 0, 1, 1], [], []>} : vector<16x512xbf16>, vector<512x32xbf16>, vector<16x32xf32> -> vector<16x32xf32>
    %c0_123 = arith.constant 0 : index
    %c0_124 = arith.constant 0 : index
    %192 = vector.load %arg9[%c0_123, %c0_124] : memref<1x32xf32, #tpu.memory_space<vmem>>, vector<1x32xf32>
    %193 = vector.broadcast %192 : vector<1x32xf32> to vector<16x32xf32>
    %194 = arith.addf %191, %193 : vector<16x32xf32>
    %cst_125 = arith.constant 0.000000e+00 : f32
    %195 = vector.broadcast %cst_125 : f32 to vector<16x32xf32>
    %196 = arith.cmpf ogt, %194, %195 : vector<16x32xf32>
    %cst_126 = arith.constant 0.00999999977 : f32
    %197 = vector.broadcast %cst_126 : f32 to vector<16x32xf32>
    %198 = arith.mulf %197, %194 : vector<16x32xf32>
    %199 = arith.select %196, %194, %198 : vector<16x32xi1>, vector<16x32xf32>
    %200 = arith.truncf %199 : vector<16x32xf32> to vector<16x32xbf16>
    %c0_127 = arith.constant 0 : index
    %c0_128 = arith.constant 0 : index
    %201 = vector.load %arg10[%c0_127, %c0_128] : memref<32x128xbf16, #tpu.memory_space<vmem>>, vector<32x128xbf16>
    %cst_129 = arith.constant dense<0.000000e+00> : vector<16x128xf32>
    %202 = tpu.matmul %200, %201, %cst_129 {dimension_numbers = #tpu.dot_dimension_numbers<[1], [0], [0], [1], [0, 0, 1, 1], [], []>} : vector<16x32xbf16>, vector<32x128xbf16>, vector<16x128xf32> -> vector<16x128xf32>
    %c0_130 = arith.constant 0 : index
    %c0_131 = arith.constant 0 : index
    %203 = vector.load %arg11[%c0_130, %c0_131] : memref<1x128xf32, #tpu.memory_space<vmem>>, vector<1x128xf32>
    %204 = vector.broadcast %203 : vector<1x128xf32> to vector<16x128xf32>
    %205 = arith.addf %202, %204 : vector<16x128xf32>
    %c0_132 = arith.constant 0 : index
    %c0_133 = arith.constant 0 : index
    %206 = vector.load %arg12[%c0_132, %c0_133] : memref<16x128xf32, #tpu.memory_space<vmem>>, vector<16x128xf32>
    tpu.vector_store %arg12[%c0_132, %c0_133], %205 {strides = array<i32>} : memref<16x128xf32, #tpu.memory_space<vmem>>, vector<16x128xf32>,
    return
  }
  func.func @transform_0(%arg0: i32) -> (i32, i32, i32) {
    %c0_i32 = arith.constant 0 : i32
    %c0_i32_0 = arith.constant 0 : i32
    %c0_i32_1 = arith.constant 0 : i32
    return %c0_i32, %arg0, %c0_i32_0 : i32, i32, i32
  }
  func.func @transform_1(%arg0: i32) -> (i32, i32, i32) {
    %c0_i32 = arith.constant 0 : i32
    %c0_i32_0 = arith.constant 0 : i32
    %c0_i32_1 = arith.constant 0 : i32
    %c0_i32_2 = arith.constant 0 : i32
    return %c0_i32, %c0_i32_0, %c0_i32_1 : i32, i32, i32
  }
  func.func @transform_2(%arg0: i32) -> (i32, i32) {
    %c0_i32 = arith.constant 0 : i32
    %c0_i32_0 = arith.constant 0 : i32
    %c0_i32_1 = arith.constant 0 : i32
    return %c0_i32, %c0_i32_0 : i32, i32
  }
  func.func @transform_3(%arg0: i32) -> (i32, i32, i32) {
    %c0_i32 = arith.constant 0 : i32
    %c0_i32_0 = arith.constant 0 : i32
    %c0_i32_1 = arith.constant 0 : i32
    %c0_i32_2 = arith.constant 0 : i32
    return %c0_i32, %c0_i32_0, %c0_i32_1 : i32, i32, i32
  }
  func.func @transform_4(%arg0: i32) -> (i32, i32) {
    %c0_i32 = arith.constant 0 : i32
    %c0_i32_0 = arith.constant 0 : i32
    %c0_i32_1 = arith.constant 0 : i32
    return %c0_i32, %c0_i32_0 : i32, i32
  }
  func.func @transform_5(%arg0: i32) -> (i32, i32, i32) {
    %c0_i32 = arith.constant 0 : i32
    %c0_i32_0 = arith.constant 0 : i32
    %c0_i32_1 = arith.constant 0 : i32
    %c0_i32_2 = arith.constant 0 : i32
    return %c0_i32, %c0_i32_0, %c0_i32_1 : i32, i32, i32
  }
  func.func @transform_6(%arg0: i32) -> (i32, i32) {
    %c0_i32 = arith.constant 0 : i32
    %c0_i32_0 = arith.constant 0 : i32
    %c0_i32_1 = arith.constant 0 : i32
    return %c0_i32, %c0_i32_0 : i32, i32
  }
  func.func @transform_7(%arg0: i32) -> (i32, i32) {
    %c0_i32 = arith.constant 0 : i32
    %c0_i32_0 = arith.constant 0 : i32
    %c0_i32_1 = arith.constant 0 : i32
    return %c0_i32, %c0_i32_0 : i32, i32
  }
  func.func @transform_8(%arg0: i32) -> (i32, i32) {
    %c0_i32 = arith.constant 0 : i32
    %c0_i32_0 = arith.constant 0 : i32
    %c0_i32_1 = arith.constant 0 : i32
    return %c0_i32, %c0_i32_0 : i32, i32
  }
  func.func @transform_9(%arg0: i32) -> (i32, i32) {
    %c0_i32 = arith.constant 0 : i32
    %c0_i32_0 = arith.constant 0 : i32
    %c0_i32_1 = arith.constant 0 : i32
    return %c0_i32, %c0_i32_0 : i32, i32
  }
  func.func @transform_10(%arg0: i32) -> (i32, i32) {
    %c0_i32 = arith.constant 0 : i32
    %c0_i32_0 = arith.constant 0 : i32
    %c0_i32_1 = arith.constant 0 : i32
    return %c0_i32, %c0_i32_0 : i32, i32
  }
  func.func @transform_11(%arg0: i32) -> (i32, i32) {
    %c0_i32 = arith.constant 0 : i32
    %c0_i32_0 = arith.constant 0 : i32
    return %arg0, %c0_i32 : i32, i32
  }
}

</mosaic_0001>

<bundles_post_ra>
// kernel: deepms_forward.1
= control target key start
LH: loop header
LB: loop body
LE: loop exit
PB: predicated region body
PF: predicated region fallthrough
CT: control target
= control target key end

     0   :  { %vm279_vm0 = vcmask 326656   ;;  %vm370_vm1 = vcmask 1043456   ;;  %vm1509_vm2 = vcmask 523264   ;;  %vm11613_vm11 = vmmov 0   ;;  %s14144_s1 = inlined_call_operand.vmem [shape: bf16[3,40,64], index: 1, kind: input, shape index: {}]   ;;  %s14145_s0 = inlined_call_operand.vmem [shape: bf16[32,16,40], index: 0, kind: input, shape index: {}]   ;;  %s14146_s3 = inlined_call_operand.vmem [shape: bf16[3,64,64], index: 3, kind: input, shape index: {}]   ;;  %s14147_s2 = inlined_call_operand.vmem [shape: f32[1,64], index: 2, kind: input, shape index: {}]   ;;  %s14148_s5 = inlined_call_operand.vmem [shape: bf16[28,64,512], index: 5, kind: input, shape index: {}]   ;;  %s14149_s4 = inlined_call_operand.vmem [shape: f32[1,64], index: 4, kind: input, shape index: {}]   ;;  %s14150_s7 = inlined_call_operand.vmem [shape: bf16[512,32], index: 7, kind: input, shape index: {}]   ;;  %s14151_s6 = inlined_call_operand.vmem [shape: f32[1,512], index: 6, kind: input, shape index: {}]   ;;  %s14152_s9 = inlined_call_operand.vmem [shape: bf16[32,128], index: 9, kind: input, shape index: {}]   ;;  %s14153_s8 = inlined_call_operand.vmem [shape: f32[1,32], index: 8, kind: input, shape index: {}]   ;;  %s14154_s10 = inlined_call_operand.vmem [shape: f32[1,128], index: 10, kind: input, shape index: {}]   ;;  %s14155_s11 = inlined_call_operand.vmem [shape: f32[16,128], index: 11, kind: output, shape index: {}]  }
   0x1   :  { %v10852_v0 = vld [vmem:[%s14144_s1 + $0x14] sm:$0xff]   ;;  %v10853_v1 = vld [vmem:[%s14144_s1 + $0x1c] sm:$0xff]   ;;  %v11683_v2 = vld [vmem:[%s14145_s0 + $0x8] sm:$0xff]   ;;  %vm8479_vm14 = vcmask 261120  }
   0x2   :  { %10000 = vmatprep.subr.bf16.mxu0 %v10852_v0  ;;  %v10854_v3 = vld [vmem:[%s14144_s1 + $0x24] ss:$0 sps:$4 sm:$0xff]   ;;  %10006 = vmatprep.mubr.msk.bf16.mxu0 %vm279_vm0, %v11683_v2  ;;  %v11698_v6 = vld [vmem:[%s14145_s0 + $0x10] sm:$0xff]   ;;  %v11703_v7 = vld [vmem:[%s14145_s0 + $0x18] sm:$0xff]  }
   0x3   :  { %10001 = vmatpush3.bf16.msra.mxu0 %v10852_v0  ;;  %v372_v4 = vsel %vm370_vm1, %v10854_v3, 0  ;;  %v10857_v5 = vld [vmem:[%s14144_s1] sm:$0xff]   ;;  %v10868_v8 = vld [vmem:[%s14144_s1 + $0x8] sm:$0xff]   ;;  %v11729_v11 = vld [vmem:[%s14145_s0 + $0x30] sm:$0xff]  }
   0x4   :  { %10002 = vmatprep.subr.bf16.mxu0 %v10853_v1  ;;  %v11715_v9 = vld [vmem:[%s14145_s0 + $0x20] sm:$0xff]   ;;  %v11720_v10 = vld [vmem:[%s14145_s0 + $0x28] sm:$0xff]   ;;  %v11734_v12 = vld [vmem:[%s14145_s0 + $0x38] sm:$0xff]  }
   0x5   :  { %v10879_v13 = vld [vmem:[%s14144_s1 + $0x10] ss:$0 sps:$4 sm:$0xff]   ;;  %v11748_v15 = vld [vmem:[%s14145_s0 + $0x40] sm:$0xff]   ;;  %v11753_v16 = vld [vmem:[%s14145_s0 + $0x48] sm:$0xff]  }
   0x6   :  { %v671_v14 = vsel %vm370_vm1, %v10879_v13, 0  ;;  %v10889_v17 = vld [vmem:[%s14144_s1 + $0x28] sm:$0xff]   ;;  %v11765_v18 = vld [vmem:[%s14145_s0 + $0x50] sm:$0xff]   ;;  %v11770_v19 = vld [vmem:[%s14145_s0 + $0x58] sm:$0xff]  }
   0x7   :  { %10003 = vmatpush3.bf16.msra.mxu0 %v10853_v1  ;;  %v11779_v20 = vld [vmem:[%s14145_s0 + $0x60] sm:$0xff]   ;;  %v11784_v21 = vld [vmem:[%s14145_s0 + $0x68] sm:$0xff]   ;;  %v11793_v22 = vld [vmem:[%s14145_s0 + $0x70] sm:$0xff]  }
   0x8   :  { %10846 = vmatprep.subr.msk.bf16.mxu0 %vm370_vm1, %v10854_v3  ;;  %v11798_v23 = vld [vmem:[%s14145_s0 + $0x78] sm:$0xff]   ;;  %v11807_v24 = vld [vmem:[%s14145_s0 + $0x80] sm:$0xff]   ;;  %v11812_v25 = vld [vmem:[%s14145_s0 + $0x88] sm:$0xff]  }
   0x9   :  { %v11821_v26 = vld [vmem:[%s14145_s0 + $0x90] sm:$0xff]   ;;  %v11826_v27 = vld [vmem:[%s14145_s0 + $0x98] sm:$0xff]   ;;  %v11835_v28 = vld [vmem:[%s14145_s0 + $0xa0] sm:$0xff]  }
   0xa   :  { %v11840_v29 = vld [vmem:[%s14145_s0 + $0xa8] sm:$0xff]   ;;  %v11849_v30 = vld [vmem:[%s14145_s0 + $0xb0] sm:$0xff]   ;;  %v11854_v31 = vld [vmem:[%s14145_s0 + $0xb8] sm:$0xff]  }
   0xb   :  { %10005 = vmatpush3.bf16.msra.mxu0 %v372_v4  ;;  %v11863_v32 = vld [vmem:[%s14145_s0 + $0xc0] sm:$0xff]   ;;  %v11868_v33 = vld [vmem:[%s14145_s0 + $0xc8] sm:$0xff]   ;;  %v11877_v34 = vld [vmem:[%s14145_s0 + $0xd0] sm:$0xff]  }
   0xc   :  { %10066 = vmatprep.subr.bf16.mxu0 %v10857_v5  ;;  %v11882_v35 = vld [vmem:[%s14145_s0 + $0xd8] sm:$0xff]   ;;  %v11891_v36 = vld [vmem:[%s14145_s0 + $0xe0] sm:$0xff]   ;;  %v11896_v37 = vld [vmem:[%s14145_s0 + $0xe8] sm:$0xff]  }
   0xd   :  { %v11905_v38 = vld [vmem:[%s14145_s0 + $0xf0] sm:$0xff]   ;;  %v10888_v39 = vld [vmem:[%s14145_s0] sm:$0xff]   ;;  %v10891_v41 = vld [vmem:[%s14144_s1 + $0x38] ss:$0 sps:$4 sm:$0xff]  }
   0xe   :  { %10007 = vmatmul.mubr.msk.bf16.vlgmr.msra.gmra.mrb[0].mxu0 %vm279_vm0, %v11698_v6  ;;  %v10890_v40 = vld [vmem:[%s14144_s1 + $0x30] sm:$0xff]   ;;  %v976_v42 = vsel %vm370_vm1, %v10891_v41, 0  ;;  %v10892_v43 = vld [vmem:[%s14146_s3 + $0x20] sm:$0xff]   ;;  %v10894_v44 = vld [vmem:[%s14146_s3 + $0x28] sm:$0xff]  }
   0xf   :  { %10067 = vmatpush3.bf16.msra.mxu0 %v10857_v5  ;;  %10010 = vmatprep.mubr.msk.bf16.mxu0 %vm279_vm0, %v11703_v7  ;;  %v10895_v45 = vld [vmem:[%s14146_s3 + $0x30] sm:$0xff]   ;;  %v10896_v46 = vld [vmem:[%s14146_s3 + $0x38] sm:$0xff]   ;;  %v10897_v47 = vld [vmem:[%s14146_s3] sm:$0xff]  }
  0x10   :  { %10068 = vmatprep.subr.bf16.mxu0 %v10868_v8  ;;  %v10893_v48 = vld [vmem:[%s14145_s0 + $0xf8] sm:$0xff]   ;;  %v12059_v49 = vld [vmem:[%s14147_s2] ss:$0 sm:$0xff] }
  0x13   :  { %10069 = vmatpush3.bf16.msra.mxu0 %v10868_v8 }
  0x14   :  { %10847 = vmatprep.subr.msk.bf16.mxu0 %vm370_vm1, %v10879_v13 }
  0x16   :  { %10011 = vmatmul.mubr.msk.bf16.gmra.mrb[4].mxu0 %vm279_vm0, %v11715_v9 }
  0x17   :  { %10014 = vmatprep.mubr.msk.bf16.mxu0 %vm279_vm0, %v11720_v10  ;;  %10071 = vmatpush3.bf16.msra.mxu0 %v671_v14 }
  0x18   :  { %10132 = vmatprep.subr.bf16.mxu0 %v10889_v17 }
  0x1e   :  { %10015 = vmatmul.mubr.msk.bf16.gmra.mrb[8].mxu0 %vm279_vm0, %v11729_v11 }
  0x1f   :  { %10018 = vmatprep.mubr.msk.bf16.mxu0 %vm279_vm0, %v11734_v12 }
  0x26   :  { %10019 = vmatmul.mubr.msk.bf16.gmra.mrb[12].mxu0 %vm279_vm0, %v11748_v15 }
  0x27   :  { %10022 = vmatprep.mubr.msk.bf16.mxu0 %vm279_vm0, %v11753_v16 }
  0x2e   :  { %10023 = vmatmul.mubr.msk.bf16.gmra.mrb[16].mxu0 %vm279_vm0, %v11765_v18 }
  0x2f   :  { %10026 = vmatprep.mubr.msk.bf16.mxu0 %vm279_vm0, %v11770_v19 }
  0x36   :  { %10027 = vmatmul.mubr.msk.bf16.gmra.mrb[20].mxu0 %vm279_vm0, %v11779_v20 }
  0x37   :  { %10030 = vmatprep.mubr.msk.bf16.mxu0 %vm279_vm0, %v11784_v21 }
  0x3e   :  { %10031 = vmatmul.mubr.msk.bf16.gmra.mrb[24].mxu0 %vm279_vm0, %v11793_v22 }
  0x3f   :  { %10034 = vmatprep.mubr.msk.bf16.mxu0 %vm279_vm0, %v11798_v23 }
  0x46   :  { %10035 = vmatmul.mubr.msk.bf16.gmra.mrb[28].mxu0 %vm279_vm0, %v11807_v24 }
  0x47   :  { %10038 = vmatprep.mubr.msk.bf16.mxu0 %vm279_vm0, %v11812_v25 }
  0x4e   :  { %10039 = vmatmul.mubr.msk.bf16.gmra.mrb[32].mxu0 %vm279_vm0, %v11821_v26 }
  0x4f   :  { %10042 = vmatprep.mubr.msk.bf16.mxu0 %vm279_vm0, %v11826_v27 }
  0x56   :  { %10043 = vmatmul.mubr.msk.bf16.gmra.mrb[36].mxu0 %vm279_vm0, %v11835_v28 }
  0x57   :  { %10046 = vmatprep.mubr.msk.bf16.mxu0 %vm279_vm0, %v11840_v29 }
  0x5e   :  { %10047 = vmatmul.mubr.msk.bf16.gmra.mrb[40].mxu0 %vm279_vm0, %v11849_v30 }
  0x5f   :  { %10050 = vmatprep.mubr.msk.bf16.mxu0 %vm279_vm0, %v11854_v31 }
  0x66   :  { %10051 = vmatmul.mubr.msk.bf16.gmra.mrb[44].mxu0 %vm279_vm0, %v11863_v32 }
  0x67   :  { %10054 = vmatprep.mubr.msk.bf16.mxu0 %vm279_vm0, %v11868_v33 }
  0x6e   :  { %10055 = vmatmul.mubr.msk.bf16.gmra.mrb[48].mxu0 %vm279_vm0, %v11877_v34 }
  0x6f   :  { %10058 = vmatprep.mubr.msk.bf16.mxu0 %vm279_vm0, %v11882_v35 }
  0x76   :  { %10059 = vmatmul.mubr.msk.bf16.gmra.mrb[52].mxu0 %vm279_vm0, %v11891_v36 }
  0x77   :  { %10062 = vmatprep.mubr.msk.bf16.mxu0 %vm279_vm0, %v11896_v37 }
  0x7e   :  { %10063 = vmatmul.mubr.msk.bf16.gmra.mrb[56].mxu0 %vm279_vm0, %v11905_v38 }
  0x7f   :  { %10072 = vmatprep.mubr.msk.bf16.mxu0 %vm279_vm0, %v10888_v39  ;;  %v12111_v39 = vld [vmem:[%s14146_s3 + $0x40] sm:$0xff]  }
  0x86   :  { %10073 = vmatmul.mubr.msk.bf16.vlgmr.msra.gmra.mrb[0].mxu0 %vm279_vm0, %v11683_v2 }
  0x87   :  { %10133 = vmatpush3.bf16.msra.mxu0 %v10889_v17  ;;  %10076 = vmatprep.mubr.msk.bf16.mxu0 %vm279_vm0, %v11698_v6 }
  0x88   :  { %10134 = vmatprep.subr.bf16.mxu0 %v10890_v40 }
  0x8b   :  { %10135 = vmatpush3.bf16.msra.mxu0 %v10890_v40 }
  0x8c   :  { %10848 = vmatprep.subr.msk.bf16.mxu0 %vm370_vm1, %v10891_v41 }
  0x8e   :  { %10077 = vmatmul.mubr.msk.bf16.gmra.mrb[4].mxu0 %vm279_vm0, %v11703_v7 }
  0x8f   :  { %10080 = vmatprep.mubr.msk.bf16.mxu0 %vm279_vm0, %v11715_v9  ;;  %10137 = vmatpush3.bf16.msra.mxu0 %v976_v42 }
  0x90   :  { %10198 = vmatprep.subr.bf16.mxu0 %v10892_v43 }
  0x96   :  { %10081 = vmatmul.mubr.msk.bf16.gmra.mrb[8].mxu0 %vm279_vm0, %v11720_v10 }
  0x97   :  { %10084 = vmatprep.mubr.msk.bf16.mxu0 %vm279_vm0, %v11729_v11 }
  0x9e   :  { %10085 = vmatmul.mubr.msk.bf16.gmra.mrb[12].mxu0 %vm279_vm0, %v11734_v12 }
  0x9f   :  { %10088 = vmatprep.mubr.msk.bf16.mxu0 %vm279_vm0, %v11748_v15 }
  0xa6   :  { %10089 = vmatmul.mubr.msk.bf16.gmra.mrb[16].mxu0 %vm279_vm0, %v11753_v16 }
  0xa7   :  { %10092 = vmatprep.mubr.msk.bf16.mxu0 %vm279_vm0, %v11765_v18 }
  0xae   :  { %10093 = vmatmul.mubr.msk.bf16.gmra.mrb[20].mxu0 %vm279_vm0, %v11770_v19 }
  0xaf   :  { %10096 = vmatprep.mubr.msk.bf16.mxu0 %vm279_vm0, %v11779_v20 }
  0xb6   :  { %10097 = vmatmul.mubr.msk.bf16.gmra.mrb[24].mxu0 %vm279_vm0, %v11784_v21 }
  0xb7   :  { %10100 = vmatprep.mubr.msk.bf16.mxu0 %vm279_vm0, %v11793_v22 }
  0xbe   :  { %10101 = vmatmul.mubr.msk.bf16.gmra.mrb[28].mxu0 %vm279_vm0, %v11798_v23 }
  0xbf   :  { %10104 = vmatprep.mubr.msk.bf16.mxu0 %vm279_vm0, %v11807_v24 }
  0xc6   :  { %10105 = vmatmul.mubr.msk.bf16.gmra.mrb[32].mxu0 %vm279_vm0, %v11812_v25 }
  0xc7   :  { %10108 = vmatprep.mubr.msk.bf16.mxu0 %vm279_vm0, %v11821_v26 }
  0xce   :  { %10109 = vmatmul.mubr.msk.bf16.gmra.mrb[36].mxu0 %vm279_vm0, %v11826_v27 }
  0xcf   :  { %10112 = vmatprep.mubr.msk.bf16.mxu0 %vm279_vm0, %v11835_v28 }
  0xd6   :  { %10113 = vmatmul.mubr.msk.bf16.gmra.mrb[40].mxu0 %vm279_vm0, %v11840_v29 }
  0xd7   :  { %10116 = vmatprep.mubr.msk.bf16.mxu0 %vm279_vm0, %v11849_v30 }
  0xde   :  { %10117 = vmatmul.mubr.msk.bf16.gmra.mrb[44].mxu0 %vm279_vm0, %v11854_v31 }
  0xdf   :  { %10120 = vmatprep.mubr.msk.bf16.mxu0 %vm279_vm0, %v11863_v32 }
  0xe6   :  { %10121 = vmatmul.mubr.msk.bf16.gmra.mrb[48].mxu0 %vm279_vm0, %v11868_v33 }
  0xe7   :  { %10124 = vmatprep.mubr.msk.bf16.mxu0 %vm279_vm0, %v11877_v34 }
  0xee   :  { %10125 = vmatmul.mubr.msk.bf16.gmra.mrb[52].mxu0 %vm279_vm0, %v11882_v35 }
  0xef   :  { %10128 = vmatprep.mubr.msk.bf16.mxu0 %vm279_vm0, %v11891_v36 }
  0xf6   :  { %10129 = vmatmul.mubr.msk.bf16.gmra.mrb[56].mxu0 %vm279_vm0, %v11896_v37 }
  0xf7   :  { %10138 = vmatprep.mubr.msk.bf16.mxu0 %vm279_vm0, %v11698_v6 }
  0xfe   :  { %10139 = vmatmul.mubr.msk.bf16.vlgmr.msra.gmra.mrb[0].mxu0 %vm279_vm0, %v11703_v7 }
  0xff   :  { %10142 = vmatprep.mubr.msk.bf16.mxu0 %vm279_vm0, %v11715_v9  ;;  %10199 = vmatpush3.bf16.msra.mxu0 %v10892_v43 }
 0x100   :  { %10200 = vmatprep.subr.bf16.mxu0 %v10894_v44 }
 0x103   :  { %10201 = vmatpush3.bf16.msra.mxu0 %v10894_v44 }
 0x104   :  { %10202 = vmatprep.subr.bf16.mxu0 %v10895_v45 }
 0x106   :  { %10143 = vmatmul.mubr.msk.bf16.gmra.mrb[4].mxu0 %vm279_vm0, %v11720_v10 }
 0x107   :  { %10146 = vmatprep.mubr.msk.bf16.mxu0 %vm279_vm0, %v11729_v11  ;;  %10203 = vmatpush3.bf16.msra.mxu0 %v10895_v45 }
 0x108   :  { %10204 = vmatprep.subr.bf16.mxu0 %v10896_v46 }
 0x10b   :  { %10205 = vmatpush3.bf16.msra.mxu0 %v10896_v46 }
 0x10c   :  { %10262 = vmatprep.subr.bf16.mxu0 %v10897_v47 }
 0x10e   :  { %10147 = vmatmul.mubr.msk.bf16.gmra.mrb[8].mxu0 %vm279_vm0, %v11734_v12 }
 0x10f   :  { %10150 = vmatprep.mubr.msk.bf16.mxu0 %vm279_vm0, %v11748_v15  ;;  %v10898_v15 = vld [vmem:[%s14146_s3 + $0x8] sm:$0xff]  }
 0x116   :  { %10151 = vmatmul.mubr.msk.bf16.gmra.mrb[12].mxu0 %vm279_vm0, %v11753_v16 }
 0x117   :  { %10154 = vmatprep.mubr.msk.bf16.mxu0 %vm279_vm0, %v11765_v18 }
 0x11e   :  { %10155 = vmatmul.mubr.msk.bf16.gmra.mrb[16].mxu0 %vm279_vm0, %v11770_v19 }
 0x11f   :  { %10158 = vmatprep.mubr.msk.bf16.mxu0 %vm279_vm0, %v11779_v20 }
 0x126   :  { %10159 = vmatmul.mubr.msk.bf16.gmra.mrb[20].mxu0 %vm279_vm0, %v11784_v21 }
 0x127   :  { %10162 = vmatprep.mubr.msk.bf16.mxu0 %vm279_vm0, %v11793_v22 }
 0x12e   :  { %10163 = vmatmul.mubr.msk.bf16.gmra.mrb[24].mxu0 %vm279_vm0, %v11798_v23  ;;  %v10899_v23 = vld [vmem:[%s14146_s3 + $0x10] sm:$0xff]  }
 0x12f   :  { %10166 = vmatprep.mubr.msk.bf16.mxu0 %vm279_vm0, %v11807_v24 }
 0x136   :  { %10167 = vmatmul.mubr.msk.bf16.gmra.mrb[28].mxu0 %vm279_vm0, %v11812_v25 }
 0x137   :  { %10170 = vmatprep.mubr.msk.bf16.mxu0 %vm279_vm0, %v11821_v26 }
 0x13e   :  { %10171 = vmatmul.mubr.msk.bf16.gmra.mrb[32].mxu0 %vm279_vm0, %v11826_v27 }
 0x13f   :  { %10174 = vmatprep.mubr.msk.bf16.mxu0 %vm279_vm0, %v11835_v28 }
 0x146   :  { %10175 = vmatmul.mubr.msk.bf16.gmra.mrb[36].mxu0 %vm279_vm0, %v11840_v29 }
 0x147   :  { %10178 = vmatprep.mubr.msk.bf16.mxu0 %vm279_vm0, %v11849_v30 }
 0x14e   :  { %10179 = vmatmul.mubr.msk.bf16.gmra.mrb[40].mxu0 %vm279_vm0, %v11854_v31  ;;  %v10900_v31 = vld [vmem:[%s14146_s3 + $0x18] sm:$0xff]  }
 0x14f   :  { %10182 = vmatprep.mubr.msk.bf16.mxu0 %vm279_vm0, %v11863_v32 }
 0x156   :  { %10183 = vmatmul.mubr.msk.bf16.gmra.mrb[44].mxu0 %vm279_vm0, %v11868_v33 }
 0x157   :  { %10186 = vmatprep.mubr.msk.bf16.mxu0 %vm279_vm0, %v11877_v34 }
 0x15e   :  { %10187 = vmatmul.mubr.msk.bf16.gmra.mrb[48].mxu0 %vm279_vm0, %v11882_v35 }
 0x15f   :  { %10190 = vmatprep.mubr.msk.bf16.mxu0 %vm279_vm0, %v11891_v36 }
 0x166   :  { %10191 = vmatmul.mubr.msk.bf16.gmra.mrb[52].mxu0 %vm279_vm0, %v11896_v37 }
 0x167   :  { %10194 = vmatprep.mubr.msk.bf16.mxu0 %vm279_vm0, %v11905_v38 }
 0x16e   :  { %10195 = vmatmul.mubr.msk.bf16.gmra.mrb[56].mxu0 %vm279_vm0, %v10893_v48 }
 0x1d1   :  { %v10140_v50 = vpop.f32.mrb[0].mxu0 }
 0x1d2   :  { %v1320_v51 = vadd.f32 %v10140_v50, %v12059_v49  ;;  %v1012_v52 = vpop.f32.mrb[1].mxu0 }
 0x1d3   :  { %v1318_v53 = vadd.f32 %v12059_v49, %v1012_v52  ;;  %v10141_v54 = vpop.f32.mrb[2].mxu0 }
 0x1d4   :  { %v1321_v55 = vadd.f32 %v10141_v54, %v12059_v49  ;;  %v1015_v56 = vpop.f32.mrb[3].mxu0  ;;  %v1380_v58 = vmax.f32 %v1320_v51, 0.0 }
 0x1d5   :  { %v1319_v57 = vadd.f32 %v12059_v49, %v1015_v56  ;;  %v1378_v60 = vmax.f32 %v1318_v53, 0.0 }
 0x1d6   :  { %v1381_v59 = vmax.f32 %v1321_v55, 0.0 }
 0x1d7   :  { %v1379_v61 = vmax.f32 %v1319_v57, 0.0 }
 0x1d8   :  { %v12065_v62 = vpack.c.bf16 %v1381_v59, %v1380_v58 }
 0x1d9   :  { %v12067_v63 = vpack.c.bf16 %v1379_v61, %v1378_v60  ;;  %v10144_v0 = vpop.f32.mrb[4].mxu0 }
 0x1da   :  { %v1324_v1 = vadd.f32 %v10144_v0, %v12059_v49  ;;  %v1028_v2 = vpop.f32.mrb[5].mxu0  ;;  %10206 = vmatprep.mubr.msk.bf16.mxu0 %vm1509_vm2, %v12065_v62 }
 0x1db   :  { %v1322_v3 = vadd.f32 %v12059_v49, %v1028_v2  ;;  %v10145_v4 = vpop.f32.mrb[6].mxu0 }
 0x1dc   :  { %v1325_v5 = vadd.f32 %v10145_v4, %v12059_v49  ;;  %v1031_v6 = vpop.f32.mrb[7].mxu0  ;;  %v1384_v8 = vmax.f32 %v1324_v1, 0.0 }
 0x1dd   :  { %v1323_v7 = vadd.f32 %v12059_v49, %v1031_v6  ;;  %v1382_v10 = vmax.f32 %v1322_v3, 0.0 }
 0x1de   :  { %v1385_v9 = vmax.f32 %v1325_v5, 0.0 }
 0x1df   :  { %v1383_v11 = vmax.f32 %v1323_v7, 0.0 }
 0x1e0   :  { %v12075_v12 = vpack.c.bf16 %v1385_v9, %v1384_v8 }
 0x1e1   :  { %v12077_v13 = vpack.c.bf16 %v1383_v11, %v1382_v10  ;;  %v10148_v14 = vpop.f32.mrb[8].mxu0 }
 0x1e2   :  { %v1328_v16 = vadd.f32 %v10148_v14, %v12059_v49  ;;  %v1044_v17 = vpop.f32.mrb[9].mxu0 }
 0x1e3   :  { %v1326_v18 = vadd.f32 %v12059_v49, %v1044_v17  ;;  %v10149_v19 = vpop.f32.mrb[10].mxu0  ;;  %10207 = vmatmul.mubr.msk.bf16.vlgmr.msra.gmra.mrb[60].mxu0 %vm1509_vm2, %v12077_v13 }
 0x1e4   :  { %v1329_v20 = vadd.f32 %v10149_v19, %v12059_v49  ;;  %v1047_v21 = vpop.f32.mrb[11].mxu0  ;;  %10210 = vmatprep.mubr.msk.bf16.mxu0 %vm1509_vm2, %v12075_v12  ;;  %10263 = vmatpush3.bf16.msra.mxu0 %v10897_v47  ;;  %v1388_v24 = vmax.f32 %v1328_v16, 0.0 }
 0x1e5   :  { %v1327_v22 = vadd.f32 %v12059_v49, %v1047_v21  ;;  %10264 = vmatprep.subr.bf16.mxu0 %v10898_v15  ;;  %v1386_v26 = vmax.f32 %v1326_v18, 0.0 }
 0x1e6   :  { %v1389_v25 = vmax.f32 %v1329_v20, 0.0 }
 0x1e7   :  { %v1387_v27 = vmax.f32 %v1327_v22, 0.0 }
 0x1e8   :  { %v12093_v28 = vpack.c.bf16 %v1389_v25, %v1388_v24  ;;  %10265 = vmatpush3.bf16.msra.mxu0 %v10898_v15 }
 0x1e9   :  { %v12095_v29 = vpack.c.bf16 %v1387_v27, %v1386_v26  ;;  %v10152_v30 = vpop.f32.mrb[12].mxu0  ;;  %10266 = vmatprep.subr.bf16.mxu0 %v10899_v23 }
 0x1ea   :  { %v1332_v32 = vadd.f32 %v10152_v30, %v12059_v49  ;;  %v1060_v33 = vpop.f32.mrb[13].mxu0 }
 0x1eb   :  { %v1330_v34 = vadd.f32 %v12059_v49, %v1060_v33  ;;  %v10153_v35 = vpop.f32.mrb[14].mxu0  ;;  %10211 = vmatmul.mubr.msk.bf16.gmra.mrb[64].mxu0 %vm1509_vm2, %v12095_v29 }
 0x1ec   :  { %v1333_v36 = vadd.f32 %v10153_v35, %v12059_v49  ;;  %v1063_v37 = vpop.f32.mrb[15].mxu0  ;;  %10214 = vmatprep.mubr.msk.bf16.mxu0 %vm1509_vm2, %v12093_v28  ;;  %10267 = vmatpush3.bf16.msra.mxu0 %v10899_v23  ;;  %v1392_v40 = vmax.f32 %v1332_v32, 0.0 }
 0x1ed   :  { %v1331_v38 = vadd.f32 %v12059_v49, %v1063_v37  ;;  %10268 = vmatprep.subr.bf16.mxu0 %v10900_v31  ;;  %v1390_v42 = vmax.f32 %v1330_v34, 0.0 }
 0x1ee   :  { %v1393_v41 = vmax.f32 %v1333_v36, 0.0 }
 0x1ef   :  { %v1391_v43 = vmax.f32 %v1331_v38, 0.0 }
 0x1f0   :  { %v12113_v44 = vpack.c.bf16 %v1393_v41, %v1392_v40  ;;  %10269 = vmatpush3.bf16.msra.mxu0 %v10900_v31 }
 0x1f1   :  { %v12115_v45 = vpack.c.bf16 %v1391_v43, %v1390_v42  ;;  %v10156_v46 = vpop.f32.mrb[16].mxu0  ;;  %10326 = vmatprep.subr.bf16.mxu0 %v12111_v39 }
 0x1f2   :  { %v1336_v47 = vadd.f32 %v10156_v46, %v12059_v49  ;;  %v1076_v48 = vpop.f32.mrb[17].mxu0 }
 0x1f3   :  { %v1334_v50 = vadd.f32 %v12059_v49, %v1076_v48  ;;  %v10157_v51 = vpop.f32.mrb[18].mxu0  ;;  %10215 = vmatmul.mubr.msk.bf16.gmra.mrb[68].mxu0 %vm1509_vm2, %v12115_v45 }
 0x1f4   :  { %v1337_v52 = vadd.f32 %v10157_v51, %v12059_v49  ;;  %v1079_v53 = vpop.f32.mrb[19].mxu0  ;;  %10218 = vmatprep.mubr.msk.bf16.mxu0 %vm1509_vm2, %v12113_v44  ;;  %v1396_v55 = vmax.f32 %v1336_v47, 0.0 }
 0x1f5   :  { %v1335_v54 = vadd.f32 %v12059_v49, %v1079_v53  ;;  %v1394_v57 = vmax.f32 %v1334_v50, 0.0 }
 0x1f6   :  { %v1397_v56 = vmax.f32 %v1337_v52, 0.0 }
 0x1f7   :  { %v1395_v58 = vmax.f32 %v1335_v54, 0.0 }
 0x1f8   :  { %v12126_v59 = vpack.c.bf16 %v1397_v56, %v1396_v55 }
 0x1f9   :  { %v12128_v60 = vpack.c.bf16 %v1395_v58, %v1394_v57  ;;  %v10160_v61 = vpop.f32.mrb[20].mxu0 }
 0x1fa   :  { %v1340_v0 = vadd.f32 %v10160_v61, %v12059_v49  ;;  %v1092_v1 = vpop.f32.mrb[21].mxu0 }
 0x1fb   :  { %v1338_v2 = vadd.f32 %v12059_v49, %v1092_v1  ;;  %v10161_v3 = vpop.f32.mrb[22].mxu0  ;;  %10219 = vmatmul.mubr.msk.bf16.gmra.mrb[72].mxu0 %vm1509_vm2, %v12128_v60 }
 0x1fc   :  { %v1341_v4 = vadd.f32 %v10161_v3, %v12059_v49  ;;  %v1095_v5 = vpop.f32.mrb[23].mxu0  ;;  %10222 = vmatprep.mubr.msk.bf16.mxu0 %vm1509_vm2, %v12126_v59  ;;  %v1400_v7 = vmax.f32 %v1340_v0, 0.0 }
 0x1fd   :  { %v1339_v6 = vadd.f32 %v12059_v49, %v1095_v5  ;;  %v1398_v9 = vmax.f32 %v1338_v2, 0.0 }
 0x1fe   :  { %v1401_v8 = vmax.f32 %v1341_v4, 0.0 }
 0x1ff   :  { %v1399_v10 = vmax.f32 %v1339_v6, 0.0 }
 0x200   :  { %v12138_v11 = vpack.c.bf16 %v1401_v8, %v1400_v7 }
 0x201   :  { %v12140_v14 = vpack.c.bf16 %v1399_v10, %v1398_v9  ;;  %v10164_v15 = vpop.f32.mrb[24].mxu0 }
 0x202   :  { %v1344_v16 = vadd.f32 %v10164_v15, %v12059_v49  ;;  %v1108_v17 = vpop.f32.mrb[25].mxu0 }
 0x203   :  { %v1342_v18 = vadd.f32 %v12059_v49, %v1108_v17  ;;  %v10165_v19 = vpop.f32.mrb[26].mxu0  ;;  %10223 = vmatmul.mubr.msk.bf16.gmra.mrb[76].mxu0 %vm1509_vm2, %v12140_v14 }
 0x204   :  { %v1345_v20 = vadd.f32 %v10165_v19, %v12059_v49  ;;  %v1111_v21 = vpop.f32.mrb[27].mxu0  ;;  %10226 = vmatprep.mubr.msk.bf16.mxu0 %vm1509_vm2, %v12138_v11  ;;  %v1404_v23 = vmax.f32 %v1344_v16, 0.0 }
 0x205   :  { %v1343_v22 = vadd.f32 %v12059_v49, %v1111_v21  ;;  %v1402_v25 = vmax.f32 %v1342_v18, 0.0 }
 0x206   :  { %v1405_v24 = vmax.f32 %v1345_v20, 0.0 }
 0x207   :  { %v1403_v26 = vmax.f32 %v1343_v22, 0.0 }
 0x208   :  { %v12150_v27 = vpack.c.bf16 %v1405_v24, %v1404_v23 }
 0x209   :  { %v12152_v30 = vpack.c.bf16 %v1403_v26, %v1402_v25  ;;  %v10168_v31 = vpop.f32.mrb[28].mxu0 }
 0x20a   :  { %v1348_v32 = vadd.f32 %v10168_v31, %v12059_v49  ;;  %v1124_v33 = vpop.f32.mrb[29].mxu0 }
 0x20b   :  { %v1346_v34 = vadd.f32 %v12059_v49, %v1124_v33  ;;  %v10169_v35 = vpop.f32.mrb[30].mxu0  ;;  %10227 = vmatmul.mubr.msk.bf16.gmra.mrb[80].mxu0 %vm1509_vm2, %v12152_v30 }
 0x20c   :  { %v1349_v36 = vadd.f32 %v10169_v35, %v12059_v49  ;;  %v1127_v37 = vpop.f32.mrb[31].mxu0  ;;  %10230 = vmatprep.mubr.msk.bf16.mxu0 %vm1509_vm2, %v12150_v27  ;;  %v1408_v40 = vmax.f32 %v1348_v32, 0.0 }
 0x20d   :  { %v1347_v38 = vadd.f32 %v12059_v49, %v1127_v37  ;;  %v1406_v42 = vmax.f32 %v1346_v34, 0.0 }
 0x20e   :  { %v1409_v41 = vmax.f32 %v1349_v36, 0.0 }
 0x20f   :  { %v1407_v43 = vmax.f32 %v1347_v38, 0.0 }
 0x210   :  { %v12162_v46 = vpack.c.bf16 %v1409_v41, %v1408_v40 }
 0x211   :  { %v12164_v47 = vpack.c.bf16 %v1407_v43, %v1406_v42  ;;  %v10172_v48 = vpop.f32.mrb[32].mxu0 }
 0x212   :  { %v1352_v50 = vadd.f32 %v10172_v48, %v12059_v49  ;;  %v1140_v51 = vpop.f32.mrb[33].mxu0 }
 0x213   :  { %v1350_v52 = vadd.f32 %v12059_v49, %v1140_v51  ;;  %v10173_v53 = vpop.f32.mrb[34].mxu0  ;;  %10231 = vmatmul.mubr.msk.bf16.gmra.mrb[84].mxu0 %vm1509_vm2, %v12164_v47 }
 0x214   :  { %v1353_v54 = vadd.f32 %v10173_v53, %v12059_v49  ;;  %v1143_v55 = vpop.f32.mrb[35].mxu0  ;;  %10234 = vmatprep.mubr.msk.bf16.mxu0 %vm1509_vm2, %v12162_v46  ;;  %v1412_v57 = vmax.f32 %v1352_v50, 0.0 }
 0x215   :  { %v1351_v56 = vadd.f32 %v12059_v49, %v1143_v55  ;;  %v1410_v61 = vmax.f32 %v1350_v52, 0.0 }
 0x216   :  { %v1413_v58 = vmax.f32 %v1353_v54, 0.0 }
 0x217   :  { %v1411_v0 = vmax.f32 %v1351_v56, 0.0 }
 0x218   :  { %v12174_v1 = vpack.c.bf16 %v1413_v58, %v1412_v57 }
 0x219   :  { %v12176_v2 = vpack.c.bf16 %v1411_v0, %v1410_v61  ;;  %v10176_v3 = vpop.f32.mrb[36].mxu0 }
 0x21a   :  { %v1356_v4 = vadd.f32 %v10176_v3, %v12059_v49  ;;  %v1156_v5 = vpop.f32.mrb[37].mxu0 }
 0x21b   :  { %v1354_v6 = vadd.f32 %v12059_v49, %v1156_v5  ;;  %v10177_v7 = vpop.f32.mrb[38].mxu0  ;;  %10235 = vmatmul.mubr.msk.bf16.gmra.mrb[88].mxu0 %vm1509_vm2, %v12176_v2 }
 0x21c   :  { %v1357_v8 = vadd.f32 %v10177_v7, %v12059_v49  ;;  %v1159_v9 = vpop.f32.mrb[39].mxu0  ;;  %10238 = vmatprep.mubr.msk.bf16.mxu0 %vm1509_vm2, %v12174_v1  ;;  %v1416_v15 = vmax.f32 %v1356_v4, 0.0 }
 0x21d   :  { %v1355_v10 = vadd.f32 %v12059_v49, %v1159_v9  ;;  %v1414_v17 = vmax.f32 %v1354_v6, 0.0 }
 0x21e   :  { %v1417_v16 = vmax.f32 %v1357_v8, 0.0 }
 0x21f   :  { %v1415_v18 = vmax.f32 %v1355_v10, 0.0 }
 0x220   :  { %v12186_v19 = vpack.c.bf16 %v1417_v16, %v1416_v15 }
 0x221   :  { %v12188_v20 = vpack.c.bf16 %v1415_v18, %v1414_v17  ;;  %v10180_v21 = vpop.f32.mrb[40].mxu0 }
 0x222   :  { %v1360_v22 = vadd.f32 %v10180_v21, %v12059_v49  ;;  %v1172_v23 = vpop.f32.mrb[41].mxu0 }
 0x223   :  { %v1358_v24 = vadd.f32 %v12059_v49, %v1172_v23  ;;  %v10181_v25 = vpop.f32.mrb[42].mxu0  ;;  %10239 = vmatmul.mubr.msk.bf16.gmra.mrb[92].mxu0 %vm1509_vm2, %v12188_v20 }
 0x224   :  { %v1361_v26 = vadd.f32 %v10181_v25, %v12059_v49  ;;  %v1175_v31 = vpop.f32.mrb[43].mxu0  ;;  %10242 = vmatprep.mubr.msk.bf16.mxu0 %vm1509_vm2, %v12186_v19  ;;  %v1420_v33 = vmax.f32 %v1360_v22, 0.0 }
 0x225   :  { %v1359_v32 = vadd.f32 %v12059_v49, %v1175_v31  ;;  %v1418_v35 = vmax.f32 %v1358_v24, 0.0 }
 0x226   :  { %v1421_v34 = vmax.f32 %v1361_v26, 0.0 }
 0x227   :  { %v1419_v36 = vmax.f32 %v1359_v32, 0.0 }
 0x228   :  { %v12198_v37 = vpack.c.bf16 %v1421_v34, %v1420_v33 }
 0x229   :  { %v12200_v38 = vpack.c.bf16 %v1419_v36, %v1418_v35  ;;  %v10184_v40 = vpop.f32.mrb[44].mxu0 }
 0x22a   :  { %v1364_v41 = vadd.f32 %v10184_v40, %v12059_v49  ;;  %v1188_v42 = vpop.f32.mrb[45].mxu0 }
 0x22b   :  { %v1362_v43 = vadd.f32 %v12059_v49, %v1188_v42  ;;  %v10185_v48 = vpop.f32.mrb[46].mxu0  ;;  %10243 = vmatmul.mubr.msk.bf16.gmra.mrb[96].mxu0 %vm1509_vm2, %v12200_v38 }
 0x22c   :  { %v1365_v50 = vadd.f32 %v10185_v48, %v12059_v49  ;;  %v1191_v51 = vpop.f32.mrb[47].mxu0  ;;  %10246 = vmatprep.mubr.msk.bf16.mxu0 %vm1509_vm2, %v12198_v37  ;;  %v1424_v53 = vmax.f32 %v1364_v41, 0.0 }
 0x22d   :  { %v1363_v52 = vadd.f32 %v12059_v49, %v1191_v51  ;;  %v1422_v55 = vmax.f32 %v1362_v43, 0.0 }
 0x22e   :  { %v1425_v54 = vmax.f32 %v1365_v50, 0.0 }
 0x22f   :  { %v1423_v56 = vmax.f32 %v1363_v52, 0.0 }
 0x230   :  { %v12210_v57 = vpack.c.bf16 %v1425_v54, %v1424_v53 }
 0x231   :  { %v12212_v58 = vpack.c.bf16 %v1423_v56, %v1422_v55  ;;  %v10188_v61 = vpop.f32.mrb[48].mxu0 }
 0x232   :  { %v1368_v0 = vadd.f32 %v10188_v61, %v12059_v49  ;;  %v1204_v3 = vpop.f32.mrb[49].mxu0 }
 0x233   :  { %v1366_v4 = vadd.f32 %v12059_v49, %v1204_v3  ;;  %v10189_v5 = vpop.f32.mrb[50].mxu0  ;;  %10247 = vmatmul.mubr.msk.bf16.gmra.mrb[100].mxu0 %vm1509_vm2, %v12212_v58 }
 0x234   :  { %v1369_v6 = vadd.f32 %v10189_v5, %v12059_v49  ;;  %v1207_v7 = vpop.f32.mrb[51].mxu0  ;;  %10250 = vmatprep.mubr.msk.bf16.mxu0 %vm1509_vm2, %v12210_v57  ;;  %v1428_v9 = vmax.f32 %v1368_v0, 0.0  ;;  %v10902_v5 = vld [vmem:[%s14146_s3 + $0x48] sm:$0xff]  }
 0x235   :  { %v1367_v8 = vadd.f32 %v12059_v49, %v1207_v7  ;;  %v1426_v15 = vmax.f32 %v1366_v4, 0.0  ;;  %v10908_v7 = vld [vmem:[%s14148_s5 + $0xa0] ss:$16 sps:$4 sm:$0xff]  }
 0x236   :  { %v1429_v10 = vmax.f32 %v1369_v6, 0.0  ;;  %v10910_v6 = vld [vmem:[%s14148_s5 + $0xa4] ss:$16 sps:$4 sm:$0xff]  }
 0x237   :  { %v1427_v16 = vmax.f32 %v1367_v8, 0.0 }
 0x238   :  { %v12222_v17 = vpack.c.bf16 %v1429_v10, %v1428_v9 }
 0x239   :  { %v12224_v18 = vpack.c.bf16 %v1427_v16, %v1426_v15  ;;  %v10192_v21 = vpop.f32.mrb[52].mxu0 }
 0x23a   :  { %v1372_v22 = vadd.f32 %v10192_v21, %v12059_v49  ;;  %v1220_v23 = vpop.f32.mrb[53].mxu0 }
 0x23b   :  { %v1370_v24 = vadd.f32 %v12059_v49, %v1220_v23  ;;  %v10193_v25 = vpop.f32.mrb[54].mxu0  ;;  %10251 = vmatmul.mubr.msk.bf16.gmra.mrb[104].mxu0 %vm1509_vm2, %v12224_v18 }
 0x23c   :  { %v1373_v26 = vadd.f32 %v10193_v25, %v12059_v49  ;;  %v1223_v31 = vpop.f32.mrb[55].mxu0  ;;  %10254 = vmatprep.mubr.msk.bf16.mxu0 %vm1509_vm2, %v12222_v17  ;;  %v1432_v33 = vmax.f32 %v1372_v22, 0.0  ;;  %v10931_v22 = vld [vmem:[%s14148_s5 + $0xac] ss:$16 sps:$4 sm:$0xff]  }
 0x23d   :  { %v1371_v32 = vadd.f32 %v12059_v49, %v1223_v31  ;;  %v1430_v35 = vmax.f32 %v1370_v24, 0.0 }
 0x23e   :  { %v1433_v34 = vmax.f32 %v1373_v26, 0.0 }
 0x23f   :  { %v1431_v36 = vmax.f32 %v1371_v32, 0.0 }
 0x240   :  { %v12234_v40 = vpack.c.bf16 %v1433_v34, %v1432_v33  ;;  %v10929_v33 = vld [vmem:[%s14148_s5 + $0xa8] ss:$16 sps:$4 sm:$0xff]  }
 0x241   :  { %v12236_v41 = vpack.c.bf16 %v1431_v36, %v1430_v35  ;;  %v10196_v42 = vpop.f32.mrb[56].mxu0  ;;  %v10937_v36 = vld [vmem:[%s14148_s5 + $0xcc] ss:$16 sps:$4 sm:$0xff]  }
 0x242   :  { %v1376_v43 = vadd.f32 %v10196_v42, %v12059_v49  ;;  %v1236_v48 = vpop.f32.mrb[57].mxu0 }
 0x243   :  { %v1374_v50 = vadd.f32 %v12059_v49, %v1236_v48  ;;  %v10197_v51 = vpop.f32.mrb[58].mxu0  ;;  %10255 = vmatmul.mubr.msk.bf16.gmra.mrb[108].mxu0 %vm1509_vm2, %v12236_v41 }
 0x244   :  { %v1377_v52 = vadd.f32 %v10197_v51, %v12059_v49  ;;  %v1239_v53 = vpop.f32.mrb[59].mxu0  ;;  %10258 = vmatprep.mubr.msk.bf16.mxu0 %vm1509_vm2, %v12234_v40  ;;  %v1436_v55 = vmax.f32 %v1376_v43, 0.0 }
 0x245   :  { %v1375_v54 = vadd.f32 %v12059_v49, %v1239_v53  ;;  %v1434_v61 = vmax.f32 %v1374_v50, 0.0  ;;  %v10903_v49 = vld [vmem:[%s14146_s3 + $0x50] sm:$0xff]   ;;  %v10935_v50 = vld [vmem:[%s14148_s5 + $0xc8] ss:$16 sps:$4 sm:$0xff]   ;;  %v10943_v53 = vld [vmem:[%s14148_s5 + $0xec] ss:$16 sps:$4 sm:$0xff]  }
 0x246   :  { %v1437_v56 = vmax.f32 %v1377_v52, 0.0  ;;  %v10938_v52 = vld [vmem:[%s14148_s5 + $0x108] ss:$16 sps:$4 sm:$0xff]  }
 0x247   :  { %v1435_v0 = vmax.f32 %v1375_v54, 0.0 }
 0x248   :  { %v12246_v3 = vpack.c.bf16 %v1437_v56, %v1436_v55  ;;  %v10946_v56 = vld [vmem:[%s14148_s5 + $0x12c] ss:$16 sps:$4 sm:$0xff]  }
 0x249   :  { %v12248_v4 = vpack.c.bf16 %v1435_v0, %v1434_v61 }
 0x24b   :  { %10259 = vmatmul.mubr.msk.bf16.gmra.mrb[112].mxu0 %vm1509_vm2, %v12248_v4 }
 0x24c   :  { %10270 = vmatprep.mubr.msk.bf16.mxu0 %vm1509_vm2, %v12067_v63  ;;  %v10904_v63 = vld [vmem:[%s14146_s3 + $0x58] sm:$0xff]  }
 0x253   :  { %10271 = vmatmul.mubr.msk.bf16.vlgmr.msra.gmra.mrb[60].mxu0 %vm1509_vm2, %v12065_v62  ;;  %v10907_v62 = vld [vmem:[%s14148_s5 + $0x84] ss:$16 sps:$4 sm:$0xff]  }
 0x254   :  { %10274 = vmatprep.mubr.msk.bf16.mxu0 %vm1509_vm2, %v12077_v13  ;;  %10327 = vmatpush3.bf16.msra.mxu0 %v12111_v39  ;;  %v10905_v39 = vld [vmem:[%s14148_s5 + $0x80] ss:$16 sps:$4 sm:$0xff]  }
 0x255   :  { %10328 = vmatprep.subr.bf16.mxu0 %v10902_v5 }
 0x258   :  { %10329 = vmatpush3.bf16.msra.mxu0 %v10902_v5  ;;  %v10941_v5 = vld [vmem:[%s14148_s5 + $0xe8] ss:$16 sps:$4 sm:$0xff]  }
 0x259   :  { %10330 = vmatprep.subr.bf16.mxu0 %v10903_v49 }
 0x25b   :  { %10275 = vmatmul.mubr.msk.bf16.gmra.mrb[64].mxu0 %vm1509_vm2, %v12075_v12 }
 0x25c   :  { %10278 = vmatprep.mubr.msk.bf16.mxu0 %vm1509_vm2, %v12095_v29  ;;  %10331 = vmatpush3.bf16.msra.mxu0 %v10903_v49 }
 0x25d   :  { %10332 = vmatprep.subr.bf16.mxu0 %v10904_v63 }
 0x260   :  { %10333 = vmatpush3.bf16.msra.mxu0 %v10904_v63 }
 0x261   :  { %2747 = vmatprep.subr.bf16.mxu0 %v10907_v62  ;;  %v10944_v62 = vld [vmem:[%s14148_s5 + $0x128] ss:$16 sps:$4 sm:$0xff]  }
 0x263   :  { %10279 = vmatmul.mubr.msk.bf16.gmra.mrb[68].mxu0 %vm1509_vm2, %v12093_v28 }
 0x264   :  { %10282 = vmatprep.mubr.msk.bf16.mxu0 %vm1509_vm2, %v12115_v45 }
 0x26b   :  { %10283 = vmatmul.mubr.msk.bf16.gmra.mrb[72].mxu0 %vm1509_vm2, %v12113_v44 }
 0x26c   :  { %10286 = vmatprep.mubr.msk.bf16.mxu0 %vm1509_vm2, %v12128_v60 }
 0x273   :  { %10287 = vmatmul.mubr.msk.bf16.gmra.mrb[76].mxu0 %vm1509_vm2, %v12126_v59 }
 0x274   :  { %10290 = vmatprep.mubr.msk.bf16.mxu0 %vm1509_vm2, %v12140_v14 }
 0x27b   :  { %10291 = vmatmul.mubr.msk.bf16.gmra.mrb[80].mxu0 %vm1509_vm2, %v12138_v11 }
 0x27c   :  { %10294 = vmatprep.mubr.msk.bf16.mxu0 %vm1509_vm2, %v12152_v30 }
 0x283   :  { %10295 = vmatmul.mubr.msk.bf16.gmra.mrb[84].mxu0 %vm1509_vm2, %v12150_v27 }
 0x284   :  { %10298 = vmatprep.mubr.msk.bf16.mxu0 %vm1509_vm2, %v12164_v47 }
 0x28b   :  { %10299 = vmatmul.mubr.msk.bf16.gmra.mrb[88].mxu0 %vm1509_vm2, %v12162_v46 }
 0x28c   :  { %10302 = vmatprep.mubr.msk.bf16.mxu0 %vm1509_vm2, %v12176_v2 }
 0x293   :  { %10303 = vmatmul.mubr.msk.bf16.gmra.mrb[92].mxu0 %vm1509_vm2, %v12174_v1 }
 0x294   :  { %10306 = vmatprep.mubr.msk.bf16.mxu0 %vm1509_vm2, %v12188_v20 }
 0x29b   :  { %10307 = vmatmul.mubr.msk.bf16.gmra.mrb[96].mxu0 %vm1509_vm2, %v12186_v19 }
 0x29c   :  { %10310 = vmatprep.mubr.msk.bf16.mxu0 %vm1509_vm2, %v12200_v38 }
 0x2a3   :  { %10311 = vmatmul.mubr.msk.bf16.gmra.mrb[100].mxu0 %vm1509_vm2, %v12198_v37 }
 0x2a4   :  { %10314 = vmatprep.mubr.msk.bf16.mxu0 %vm1509_vm2, %v12212_v58 }
 0x2ab   :  { %10315 = vmatmul.mubr.msk.bf16.gmra.mrb[104].mxu0 %vm1509_vm2, %v12210_v57 }
 0x2ac   :  { %10318 = vmatprep.mubr.msk.bf16.mxu0 %vm1509_vm2, %v12224_v18 }
 0x2b3   :  { %10319 = vmatmul.mubr.msk.bf16.gmra.mrb[108].mxu0 %vm1509_vm2, %v12222_v17 }
 0x2b4   :  { %10322 = vmatprep.mubr.msk.bf16.mxu0 %vm1509_vm2, %v12236_v41 }
 0x2bb   :  { %10323 = vmatmul.mubr.msk.bf16.gmra.mrb[112].mxu0 %vm1509_vm2, %v12234_v40 }
 0x2bc   :  { %10334 = vmatprep.mubr.msk.bf16.mxu0 %vm1509_vm2, %v12077_v13  ;;  %v10911_v13 = vld [vmem:[%s14148_s5 + $0xc0] ss:$16 sps:$4 sm:$0xff]  }
 0x2c3   :  { %10335 = vmatmul.mubr.msk.bf16.vlgmr.msra.gmra.mrb[60].mxu0 %vm1509_vm2, %v12075_v12  ;;  %v10913_v12 = vld [vmem:[%s14148_s5 + $0xc4] ss:$16 sps:$4 sm:$0xff]  }
 0x2c4   :  { %10338 = vmatprep.mubr.msk.bf16.mxu0 %vm1509_vm2, %v12095_v29  ;;  %2748 = vmatpush1.bf16.msra.mxu0 %v10905_v39  ;;  %v10916_v29 = vld [vmem:[%s14148_s5 + $0x100] ss:$16 sps:$4 sm:$0xff]   ;;  %v10949_v39 = vld [vmem:[%s14148_s5 + $0x4] ss:$16 sps:$4 sm:$0xff]  }
 0x2c5   :  { %2749 = vmatprep.subr.bf16.mxu0 %v10910_v6 }
 0x2c8   :  { %2750 = vmatpush1.bf16.msra.mxu0 %v10908_v7  ;;  %v10952_v7 = vld [vmem:[%s14148_s5 + $0x14c] ss:$16 sps:$4 sm:$0xff]  }
 0x2c9   :  { %2751 = vmatprep.subr.bf16.mxu0 %v10913_v12 }
 0x2cb   :  { %10339 = vmatmul.mubr.msk.bf16.gmra.mrb[64].mxu0 %vm1509_vm2, %v12093_v28  ;;  %v10914_v28 = vld [vmem:[%s14148_s5 + $0x104] ss:$16 sps:$4 sm:$0xff]  }
 0x2cc   :  { %10342 = vmatprep.mubr.msk.bf16.mxu0 %vm1509_vm2, %v12115_v45  ;;  %2752 = vmatpush1.bf16.msra.mxu0 %v10911_v13  ;;  %v10917_v45 = vld [vmem:[%s14148_s5 + $0xe0] ss:$16 sps:$4 sm:$0xff]  }
 0x2cd   :  { %3102 = vmatprep.subr.bf16.mxu1 %v10914_v28 }
 0x2ce   :  { %3103 = vmatpush1.bf16.msra.mxu1 %v10916_v29 }
 0x2d3   :  { %10343 = vmatmul.mubr.msk.bf16.gmra.mrb[68].mxu0 %vm1509_vm2, %v12113_v44  ;;  %v10919_v44 = vld [vmem:[%s14148_s5 + $0xe4] ss:$16 sps:$4 sm:$0xff]  }
 0x2d4   :  { %10346 = vmatprep.mubr.msk.bf16.mxu0 %vm1509_vm2, %v12128_v60  ;;  %2753 = vmatprep.subr.bf16.mxu0 %v10919_v44  ;;  %v10922_v60 = vld [vmem:[%s14148_s5 + $0x120] ss:$16 sps:$4 sm:$0xff]  }
 0x2d5   :  { %2754 = vmatpush1.bf16.msra.mxu0 %v10917_v45  ;;  %v10947_v44 = vld [vmem:[%s14148_s5] ss:$16 sps:$4 sm:$0xff]  }
 0x2db   :  { %10347 = vmatmul.mubr.msk.bf16.gmra.mrb[72].mxu0 %vm1509_vm2, %v12126_v59  ;;  %v10920_v59 = vld [vmem:[%s14148_s5 + $0x124] ss:$16 sps:$4 sm:$0xff]  }
 0x2dc   :  { %10350 = vmatprep.mubr.msk.bf16.mxu0 %vm1509_vm2, %v12140_v14  ;;  %3104 = vmatprep.subr.bf16.mxu1 %v10920_v59  ;;  %v10926_v14 = vld [vmem:[%s14148_s5 + $0x144] ss:$16 sps:$4 sm:$0xff]   ;;  %v10950_v59 = vld [vmem:[%s14148_s5 + $0x148] ss:$16 sps:$4 sm:$0xff]  }
 0x2dd   :  { %3105 = vmatpush1.bf16.msra.mxu1 %v10922_v60  ;;  %v10955_v60 = vld [vmem:[%s14148_s5 + $0x24] ss:$16 sps:$4 sm:$0xff]  }
 0x2de   :  { %3106 = vmatprep.subr.bf16.mxu1 %v10926_v14 }
 0x2e3   :  { %10351 = vmatmul.mubr.msk.bf16.gmra.mrb[76].mxu0 %vm1509_vm2, %v12138_v11  ;;  %v10925_v11 = vld [vmem:[%s14148_s5 + $0x8c] ss:$16 sps:$4 sm:$0xff]  }
 0x2e4   :  { %10354 = vmatprep.mubr.msk.bf16.mxu0 %vm1509_vm2, %v12152_v30  ;;  %2790 = vmatprep.subr.bf16.mxu0 %v10925_v11  ;;  %v10928_v30 = vld [vmem:[%s14148_s5 + $0x140] ss:$16 sps:$4 sm:$0xff]  }
 0x2e5   :  { %3107 = vmatpush1.bf16.msra.mxu1 %v10928_v30  ;;  %v10958_v30 = vld [vmem:[%s14148_s5 + $0x16c] ss:$16 sps:$4 sm:$0xff]  }
 0x2eb   :  { %10355 = vmatmul.mubr.msk.bf16.gmra.mrb[80].mxu0 %vm1509_vm2, %v12150_v27  ;;  %v11611_v27 = vmov 0  }
 0x2ec   :  { %10358 = vmatprep.mubr.msk.bf16.mxu0 %vm1509_vm2, %v12164_v47  ;;  %3134 = vmatprep.mubr.bf16.mxu1 %v11611_v27  ;;  %v10934_v47 = vld [vmem:[%s14148_s5 + $0x160] ss:$16 sps:$4 sm:$0xff]  }
 0x2f3   :  { %10359 = vmatmul.mubr.msk.bf16.gmra.mrb[84].mxu0 %vm1509_vm2, %v12162_v46  ;;  %v10932_v46 = vld [vmem:[%s14148_s5 + $0x164] ss:$16 sps:$4 sm:$0xff]  }
 0x2f4   :  { %10362 = vmatprep.mubr.msk.bf16.mxu0 %vm1509_vm2, %v12176_v2  ;;  %3108 = vmatprep.subr.bf16.mxu1 %v10932_v46  ;;  %v12433_v2 = vld [vmem:[%s14149_s4] ss:$0 sm:$0xff] }
 0x2f5   :  { %3109 = vmatpush1.bf16.msra.mxu1 %v10934_v47 }
 0x2fb   :  { %10363 = vmatmul.mubr.msk.bf16.gmra.mrb[88].mxu0 %vm1509_vm2, %v12174_v1  ;;  %v10940_v1 = vld [vmem:[%s14148_s5 + $0x10c] ss:$16 sps:$4 sm:$0xff]  }
 0x2fc   :  { %10366 = vmatprep.mubr.msk.bf16.mxu0 %vm1509_vm2, %v12188_v20  ;;  %3145 = vmatprep.subr.bf16.mxu1 %v10940_v1 }
 0x303   :  { %10367 = vmatmul.mubr.msk.bf16.gmra.mrb[92].mxu0 %vm1509_vm2, %v12186_v19 }
 0x304   :  { %10370 = vmatprep.mubr.msk.bf16.mxu0 %vm1509_vm2, %v12200_v38 }
 0x30b   :  { %10371 = vmatmul.mubr.msk.bf16.gmra.mrb[96].mxu0 %vm1509_vm2, %v12198_v37 }
 0x30c   :  { %10374 = vmatprep.mubr.msk.bf16.mxu0 %vm1509_vm2, %v12212_v58 }
 0x313   :  { %10375 = vmatmul.mubr.msk.bf16.gmra.mrb[100].mxu0 %vm1509_vm2, %v12210_v57 }
 0x314   :  { %10378 = vmatprep.mubr.msk.bf16.mxu0 %vm1509_vm2, %v12224_v18  ;;  %v10923_v18 = vld [vmem:[%s14148_s5 + $0x88] ss:$16 sps:$4 sm:$0xff]  }
 0x31b   :  { %10379 = vmatmul.mubr.msk.bf16.gmra.mrb[104].mxu0 %vm1509_vm2, %v12222_v17 }
 0x31c   :  { %10382 = vmatprep.mubr.msk.bf16.mxu0 %vm1509_vm2, %v12236_v41 }
 0x323   :  { %10383 = vmatmul.mubr.msk.bf16.gmra.mrb[108].mxu0 %vm1509_vm2, %v12234_v40 }
 0x324   :  { %10386 = vmatprep.mubr.msk.bf16.mxu0 %vm1509_vm2, %v12248_v4 }
 0x32b   :  { %10387 = vmatmul.mubr.msk.bf16.gmra.mrb[112].mxu0 %vm1509_vm2, %v12246_v3 }
 0x32c   :  { %2779 = vmatprep.mubr.bf16.mxu0 %v11611_v27 }
 0x396   :  { %v10336_v19 = vpop.f32.mrb[60].mxu0 }
 0x397   :  { %v2493_v20 = vadd.f32 %v10336_v19, %v12433_v2  ;;  %v2205_v37 = vpop.f32.mrb[61].mxu0 }
 0x398   :  { %v2491_v38 = vadd.f32 %v12433_v2, %v2205_v37  ;;  %v10337_v57 = vpop.f32.mrb[62].mxu0 }
 0x399   :  { %v2494_v58 = vadd.f32 %v10337_v57, %v12433_v2  ;;  %v2208_v8 = vpop.f32.mrb[63].mxu0  ;;  %v2549_v10 = vmax.f32 %v2493_v20, 0.0  ;;  %v10953_v20 = vld [vmem:[%s14148_s5 + $0x20] ss:$16 sps:$4 sm:$0xff]   ;;  %v10956_v57 = vld [vmem:[%s14148_s5 + $0x168] ss:$16 sps:$4 sm:$0xff]  }
 0x39a   :  { %v2492_v9 = vadd.f32 %v12433_v2, %v2208_v8  ;;  %v2547_v16 = vmax.f32 %v2491_v38, 0.0 }
 0x39b   :  { %v2550_v15 = vmax.f32 %v2494_v58, 0.0  ;;  %v10961_v58 = vld [vmem:[%s14148_s5 + $0x44] ss:$16 sps:$4 sm:$0xff]  }
 0x39c   :  { %v2548_v17 = vmax.f32 %v2492_v9, 0.0  ;;  %v10964_v9 = vld [vmem:[%s14148_s5 + $0x184] ss:$16 sps:$4 sm:$0xff]  }
 0x39d   :  { %v12442_v21 = vpack.c.bf16 %v2550_v15, %v2549_v10 }
 0x39e   :  { %v12447_v23 = vpack.c.bf16 %v2548_v17, %v2547_v16  ;;  %v10340_v24 = vpop.f32.mrb[64].mxu0 }
 0x39f   :  { %v2497_v25 = vadd.f32 %v10340_v24, %v12433_v2  ;;  %v2221_v26 = vpop.f32.mrb[65].mxu0  ;;  %8817 = vmatmul.mubr.msk.bf16.vlgmr.msra.gmra.mrb[116].mxu0 %vm1509_vm2, %v12442_v21  ;;  %v10967_v24 = vld [vmem:[%s14148_s5 + $0x64] ss:$16 sps:$4 sm:$0xff]  }
 0x3a0   :  { %v2495_v31 = vadd.f32 %v12433_v2, %v2221_v26  ;;  %2791 = vmatpush1.bf16.msra.mxu0 %v10923_v18  ;;  %v10341_v32 = vpop.f32.mrb[66].mxu0  ;;  %2822 = vmatprep.mubr.bf16.mxu0 %v11611_v27  ;;  %v10959_v18 = vld [vmem:[%s14148_s5 + $0x40] ss:$16 sps:$4 sm:$0xff]  }
 0x3a1   :  { %v2498_v34 = vadd.f32 %v10341_v32, %v12433_v2  ;;  %v2224_v35 = vpop.f32.mrb[67].mxu0  ;;  %2792 = vmatprep.subr.bf16.mxu0 %v10931_v22  ;;  %v2553_v41 = vmax.f32 %v2497_v25, 0.0  ;;  %v10962_v22 = vld [vmem:[%s14148_s5 + $0x180] ss:$16 sps:$4 sm:$0xff]  }
 0x3a2   :  { %v2496_v40 = vadd.f32 %v12433_v2, %v2224_v35  ;;  %v2551_v43 = vmax.f32 %v2495_v31, 0.0  ;;  %v10970_v31 = vld [vmem:[%s14148_s5 + $0x1a4] ss:$16 sps:$4 sm:$0xff]  }
 0x3a3   :  { %v2554_v42 = vmax.f32 %v2498_v34, 0.0 }
 0x3a4   :  { %v2552_v48 = vmax.f32 %v2496_v40, 0.0  ;;  %2793 = vmatpush1.bf16.msra.mxu0 %v10929_v33 }
 0x3a5   :  { %v12465_v51 = vpack.c.bf16 %v2554_v42, %v2553_v41  ;;  %2794 = vmatprep.subr.bf16.mxu0 %v10937_v36  ;;  %v10965_v36 = vld [vmem:[%s14148_s5 + $0x60] ss:$16 sps:$4 sm:$0xff]  }
 0x3a6   :  { %v12473_v54 = vpack.c.bf16 %v2552_v48, %v2551_v43  ;;  %v10344_v55 = vpop.f32.mrb[68].mxu0  ;;  %v10968_v42 = vld [vmem:[%s14148_s5 + $0x1a0] ss:$16 sps:$4 sm:$0xff]   ;;  %v10973_v43 = vld [vmem:[%s14148_s5 + $0xc] ss:$16 sps:$4 sm:$0xff]  }
 0x3a7   :  { %v2501_v61 = vadd.f32 %v10344_v55, %v12433_v2  ;;  %v2237_v0 = vpop.f32.mrb[69].mxu0 }
 0x3a8   :  { %v2499_v3 = vadd.f32 %v12433_v2, %v2237_v0  ;;  %2795 = vmatpush1.bf16.msra.mxu0 %v10935_v50  ;;  %v10345_v4 = vpop.f32.mrb[70].mxu0  ;;  %8869 = vmatmul.mubr.msk.bf16.vlgmr.msra.gmra.mrb[0].mxu1 %vm1509_vm2, %v12473_v54  ;;  %v10976_v50 = vld [vmem:[%s14148_s5 + $0x1c4] ss:$16 sps:$4 sm:$0xff]   ;;  %v10974_v0 = vld [vmem:[%s14148_s5 + $0x1c0] ss:$16 sps:$4 sm:$0xff]  }
 0x3a9   :  { %v2502_v49 = vadd.f32 %v10345_v4, %v12433_v2  ;;  %3146 = vmatpush1.bf16.msra.mxu1 %v10938_v52  ;;  %v2240_v63 = vpop.f32.mrb[71].mxu0  ;;  %2796 = vmatprep.subr.bf16.mxu0 %v10943_v53  ;;  %v2557_v12 = vmax.f32 %v2501_v61, 0.0 }
 0x3aa   :  { %v2500_v6 = vadd.f32 %v12433_v2, %v2240_v63  ;;  %3147 = vmatprep.subr.bf16.mxu1 %v10946_v56  ;;  %3177 = vmatprep.mubr.bf16.mxu1 %v11611_v27  ;;  %v2555_v28 = vmax.f32 %v2499_v3, 0.0  ;;  %v10971_v56 = vld [vmem:[%s14148_s5 + $0x8] ss:$16 sps:$4 sm:$0xff]   ;;  %v10979_v3 = vld [vmem:[%s14148_s5 + $0x2c] ss:$16 sps:$4 sm:$0xff]  }
 0x3ab   :  { %v2558_v13 = vmax.f32 %v2502_v49, 0.0  ;;  %v10982_v49 = vld [vmem:[%s14148_s5 + $0x1e4] ss:$16 sps:$4 sm:$0xff]  }
 0x3ac   :  { %v2556_v29 = vmax.f32 %v2500_v6, 0.0  ;;  %2797 = vmatpush1.bf16.msra.mxu0 %v10941_v5 }
 0x3ad   :  { %v12500_v45 = vpack.c.bf16 %v2558_v13, %v2557_v12  ;;  %3148 = vmatpush1.bf16.msra.mxu1 %v10944_v62  ;;  %2916 = vmatprep.subr.bf16.mxu0 %v10949_v39 }
 0x3ae   :  { %v12508_v11 = vpack.c.bf16 %v2556_v29, %v2555_v28  ;;  %v10348_v14 = vpop.f32.mrb[72].mxu0  ;;  %3149 = vmatprep.subr.bf16.mxu1 %v10952_v7  ;;  %v10977_v7 = vld [vmem:[%s14148_s5 + $0x28] ss:$16 sps:$4 sm:$0xff]   ;;  %v10980_v28 = vld [vmem:[%s14148_s5 + $0x1e0] ss:$16 sps:$4 sm:$0xff]  }
 0x3af   :  { %v2505_v46 = vadd.f32 %v10348_v14, %v12433_v2  ;;  %8818 = vmatmul.mubr.msk.bf16.vlgmr.msra.gmra.mrb[120].mxu0 %vm1509_vm2, %v12442_v21  ;;  %v2253_v47 = vpop.f32.mrb[73].mxu0  ;;  %v10985_v29 = vld [vmem:[%s14148_s5 + $0x4c] ss:$16 sps:$4 sm:$0xff]  }
 0x3b0   :  { %v2503_v1 = vadd.f32 %v12433_v2, %v2253_v47  ;;  %2917 = vmatpush1.bf16.msra.mxu0 %v10947_v44  ;;  %v10349_v19 = vpop.f32.mrb[74].mxu0  ;;  %2948 = vmatprep.mubr.bf16.mxu0 %v11611_v27  ;;  %v10983_v47 = vld [vmem:[%s14148_s5 + $0x48] ss:$16 sps:$4 sm:$0xff]  }
 0x3b1   :  { %v2506_v37 = vadd.f32 %v10349_v19, %v12433_v2  ;;  %3150 = vmatpush1.bf16.msra.mxu1 %v10950_v59  ;;  %v2256_v38 = vpop.f32.mrb[75].mxu0  ;;  %2918 = vmatprep.subr.bf16.mxu0 %v10955_v60  ;;  %v2561_v10 = vmax.f32 %v2505_v46, 0.0  ;;  %v10988_v59 = vld [vmem:[%s14148_s5 + $0x18c] ss:$16 sps:$4 sm:$0xff]   ;;  %v10986_v19 = vld [vmem:[%s14148_s5 + $0x188] ss:$16 sps:$4 sm:$0xff]  }
 0x3b2   :  { %v2504_v8 = vadd.f32 %v12433_v2, %v2256_v38  ;;  %3151 = vmatprep.subr.bf16.mxu1 %v10958_v30  ;;  %v2559_v16 = vmax.f32 %v2503_v1, 0.0 }
 0x3b3   :  { %v2562_v15 = vmax.f32 %v2506_v37, 0.0 }
 0x3b4   :  { %v2560_v17 = vmax.f32 %v2504_v8, 0.0  ;;  %2919 = vmatpush1.bf16.msra.mxu0 %v10953_v20  ;;  %v10991_v20 = vld [vmem:[%s14148_s5 + $0x6c] ss:$16 sps:$4 sm:$0xff]  }
 0x3b5   :  { %v12535_v21 = vpack.c.bf16 %v2562_v15, %v2561_v10  ;;  %3152 = vmatpush1.bf16.msra.mxu1 %v10956_v57  ;;  %2920 = vmatprep.subr.bf16.mxu0 %v10961_v58  ;;  %v10994_v57 = vld [vmem:[%s14148_s5 + $0x1ac] ss:$16 sps:$4 sm:$0xff]   ;;  %v10989_v15 = vld [vmem:[%s14148_s5 + $0x68] ss:$16 sps:$4 sm:$0xff]  }
 0x3b6   :  { %v12543_v25 = vpack.c.bf16 %v2560_v17, %v2559_v16  ;;  %v10352_v26 = vpop.f32.mrb[76].mxu0  ;;  %3296 = vmatprep.subr.bf16.mxu1 %v10964_v9 }
 0x3b7   :  { %v2509_v32 = vadd.f32 %v10352_v26, %v12433_v2  ;;  %v2269_v33 = vpop.f32.mrb[77].mxu0 }
 0x3b8   :  { %v2507_v34 = vadd.f32 %v12433_v2, %v2269_v33  ;;  %2921 = vmatpush1.bf16.msra.mxu0 %v10959_v18  ;;  %8870 = vmatmul.mubr.msk.bf16.vlgmr.msra.gmra.mrb[4].mxu1 %vm1509_vm2, %v12473_v54  ;;  %v10353_v35 = vpop.f32.mrb[78].mxu0  ;;  %v10992_v18 = vld [vmem:[%s14148_s5 + $0x1a8] ss:$16 sps:$4 sm:$0xff]  }
 0x3b9   :  { %v2510_v40 = vadd.f32 %v10353_v35, %v12433_v2  ;;  %3297 = vmatpush1.bf16.msra.mxu1 %v10962_v22  ;;  %v2272_v41 = vpop.f32.mrb[79].mxu0  ;;  %2922 = vmatprep.subr.bf16.mxu0 %v10967_v24  ;;  %v2565_v52 = vmax.f32 %v2509_v32, 0.0  ;;  %v10997_v24 = vld [vmem:[%s14148_s5 + $0x1cc] ss:$16 sps:$4 sm:$0xff]   ;;  %v10995_v35 = vld [vmem:[%s14148_s5 + $0x1c8] ss:$16 sps:$4 sm:$0xff]  }
 0x3ba   :  { %v2508_v48 = vadd.f32 %v12433_v2, %v2272_v41  ;;  %3298 = vmatprep.subr.bf16.mxu1 %v10970_v31  ;;  %3328 = vmatprep.mubr.bf16.mxu1 %v11611_v27  ;;  %v2563_v54 = vmax.f32 %v2507_v34, 0.0  ;;  %v11000_v41 = vld [vmem:[%s14148_s5 + $0x1ec] ss:$16 sps:$4 sm:$0xff]  }
 0x3bb   :  { %v2566_v53 = vmax.f32 %v2510_v40, 0.0 }
 0x3bc   :  { %v2564_v55 = vmax.f32 %v2508_v48, 0.0  ;;  %2923 = vmatpush1.bf16.msra.mxu0 %v10965_v36 }
 0x3bd   :  { %v12570_v61 = vpack.c.bf16 %v2566_v53, %v2565_v52  ;;  %3299 = vmatpush1.bf16.msra.mxu1 %v10968_v42  ;;  %2959 = vmatprep.subr.bf16.mxu0 %v10973_v43 }
 0x3be   :  { %v12578_v4 = vpack.c.bf16 %v2564_v55, %v2563_v54  ;;  %v10356_v5 = vpop.f32.mrb[80].mxu0  ;;  %3300 = vmatprep.subr.bf16.mxu1 %v10976_v50  ;;  %v10998_v54 = vld [vmem:[%s14148_s5 + $0x1e8] ss:$16 sps:$4 sm:$0xff]  }
 0x3bf   :  { %v2513_v63 = vadd.f32 %v10356_v5, %v12433_v2  ;;  %8835 = vmatmul.mubr.msk.bf16.vlgmr.msra.gmra.mrb[116].mxu0 %vm1509_vm2, %v12447_v23  ;;  %v2285_v62 = vpop.f32.mrb[81].mxu0 }
 0x3c0   :  { %v2511_v39 = vadd.f32 %v12433_v2, %v2285_v62  ;;  %2960 = vmatpush1.bf16.msra.mxu0 %v10971_v56  ;;  %v10357_v6 = vpop.f32.mrb[82].mxu0  ;;  %2991 = vmatprep.mubr.bf16.mxu0 %v11611_v27  ;;  %v11003_v56 = vld [vmem:[%s14148_s5 + $0x204] ss:$16 sps:$4 sm:$0xff]  }
 0x3c1   :  { %v2514_v12 = vadd.f32 %v10357_v6, %v12433_v2  ;;  %3301 = vmatpush1.bf16.msra.mxu1 %v10974_v0  ;;  %v2288_v13 = vpop.f32.mrb[83].mxu0  ;;  %2961 = vmatprep.subr.bf16.mxu0 %v10979_v3  ;;  %v2569_v60 = vmax.f32 %v2513_v63, 0.0  ;;  %v11001_v63 = vld [vmem:[%s14148_s5 + $0x200] ss:$16 sps:$4 sm:$0xff]   ;;  %v11006_v6 = vld [vmem:[%s14148_s5 + $0x224] ss:$16 sps:$4 sm:$0xff]  }
 0x3c2   :  { %v2512_v44 = vadd.f32 %v12433_v2, %v2288_v13  ;;  %3302 = vmatprep.subr.bf16.mxu1 %v10982_v49  ;;  %v2567_v30 = vmax.f32 %v2511_v39, 0.0 }
 0x3c3   :  { %v2570_v14 = vmax.f32 %v2514_v12, 0.0 }
 0x3c4   :  { %v2568_v46 = vmax.f32 %v2512_v44, 0.0  ;;  %2962 = vmatpush1.bf16.msra.mxu0 %v10977_v7 }
 0x3c5   :  { %v12605_v1 = vpack.c.bf16 %v2570_v14, %v2569_v60  ;;  %3303 = vmatpush1.bf16.msra.mxu1 %v10980_v28  ;;  %2963 = vmatprep.subr.bf16.mxu0 %v10985_v29  ;;  %v11009_v14 = vld [vmem:[%s14148_s5 + $0x244] ss:$16 sps:$4 sm:$0xff]  }
 0x3c6   :  { %v12613_v37 = vpack.c.bf16 %v2568_v46, %v2567_v30  ;;  %v10360_v38 = vpop.f32.mrb[84].mxu0  ;;  %3339 = vmatprep.subr.bf16.mxu1 %v10988_v59  ;;  %v11004_v59 = vld [vmem:[%s14148_s5 + $0x220] ss:$16 sps:$4 sm:$0xff]  }
 0x3c7   :  { %v2517_v58 = vadd.f32 %v10360_v38, %v12433_v2  ;;  %v2301_v8 = vpop.f32.mrb[85].mxu0 }
 0x3c8   :  { %v2515_v9 = vadd.f32 %v12433_v2, %v2301_v8  ;;  %2964 = vmatpush1.bf16.msra.mxu0 %v10983_v47  ;;  %8903 = vmatmul.mubr.msk.bf16.vlgmr.msra.gmra.mrb[0].mxu1 %vm1509_vm2, %v12465_v51  ;;  %v10361_v10 = vpop.f32.mrb[86].mxu0 }
 0x3c9   :  { %v2518_v16 = vadd.f32 %v10361_v10, %v12433_v2  ;;  %3340 = vmatpush1.bf16.msra.mxu1 %v10986_v19  ;;  %v2304_v17 = vpop.f32.mrb[87].mxu0  ;;  %2965 = vmatprep.subr.bf16.mxu0 %v10991_v20  ;;  %v2573_v26 = vmax.f32 %v2517_v58, 0.0  ;;  %v11007_v20 = vld [vmem:[%s14148_s5 + $0x240] ss:$16 sps:$4 sm:$0xff]   ;;  %v11012_v58 = vld [vmem:[%s14148_s5 + $0x264] ss:$16 sps:$4 sm:$0xff]  }
 0x3ca   :  { %v2516_v22 = vadd.f32 %v12433_v2, %v2304_v17  ;;  %3341 = vmatprep.subr.bf16.mxu1 %v10994_v57  ;;  %3371 = vmatprep.mubr.bf16.mxu1 %v11611_v27  ;;  %v2571_v32 = vmax.f32 %v2515_v9, 0.0 }
 0x3cb   :  { %v2574_v31 = vmax.f32 %v2518_v16, 0.0 }
 0x3cc   :  { %v2572_v33 = vmax.f32 %v2516_v22, 0.0  ;;  %2966 = vmatpush1.bf16.msra.mxu0 %v10989_v15 }
 0x3cd   :  { %v12634_v34 = vpack.c.bf16 %v2574_v31, %v2573_v26  ;;  %3342 = vmatpush1.bf16.msra.mxu1 %v10992_v18  ;;  %v11010_v18 = vld [vmem:[%s14148_s5 + $0x260] ss:$16 sps:$4 sm:$0xff]  }
 0x3ce   :  { %v12639_v36 = vpack.c.bf16 %v2572_v33, %v2571_v32  ;;  %v10364_v40 = vpop.f32.mrb[88].mxu0  ;;  %3343 = vmatprep.subr.bf16.mxu1 %v10997_v24  ;;  %v11015_v24 = vld [vmem:[%s14148_s5 + $0x20c] ss:$16 sps:$4 sm:$0xff]  }
 0x3cf   :  { %v2521_v42 = vadd.f32 %v10364_v40, %v12433_v2  ;;  %8836 = vmatmul.mubr.msk.bf16.vlgmr.msra.gmra.mrb[120].mxu0 %vm1509_vm2, %v12447_v23  ;;  %v2317_v43 = vpop.f32.mrb[89].mxu0  ;;  %v11013_v40 = vld [vmem:[%s14148_s5 + $0x208] ss:$16 sps:$4 sm:$0xff]  }
 0x3d0   :  { %v2519_v48 = vadd.f32 %v12433_v2, %v2317_v43  ;;  %v10365_v50 = vpop.f32.mrb[90].mxu0  ;;  %v11018_v43 = vld [vmem:[%s14148_s5 + $0x22c] ss:$16 sps:$4 sm:$0xff]  }
 0x3d1   :  { %v2522_v52 = vadd.f32 %v10365_v50, %v12433_v2  ;;  %3344 = vmatpush1.bf16.msra.mxu1 %v10995_v35  ;;  %v2320_v53 = vpop.f32.mrb[91].mxu0  ;;  %v2577_v23 = vmax.f32 %v2521_v42, 0.0 }
 0x3d2   :  { %v2520_v55 = vadd.f32 %v12433_v2, %v2320_v53  ;;  %3345 = vmatprep.subr.bf16.mxu1 %v11000_v41  ;;  %v2575_v3 = vmax.f32 %v2519_v48, 0.0 }
 0x3d3   :  { %v2578_v0 = vmax.f32 %v2522_v52, 0.0 }
 0x3d4   :  { %v2576_v5 = vmax.f32 %v2520_v55, 0.0 }
 0x3d5   :  { %v12656_v49 = vpack.c.bf16 %v2578_v0, %v2577_v23  ;;  %3346 = vmatpush1.bf16.msra.mxu1 %v10998_v54  ;;  %v11021_v0 = vld [vmem:[%s14148_s5 + $0x24c] ss:$16 sps:$4 sm:$0xff]  }
 0x3d6   :  { %v12661_v62 = vpack.c.bf16 %v2576_v5, %v2575_v3  ;;  %v10368_v39 = vpop.f32.mrb[92].mxu0  ;;  %3490 = vmatprep.subr.bf16.mxu1 %v11003_v56  ;;  %v11016_v56 = vld [vmem:[%s14148_s5 + $0x228] ss:$16 sps:$4 sm:$0xff]  }
 0x3d7   :  { %v2525_v7 = vadd.f32 %v10368_v39, %v12433_v2  ;;  %v2333_v12 = vpop.f32.mrb[93].mxu0 }
 0x3d8   :  { %v2523_v13 = vadd.f32 %v12433_v2, %v2333_v12  ;;  %8904 = vmatmul.mubr.msk.bf16.vlgmr.msra.gmra.mrb[4].mxu1 %vm1509_vm2, %v12465_v51  ;;  %v10369_v28 = vpop.f32.mrb[94].mxu0 }
 0x3d9   :  { %v2526_v29 = vadd.f32 %v10369_v28, %v12433_v2  ;;  %3491 = vmatpush1.bf16.msra.mxu1 %v11001_v63  ;;  %v2336_v44 = vpop.f32.mrb[95].mxu0  ;;  %3522 = vmatprep.mubr.bf16.mxu1 %v11611_v27  ;;  %v2581_v30 = vmax.f32 %v2525_v7, 0.0  ;;  %v11019_v7 = vld [vmem:[%s14148_s5 + $0x248] ss:$16 sps:$4 sm:$0xff]   ;;  %v11024_v28 = vld [vmem:[%s14148_s5 + $0x26c] ss:$16 sps:$4 sm:$0xff]  }
 0x3da   :  { %v2524_v60 = vadd.f32 %v12433_v2, %v2336_v44  ;;  %3492 = vmatprep.subr.bf16.mxu1 %v11006_v6  ;;  %v2579_v46 = vmax.f32 %v2523_v13, 0.0 }
 0x3db   :  { %v2582_v51 = vmax.f32 %v2526_v29, 0.0 }
 0x3dc   :  { %v2580_v47 = vmax.f32 %v2524_v60, 0.0 }
 0x3dd   :  { %v12679_v19 = vpack.c.bf16 %v2582_v51, %v2581_v30  ;;  %3493 = vmatpush1.bf16.msra.mxu1 %v11004_v59  ;;  %v11022_v51 = vld [vmem:[%s14148_s5 + $0x268] ss:$16 sps:$4 sm:$0xff]  }
 0x3de   :  { %v12684_v38 = vpack.c.bf16 %v2580_v47, %v2579_v46  ;;  %v10372_v57 = vpop.f32.mrb[96].mxu0  ;;  %3494 = vmatprep.subr.bf16.mxu1 %v11009_v14  ;;  %v11027_v47 = vld [vmem:[%s14148_s5 + $0x284] ss:$16 sps:$4 sm:$0xff]  }
 0x3df   :  { %v2529_v8 = vadd.f32 %v10372_v57, %v12433_v2  ;;  %v2349_v9 = vpop.f32.mrb[97].mxu0 }
 0x3e0   :  { %v2527_v10 = vadd.f32 %v12433_v2, %v2349_v9  ;;  %v10373_v15 = vpop.f32.mrb[98].mxu0 }
 0x3e1   :  { %v2530_v16 = vadd.f32 %v10373_v15, %v12433_v2  ;;  %3495 = vmatpush1.bf16.msra.mxu1 %v11007_v20  ;;  %v2352_v17 = vpop.f32.mrb[99].mxu0  ;;  %v2585_v26 = vmax.f32 %v2529_v8, 0.0 }
 0x3e2   :  { %v2528_v22 = vadd.f32 %v12433_v2, %v2352_v17  ;;  %3496 = vmatprep.subr.bf16.mxu1 %v11012_v58  ;;  %v2583_v32 = vmax.f32 %v2527_v10, 0.0  ;;  %v11025_v10 = vld [vmem:[%s14148_s5 + $0x280] ss:$16 sps:$4 sm:$0xff]   ;;  %v11030_v17 = vld [vmem:[%s14148_s5 + $0x2a4] ss:$16 sps:$4 sm:$0xff]  }
 0x3e3   :  { %v2586_v31 = vmax.f32 %v2530_v16, 0.0 }
 0x3e4   :  { %v2584_v33 = vmax.f32 %v2528_v22, 0.0 }
 0x3e5   :  { %v12699_v35 = vpack.c.bf16 %v2586_v31, %v2585_v26  ;;  %3497 = vmatpush1.bf16.msra.mxu1 %v11010_v18 }
 0x3e6   :  { %v12704_v41 = vpack.c.bf16 %v2584_v33, %v2583_v32  ;;  %v10376_v42 = vpop.f32.mrb[100].mxu0  ;;  %3533 = vmatprep.subr.bf16.mxu1 %v11015_v24  ;;  %v11028_v33 = vld [vmem:[%s14148_s5 + $0x2a0] ss:$16 sps:$4 sm:$0xff]  }
 0x3e7   :  { %v2533_v48 = vadd.f32 %v10376_v42, %v12433_v2  ;;  %v2365_v50 = vpop.f32.mrb[101].mxu0  ;;  %v11033_v42 = vld [vmem:[%s14148_s5 + $0x2c4] ss:$16 sps:$4 sm:$0xff]  }
 0x3e8   :  { %v2531_v52 = vadd.f32 %v12433_v2, %v2365_v50  ;;  %8937 = vmatmul.mubr.msk.bf16.vlgmr.msra.gmra.mrb[0].mxu1 %vm1509_vm2, %v12508_v11  ;;  %v10377_v53 = vpop.f32.mrb[102].mxu0 }
 0x3e9   :  { %v2534_v54 = vadd.f32 %v10377_v53, %v12433_v2  ;;  %3534 = vmatpush1.bf16.msra.mxu1 %v11013_v40  ;;  %v2368_v55 = vpop.f32.mrb[103].mxu0  ;;  %3565 = vmatprep.mubr.bf16.mxu1 %v11611_v27  ;;  %v2589_v3 = vmax.f32 %v2533_v48, 0.0  ;;  %v11031_v53 = vld [vmem:[%s14148_s5 + $0x2c0] ss:$16 sps:$4 sm:$0xff]  }
 0x3ea   :  { %v2532_v23 = vadd.f32 %v12433_v2, %v2368_v55  ;;  %3535 = vmatprep.subr.bf16.mxu1 %v11018_v43  ;;  %v2587_v63 = vmax.f32 %v2531_v52, 0.0 }
 0x3eb   :  { %v2590_v5 = vmax.f32 %v2534_v54, 0.0 }
 0x3ec   :  { %v2588_v39 = vmax.f32 %v2532_v23, 0.0 }
 0x3ed   :  { %v12722_v6 = vpack.c.bf16 %v2590_v5, %v2589_v3  ;;  %3536 = vmatpush1.bf16.msra.mxu1 %v11016_v56  ;;  %v11036_v56 = vld [vmem:[%s14148_s5 + $0x2e4] ss:$16 sps:$4 sm:$0xff]  }
 0x3ee   :  { %v12727_v12 = vpack.c.bf16 %v2588_v39, %v2587_v63  ;;  %v10380_v13 = vpop.f32.mrb[104].mxu0  ;;  %3537 = vmatprep.subr.bf16.mxu1 %v11021_v0 }
 0x3ef   :  { %v2537_v29 = vadd.f32 %v10380_v13, %v12433_v2  ;;  %v2381_v44 = vpop.f32.mrb[105].mxu0 }
 0x3f0   :  { %v2535_v59 = vadd.f32 %v12433_v2, %v2381_v44  ;;  %v10381_v60 = vpop.f32.mrb[106].mxu0 }
 0x3f1   :  { %v2538_v14 = vadd.f32 %v10381_v60, %v12433_v2  ;;  %3538 = vmatpush1.bf16.msra.mxu1 %v11019_v7  ;;  %v2384_v30 = vpop.f32.mrb[107].mxu0  ;;  %v2593_v20 = vmax.f32 %v2537_v29, 0.0  ;;  %v11034_v7 = vld [vmem:[%s14148_s5 + $0x2e0] ss:$16 sps:$4 sm:$0xff]  }
 0x3f2   :  { %v2536_v46 = vadd.f32 %v12433_v2, %v2384_v30  ;;  %3539 = vmatprep.subr.bf16.mxu1 %v11024_v28  ;;  %v2591_v58 = vmax.f32 %v2535_v59, 0.0  ;;  %v11039_v28 = vld [vmem:[%s14148_s5 + $0x28c] ss:$16 sps:$4 sm:$0xff]   ;;  %v11037_v30 = vld [vmem:[%s14148_s5 + $0x288] ss:$16 sps:$4 sm:$0xff]  }
 0x3f3   :  { %v2594_v57 = vmax.f32 %v2538_v14, 0.0 }
 0x3f4   :  { %v2592_v8 = vmax.f32 %v2536_v46, 0.0  ;;  %v11040_v46 = vld [vmem:[%s14148_s5 + $0x2a8] ss:$16 sps:$4 sm:$0xff]  }
 0x3f5   :  { %v12742_v9 = vpack.c.bf16 %v2594_v57, %v2593_v20  ;;  %3540 = vmatpush1.bf16.msra.mxu1 %v11022_v51  ;;  %v11043_v20 = vld [vmem:[%s14148_s5 + $0x2c8] ss:$16 sps:$4 sm:$0xff]   ;;  %v11048_v57 = vld [vmem:[%s14148_s5 + $0x2ec] ss:$16 sps:$4 sm:$0xff]  }
 0x3f6   :  { %v12747_v15 = vpack.c.bf16 %v2592_v8, %v2591_v58  ;;  %v10384_v16 = vpop.f32.mrb[108].mxu0  ;;  %3684 = vmatprep.subr.bf16.mxu1 %v11027_v47  ;;  %v11045_v47 = vld [vmem:[%s14148_s5 + $0x2cc] ss:$16 sps:$4 sm:$0xff]   ;;  %v11046_v58 = vld [vmem:[%s14148_s5 + $0x2e8] ss:$16 sps:$4 sm:$0xff]  }
 0x3f7   :  { %v2541_v18 = vadd.f32 %v10384_v16, %v12433_v2  ;;  %v2397_v22 = vpop.f32.mrb[109].mxu0  ;;  %v11051_v8 = vld [vmem:[%s14148_s5 + $0x304] ss:$16 sps:$4 sm:$0xff]  }
 0x3f8   :  { %v2539_v24 = vadd.f32 %v12433_v2, %v2397_v22  ;;  %8938 = vmatmul.mubr.msk.bf16.vlgmr.msra.gmra.mrb[4].mxu1 %vm1509_vm2, %v12508_v11  ;;  %v10385_v26 = vpop.f32.mrb[110].mxu0  ;;  %v11054_v16 = vld [vmem:[%s14148_s5 + $0x324] ss:$16 sps:$4 sm:$0xff]   ;;  %v11055_v22 = vld [vmem:[%s14148_s5 + $0x340] ss:$16 sps:$4 sm:$0xff]  }
 0x3f9   :  { %v2542_v31 = vadd.f32 %v10385_v26, %v12433_v2  ;;  %3685 = vmatpush1.bf16.msra.mxu1 %v11025_v10  ;;  %v2400_v32 = vpop.f32.mrb[111].mxu0  ;;  %3716 = vmatprep.mubr.bf16.mxu1 %v11611_v27  ;;  %v2597_v43 = vmax.f32 %v2541_v18, 0.0  ;;  %v11049_v10 = vld [vmem:[%s14148_s5 + $0x300] ss:$16 sps:$4 sm:$0xff]   ;;  %v11057_v18 = vld [vmem:[%s14148_s5 + $0x344] ss:$16 sps:$4 sm:$0xff]  }
 0x3fa   :  { %v2540_v40 = vadd.f32 %v12433_v2, %v2400_v32  ;;  %3686 = vmatprep.subr.bf16.mxu1 %v11030_v17  ;;  %v2595_v48 = vmax.f32 %v2539_v24, 0.0  ;;  %v11052_v17 = vld [vmem:[%s14148_s5 + $0x320] ss:$16 sps:$4 sm:$0xff]   ;;  %v11063_v26 = vld [vmem:[%s14148_s5 + $0x30c] ss:$16 sps:$4 sm:$0xff]  }
 0x3fb   :  { %v2598_v11 = vmax.f32 %v2542_v31, 0.0  ;;  %v11058_v24 = vld [vmem:[%s14148_s5 + $0x360] ss:$16 sps:$4 sm:$0xff]   ;;  %v11061_v31 = vld [vmem:[%s14148_s5 + $0x308] ss:$16 sps:$4 sm:$0xff]  }
 0x3fc   :  { %v2596_v50 = vmax.f32 %v2540_v40, 0.0  ;;  %v11066_v32 = vld [vmem:[%s14148_s5 + $0x32c] ss:$16 sps:$4 sm:$0xff]  }
 0x3fd   :  { %v12765_v52 = vpack.c.bf16 %v2598_v11, %v2597_v43  ;;  %3687 = vmatpush1.bf16.msra.mxu1 %v11028_v33  ;;  %v11064_v33 = vld [vmem:[%s14148_s5 + $0x328] ss:$16 sps:$4 sm:$0xff]   ;;  %v11069_v40 = vld [vmem:[%s14148_s5 + $0x34c] ss:$16 sps:$4 sm:$0xff]  }
 0x3fe   :  { %v12770_v54 = vpack.c.bf16 %v2596_v50, %v2595_v48  ;;  %v10388_v55 = vpop.f32.mrb[112].mxu0  ;;  %3688 = vmatprep.subr.bf16.mxu1 %v11033_v42  ;;  %v11067_v42 = vld [vmem:[%s14148_s5 + $0x348] ss:$16 sps:$4 sm:$0xff]   ;;  %v11072_v43 = vld [vmem:[%s14148_s5 + $0x36c] ss:$16 sps:$4 sm:$0xff]  }
 0x3ff   :  { %v2545_v23 = vadd.f32 %v10388_v55, %v12433_v2  ;;  %v2413_v0 = vpop.f32.mrb[113].mxu0  ;;  %v11070_v11 = vld [vmem:[%s14148_s5 + $0x368] ss:$16 sps:$4 sm:$0xff]   ;;  %v11075_v48 = vld [vmem:[%s14148_s5 + $0x384] ss:$16 sps:$4 sm:$0xff]  }
 0x400   :  { %v2543_v3 = vadd.f32 %v12433_v2, %v2413_v0  ;;  %v10389_v5 = vpop.f32.mrb[114].mxu0  ;;  %v11073_v50 = vld [vmem:[%s14148_s5 + $0x380] ss:$16 sps:$4 sm:$0xff]  }
 0x401   :  { %v2546_v63 = vadd.f32 %v10389_v5, %v12433_v2  ;;  %3689 = vmatpush1.bf16.msra.mxu1 %v11031_v53  ;;  %v2416_v39 = vpop.f32.mrb[115].mxu0  ;;  %v2601_v29 = vmax.f32 %v2545_v23, 0.0  ;;  %v11078_v53 = vld [vmem:[%s14148_s5 + $0x3a4] ss:$16 sps:$4 sm:$0xff]   ;;  %v11076_v55 = vld [vmem:[%s14148_s5 + $0x3a0] ss:$16 sps:$4 sm:$0xff]  }
 0x402   :  { %v2544_v13 = vadd.f32 %v12433_v2, %v2416_v39  ;;  %3690 = vmatprep.subr.bf16.mxu1 %v11036_v56  ;;  %v2599_v59 = vmax.f32 %v2543_v3, 0.0  ;;  %v11042_v2 = vld [vmem:[%s14148_s5 + $0x2ac] ss:$16 sps:$4 sm:$0xff]   ;;  %v11081_v56 = vld [vmem:[%s14148_s5 + $0x3c4] ss:$16 sps:$4 sm:$0xff]  }
 0x403   :  { %v2602_v44 = vmax.f32 %v2546_v63, 0.0  ;;  %v11079_v23 = vld [vmem:[%s14148_s5 + $0x3c0] ss:$16 sps:$4 sm:$0xff]   ;;  %v11087_v3 = vld [vmem:[%s14148_s5 + $0x38c] ss:$16 sps:$4 sm:$0xff]  }
 0x404   :  { %v2600_v60 = vmax.f32 %v2544_v13, 0.0  ;;  %v11082_v0 = vld [vmem:[%s14148_s5 + $0x3e0] ss:$16 sps:$4 sm:$0xff]   ;;  %v11085_v5 = vld [vmem:[%s14148_s5 + $0x388] ss:$16 sps:$4 sm:$0xff]  }
 0x405   :  { %v12785_v14 = vpack.c.bf16 %v2602_v44, %v2601_v29  ;;  %3691 = vmatpush1.bf16.msra.mxu1 %v11034_v7  ;;  %v11090_v63 = vld [vmem:[%s14148_s5 + $0x3ac] ss:$16 sps:$4 sm:$0xff]   ;;  %v11088_v39 = vld [vmem:[%s14148_s5 + $0x3a8] ss:$16 sps:$4 sm:$0xff]   ;;  %v11099_v44 = vld [vmem:[%s14148_s5 + $0x404] ss:$16 sps:$4 sm:$0xff]  }
 0x406   :  { %v12790_v51 = vpack.c.bf16 %v2600_v60, %v2599_v59  ;;  %3727 = vmatprep.subr.bf16.mxu1 %v11039_v28  ;;  %v11093_v7 = vld [vmem:[%s14148_s5 + $0x3cc] ss:$16 sps:$4 sm:$0xff]   ;;  %v11091_v13 = vld [vmem:[%s14148_s5 + $0x3c8] ss:$16 sps:$4 sm:$0xff]   ;;  %v11097_v59 = vld [vmem:[%s14148_s5 + $0x400] ss:$16 sps:$4 sm:$0xff]  }
 0x407   :  { %v11096_v28 = vld [vmem:[%s14148_s5 + $0x3ec] ss:$16 sps:$4 sm:$0xff]   ;;  %v11094_v29 = vld [vmem:[%s14148_s5 + $0x3e8] ss:$16 sps:$4 sm:$0xff]   ;;  %v11102_v60 = vld [vmem:[%s14148_s5 + $0x424] ss:$16 sps:$4 sm:$0xff]  }
 0x408   :  { %8971 = vmatmul.mubr.msk.bf16.vlgmr.msra.gmra.mrb[0].mxu1 %vm1509_vm2, %v12500_v45 }
 0x409   :  { %3728 = vmatpush1.bf16.msra.mxu1 %v11037_v30  ;;  %3759 = vmatprep.mubr.bf16.mxu1 %v11611_v27  ;;  %v11100_v30 = vld [vmem:[%s14148_s5 + $0x420] ss:$16 sps:$4 sm:$0xff]  }
 0x40a   :  { %3729 = vmatprep.subr.bf16.mxu1 %v11042_v2  ;;  %v11105_v2 = vld [vmem:[%s14148_s5 + $0x444] ss:$16 sps:$4 sm:$0xff]  }
 0x40d   :  { %3730 = vmatpush1.bf16.msra.mxu1 %v11040_v46  ;;  %v11103_v46 = vld [vmem:[%s14148_s5 + $0x440] ss:$16 sps:$4 sm:$0xff]  }
 0x40e   :  { %3731 = vmatprep.subr.bf16.mxu1 %v11045_v47  ;;  %v11106_v47 = vld [vmem:[%s14148_s5 + $0x460] ss:$16 sps:$4 sm:$0xff]  }
 0x411   :  { %3732 = vmatpush1.bf16.msra.mxu1 %v11043_v20  ;;  %v11111_v20 = vld [vmem:[%s14148_s5 + $0x40c] ss:$16 sps:$4 sm:$0xff]  }
 0x412   :  { %3733 = vmatprep.subr.bf16.mxu1 %v11048_v57  ;;  %v11109_v57 = vld [vmem:[%s14148_s5 + $0x408] ss:$16 sps:$4 sm:$0xff]  }
 0x415   :  { %3734 = vmatpush1.bf16.msra.mxu1 %v11046_v58  ;;  %v11114_v58 = vld [vmem:[%s14148_s5 + $0x42c] ss:$16 sps:$4 sm:$0xff]  }
 0x416   :  { %3878 = vmatprep.subr.bf16.mxu1 %v11051_v8  ;;  %v11112_v8 = vld [vmem:[%s14148_s5 + $0x428] ss:$16 sps:$4 sm:$0xff]  }
 0x418   :  { %8972 = vmatmul.mubr.msk.bf16.vlgmr.msra.gmra.mrb[4].mxu1 %vm1509_vm2, %v12500_v45  ;;  %v11060_v45 = vld [vmem:[%s14148_s5 + $0x364] ss:$16 sps:$4 sm:$0xff]  }
 0x419   :  { %3879 = vmatpush1.bf16.msra.mxu1 %v11049_v10  ;;  %3910 = vmatprep.mubr.bf16.mxu1 %v11611_v27  ;;  %v11117_v10 = vld [vmem:[%s14148_s5 + $0x44c] ss:$16 sps:$4 sm:$0xff]  }
 0x41a   :  { %3880 = vmatprep.subr.bf16.mxu1 %v11054_v16  ;;  %v11115_v16 = vld [vmem:[%s14148_s5 + $0x448] ss:$16 sps:$4 sm:$0xff]  }
 0x41d   :  { %3881 = vmatpush1.bf16.msra.mxu1 %v11052_v17  ;;  %v11120_v17 = vld [vmem:[%s14148_s5 + $0x46c] ss:$16 sps:$4 sm:$0xff]  }
 0x41e   :  { %3882 = vmatprep.subr.bf16.mxu1 %v11057_v18  ;;  %v11118_v18 = vld [vmem:[%s14148_s5 + $0x468] ss:$16 sps:$4 sm:$0xff]  }
 0x421   :  { %3883 = vmatpush1.bf16.msra.mxu1 %v11055_v22  ;;  %v11123_v22 = vld [vmem:[%s14148_s5 + $0x484] ss:$16 sps:$4 sm:$0xff]  }
 0x422   :  { %3884 = vmatprep.subr.bf16.mxu1 %v11060_v45  ;;  %v11121_v45 = vld [vmem:[%s14148_s5 + $0x480] ss:$16 sps:$4 sm:$0xff]  }
 0x425   :  { %3885 = vmatpush1.bf16.msra.mxu1 %v11058_v24  ;;  %v11126_v24 = vld [vmem:[%s14148_s5 + $0x4a4] ss:$16 sps:$4 sm:$0xff]  }
 0x426   :  { %3921 = vmatprep.subr.bf16.mxu1 %v11063_v26  ;;  %v11124_v26 = vld [vmem:[%s14148_s5 + $0x4a0] ss:$16 sps:$4 sm:$0xff]  }
 0x428   :  { %9005 = vmatmul.mubr.msk.bf16.vlgmr.msra.gmra.mrb[0].mxu1 %vm1509_vm2, %v12543_v25 }
 0x429   :  { %3922 = vmatpush1.bf16.msra.mxu1 %v11061_v31  ;;  %3953 = vmatprep.mubr.bf16.mxu1 %v11611_v27  ;;  %v11129_v31 = vld [vmem:[%s14148_s5 + $0x4c4] ss:$16 sps:$4 sm:$0xff]  }
 0x42a   :  { %3923 = vmatprep.subr.bf16.mxu1 %v11066_v32  ;;  %v11127_v32 = vld [vmem:[%s14148_s5 + $0x4c0] ss:$16 sps:$4 sm:$0xff]  }
 0x42d   :  { %3924 = vmatpush1.bf16.msra.mxu1 %v11064_v33  ;;  %v11130_v33 = vld [vmem:[%s14148_s5 + $0x4e0] ss:$16 sps:$4 sm:$0xff]  }
 0x42e   :  { %3925 = vmatprep.subr.bf16.mxu1 %v11069_v40  ;;  %v11135_v40 = vld [vmem:[%s14148_s5 + $0x48c] ss:$16 sps:$4 sm:$0xff]  }
 0x431   :  { %3926 = vmatpush1.bf16.msra.mxu1 %v11067_v42  ;;  %v11133_v42 = vld [vmem:[%s14148_s5 + $0x488] ss:$16 sps:$4 sm:$0xff]  }
 0x432   :  { %3927 = vmatprep.subr.bf16.mxu1 %v11072_v43  ;;  %v11138_v43 = vld [vmem:[%s14148_s5 + $0x4ac] ss:$16 sps:$4 sm:$0xff]  }
 0x435   :  { %3928 = vmatpush1.bf16.msra.mxu1 %v11070_v11  ;;  %v11136_v11 = vld [vmem:[%s14148_s5 + $0x4a8] ss:$16 sps:$4 sm:$0xff]  }
 0x436   :  { %4072 = vmatprep.subr.bf16.mxu1 %v11075_v48  ;;  %v11141_v48 = vld [vmem:[%s14148_s5 + $0x4cc] ss:$16 sps:$4 sm:$0xff]  }
 0x438   :  { %9006 = vmatmul.mubr.msk.bf16.vlgmr.msra.gmra.mrb[4].mxu1 %vm1509_vm2, %v12543_v25  ;;  %v11084_v25 = vld [vmem:[%s14148_s5 + $0x3e4] ss:$16 sps:$4 sm:$0xff]  }
 0x439   :  { %4073 = vmatpush1.bf16.msra.mxu1 %v11073_v50  ;;  %4104 = vmatprep.mubr.bf16.mxu1 %v11611_v27  ;;  %v11139_v50 = vld [vmem:[%s14148_s5 + $0x4c8] ss:$16 sps:$4 sm:$0xff]  }
 0x43a   :  { %4074 = vmatprep.subr.bf16.mxu1 %v11078_v53  ;;  %v11144_v53 = vld [vmem:[%s14148_s5 + $0x4ec] ss:$16 sps:$4 sm:$0xff]  }
 0x43d   :  { %4075 = vmatpush1.bf16.msra.mxu1 %v11076_v55  ;;  %v11142_v55 = vld [vmem:[%s14148_s5 + $0x4e8] ss:$16 sps:$4 sm:$0xff]  }
 0x43e   :  { %4076 = vmatprep.subr.bf16.mxu1 %v11081_v56 }
 0x441   :  { %4077 = vmatpush1.bf16.msra.mxu1 %v11079_v23  ;;  %v11147_v23 = vld [vmem:[%s14148_s5 + $0x504] ss:$16 sps:$4 sm:$0xff]  }
 0x442   :  { %4078 = vmatprep.subr.bf16.mxu1 %v11084_v25 }
 0x445   :  { %4079 = vmatpush1.bf16.msra.mxu1 %v11082_v0 }
 0x446   :  { %4115 = vmatprep.subr.bf16.mxu1 %v11087_v3 }
 0x448   :  { %9039 = vmatmul.mubr.msk.bf16.vlgmr.msra.gmra.mrb[0].mxu1 %vm1509_vm2, %v12535_v21 }
 0x449   :  { %4116 = vmatpush1.bf16.msra.mxu1 %v11085_v5  ;;  %4147 = vmatprep.mubr.bf16.mxu1 %v11611_v27  ;;  %v11145_v5 = vld [vmem:[%s14148_s5 + $0x500] ss:$16 sps:$4 sm:$0xff]  }
 0x44a   :  { %4117 = vmatprep.subr.bf16.mxu1 %v11090_v63  ;;  %v11150_v63 = vld [vmem:[%s14148_s5 + $0x524] ss:$16 sps:$4 sm:$0xff]  }
 0x44d   :  { %4118 = vmatpush1.bf16.msra.mxu1 %v11088_v39  ;;  %v11148_v39 = vld [vmem:[%s14148_s5 + $0x520] ss:$16 sps:$4 sm:$0xff]  }
 0x44e   :  { %4119 = vmatprep.subr.bf16.mxu1 %v11093_v7  ;;  %v11153_v7 = vld [vmem:[%s14148_s5 + $0x544] ss:$16 sps:$4 sm:$0xff]  }
 0x451   :  { %4120 = vmatpush1.bf16.msra.mxu1 %v11091_v13  ;;  %v11151_v13 = vld [vmem:[%s14148_s5 + $0x540] ss:$16 sps:$4 sm:$0xff]  }
 0x452   :  { %4121 = vmatprep.subr.bf16.mxu1 %v11096_v28  ;;  %v11154_v28 = vld [vmem:[%s14148_s5 + $0x560] ss:$16 sps:$4 sm:$0xff]  }
 0x455   :  { %4122 = vmatpush1.bf16.msra.mxu1 %v11094_v29 }
 0x456   :  { %4266 = vmatprep.subr.bf16.mxu1 %v11099_v44  ;;  %v11159_v44 = vld [vmem:[%s14148_s5 + $0x50c] ss:$16 sps:$4 sm:$0xff]  }
 0x458   :  { %9040 = vmatmul.mubr.msk.bf16.vlgmr.msra.gmra.mrb[4].mxu1 %vm1509_vm2, %v12535_v21  ;;  %v11108_v21 = vld [vmem:[%s14148_s5 + $0x464] ss:$16 sps:$4 sm:$0xff]  }
 0x459   :  { %4267 = vmatpush1.bf16.msra.mxu1 %v11097_v59  ;;  %4298 = vmatprep.mubr.bf16.mxu1 %v11611_v27 }
 0x45a   :  { %4268 = vmatprep.subr.bf16.mxu1 %v11102_v60 }
 0x45d   :  { %4269 = vmatpush1.bf16.msra.mxu1 %v11100_v30 }
 0x45e   :  { %4270 = vmatprep.subr.bf16.mxu1 %v11105_v2  ;;  %v11157_v2 = vld [vmem:[%s14148_s5 + $0x508] ss:$16 sps:$4 sm:$0xff]  }
 0x461   :  { %4271 = vmatpush1.bf16.msra.mxu1 %v11103_v46  ;;  %v11162_v46 = vld [vmem:[%s14148_s5 + $0x52c] ss:$16 sps:$4 sm:$0xff]  }
 0x462   :  { %4272 = vmatprep.subr.bf16.mxu1 %v11108_v21  ;;  %v11160_v21 = vld [vmem:[%s14148_s5 + $0x528] ss:$16 sps:$4 sm:$0xff]  }
 0x465   :  { %4273 = vmatpush1.bf16.msra.mxu1 %v11106_v47  ;;  %v11165_v47 = vld [vmem:[%s14148_s5 + $0x54c] ss:$16 sps:$4 sm:$0xff]  }
 0x466   :  { %4309 = vmatprep.subr.bf16.mxu1 %v11111_v20  ;;  %v11163_v20 = vld [vmem:[%s14148_s5 + $0x548] ss:$16 sps:$4 sm:$0xff]  }
 0x468   :  { %9073 = vmatmul.mubr.msk.bf16.vlgmr.msra.gmra.mrb[0].mxu1 %vm1509_vm2, %v12578_v4 }
 0x469   :  { %4310 = vmatpush1.bf16.msra.mxu1 %v11109_v57  ;;  %4341 = vmatprep.mubr.bf16.mxu1 %v11611_v27  ;;  %v11168_v57 = vld [vmem:[%s14148_s5 + $0x56c] ss:$16 sps:$4 sm:$0xff]  }
 0x46a   :  { %4311 = vmatprep.subr.bf16.mxu1 %v11114_v58  ;;  %v11166_v58 = vld [vmem:[%s14148_s5 + $0x568] ss:$16 sps:$4 sm:$0xff]  }
 0x46d   :  { %4312 = vmatpush1.bf16.msra.mxu1 %v11112_v8  ;;  %v11171_v8 = vld [vmem:[%s14148_s5 + $0x584] ss:$16 sps:$4 sm:$0xff]  }
 0x46e   :  { %4313 = vmatprep.subr.bf16.mxu1 %v11117_v10  ;;  %v11169_v10 = vld [vmem:[%s14148_s5 + $0x580] ss:$16 sps:$4 sm:$0xff]  }
 0x471   :  { %4314 = vmatpush1.bf16.msra.mxu1 %v11115_v16  ;;  %v11174_v16 = vld [vmem:[%s14148_s5 + $0x5a4] ss:$16 sps:$4 sm:$0xff]  }
 0x472   :  { %4315 = vmatprep.subr.bf16.mxu1 %v11120_v17  ;;  %v11172_v17 = vld [vmem:[%s14148_s5 + $0x5a0] ss:$16 sps:$4 sm:$0xff]  }
 0x475   :  { %4316 = vmatpush1.bf16.msra.mxu1 %v11118_v18  ;;  %v11177_v18 = vld [vmem:[%s14148_s5 + $0x5c4] ss:$16 sps:$4 sm:$0xff]  }
 0x476   :  { %4460 = vmatprep.subr.bf16.mxu1 %v11123_v22  ;;  %v11175_v22 = vld [vmem:[%s14148_s5 + $0x5c0] ss:$16 sps:$4 sm:$0xff]  }
 0x478   :  { %9074 = vmatmul.mubr.msk.bf16.vlgmr.msra.gmra.mrb[4].mxu1 %vm1509_vm2, %v12578_v4  ;;  %v11132_v4 = vld [vmem:[%s14148_s5 + $0x4e4] ss:$16 sps:$4 sm:$0xff]  }
 0x479   :  { %4461 = vmatpush1.bf16.msra.mxu1 %v11121_v45  ;;  %4492 = vmatprep.mubr.bf16.mxu1 %v11611_v27  ;;  %v11178_v45 = vld [vmem:[%s14148_s5 + $0x5e0] ss:$16 sps:$4 sm:$0xff]  }
 0x47a   :  { %4462 = vmatprep.subr.bf16.mxu1 %v11126_v24  ;;  %v11183_v24 = vld [vmem:[%s14148_s5 + $0x58c] ss:$16 sps:$4 sm:$0xff]  }
 0x47d   :  { %4463 = vmatpush1.bf16.msra.mxu1 %v11124_v26  ;;  %v11181_v26 = vld [vmem:[%s14148_s5 + $0x588] ss:$16 sps:$4 sm:$0xff]  }
 0x47e   :  { %4464 = vmatprep.subr.bf16.mxu1 %v11129_v31  ;;  %v11186_v31 = vld [vmem:[%s14148_s5 + $0x5ac] ss:$16 sps:$4 sm:$0xff]  }
 0x481   :  { %4465 = vmatpush1.bf16.msra.mxu1 %v11127_v32  ;;  %v11184_v32 = vld [vmem:[%s14148_s5 + $0x5a8] ss:$16 sps:$4 sm:$0xff]  }
 0x482   :  { %4466 = vmatprep.subr.bf16.mxu1 %v11132_v4  ;;  %v11189_v4 = vld [vmem:[%s14148_s5 + $0x5cc] ss:$16 sps:$4 sm:$0xff]  }
 0x485   :  { %4467 = vmatpush1.bf16.msra.mxu1 %v11130_v33  ;;  %v11187_v33 = vld [vmem:[%s14148_s5 + $0x5c8] ss:$16 sps:$4 sm:$0xff]  }
 0x486   :  { %4503 = vmatprep.subr.bf16.mxu1 %v11135_v40  ;;  %v11192_v40 = vld [vmem:[%s14148_s5 + $0x5ec] ss:$16 sps:$4 sm:$0xff]  }
 0x488   :  { %9107 = vmatmul.mubr.msk.bf16.vlgmr.msra.gmra.mrb[0].mxu1 %vm1509_vm2, %v12570_v61 }
 0x489   :  { %4504 = vmatpush1.bf16.msra.mxu1 %v11133_v42  ;;  %4535 = vmatprep.mubr.bf16.mxu1 %v11611_v27  ;;  %v11190_v42 = vld [vmem:[%s14148_s5 + $0x5e8] ss:$16 sps:$4 sm:$0xff]  }
 0x48a   :  { %4505 = vmatprep.subr.bf16.mxu1 %v11138_v43  ;;  %v11195_v43 = vld [vmem:[%s14148_s5 + $0x604] ss:$16 sps:$4 sm:$0xff]  }
 0x48d   :  { %4506 = vmatpush1.bf16.msra.mxu1 %v11136_v11  ;;  %v11193_v11 = vld [vmem:[%s14148_s5 + $0x600] ss:$16 sps:$4 sm:$0xff]  }
 0x48e   :  { %4507 = vmatprep.subr.bf16.mxu1 %v11141_v48  ;;  %v11198_v48 = vld [vmem:[%s14148_s5 + $0x624] ss:$16 sps:$4 sm:$0xff]  }
 0x491   :  { %4508 = vmatpush1.bf16.msra.mxu1 %v11139_v50  ;;  %v11196_v50 = vld [vmem:[%s14148_s5 + $0x620] ss:$16 sps:$4 sm:$0xff]  }
 0x492   :  { %v13029_v56 = vpop.f32.mrb[116].mxu0  ;;  %4509 = vmatprep.subr.bf16.mxu1 %v11144_v53  ;;  %v11201_v53 = vld [vmem:[%s14148_s5 + $0x644] ss:$16 sps:$4 sm:$0xff]  }
 0x493   :  { %v13034_v25 = vpop.f32.mrb[117].mxu0 }
 0x494   :  { %v13036_v0 = vpop.f32.mrb[118].mxu0 }
 0x495   :  { %v13038_v3 = vpop.f32.mrb[119].mxu0  ;;  %4510 = vmatpush1.bf16.msra.mxu1 %v11142_v55  ;;  %v11199_v55 = vld [vmem:[%s14148_s5 + $0x640] ss:$16 sps:$4 sm:$0xff]  }
 0x496   :  { %4654 = vmatprep.subr.bf16.mxu1 %v11147_v23  ;;  %v11202_v23 = vld [vmem:[%s14148_s5 + $0x660] ss:$16 sps:$4 sm:$0xff]  }
 0x498   :  { %9108 = vmatmul.mubr.msk.bf16.vlgmr.msra.gmra.mrb[4].mxu1 %vm1509_vm2, %v12570_v61  ;;  %v11156_v61 = vld [vmem:[%s14148_s5 + $0x564] ss:$16 sps:$4 sm:$0xff]  }
 0x499   :  { %4655 = vmatpush1.bf16.msra.mxu1 %v11145_v5  ;;  %4686 = vmatprep.mubr.bf16.mxu1 %v11611_v27  ;;  %v11207_v5 = vld [vmem:[%s14148_s5 + $0x60c] ss:$16 sps:$4 sm:$0xff]  }
 0x49a   :  { %4656 = vmatprep.subr.bf16.mxu1 %v11150_v63  ;;  %v11205_v63 = vld [vmem:[%s14148_s5 + $0x608] ss:$16 sps:$4 sm:$0xff]  }
 0x49d   :  { %4657 = vmatpush1.bf16.msra.mxu1 %v11148_v39  ;;  %v11210_v39 = vld [vmem:[%s14148_s5 + $0x62c] ss:$16 sps:$4 sm:$0xff]  }
 0x49e   :  { %4658 = vmatprep.subr.bf16.mxu1 %v11153_v7  ;;  %v11208_v7 = vld [vmem:[%s14148_s5 + $0x628] ss:$16 sps:$4 sm:$0xff]  }
 0x4a1   :  { %4659 = vmatpush1.bf16.msra.mxu1 %v11151_v13  ;;  %v11213_v13 = vld [vmem:[%s14148_s5 + $0x64c] ss:$16 sps:$4 sm:$0xff]  }
 0x4a2   :  { %v13064_v29 = vpop.f32.mrb[120].mxu0  ;;  %4660 = vmatprep.subr.bf16.mxu1 %v11156_v61  ;;  %v11211_v61 = vld [vmem:[%s14148_s5 + $0x648] ss:$16 sps:$4 sm:$0xff]  }
 0x4a3   :  { %v13069_v59 = vpop.f32.mrb[121].mxu0 }
 0x4a4   :  { %v13071_v60 = vpop.f32.mrb[122].mxu0 }
 0x4a5   :  { %v13073_v30 = vpop.f32.mrb[123].mxu0  ;;  %4661 = vmatpush1.bf16.msra.mxu1 %v11154_v28  ;;  %v11216_v28 = vld [vmem:[%s14148_s5 + $0x66c] ss:$16 sps:$4 sm:$0xff]  }
 0x4a6   :  { %4697 = vmatprep.subr.bf16.mxu1 %v11159_v44  ;;  %v11214_v44 = vld [vmem:[%s14148_s5 + $0x668] ss:$16 sps:$4 sm:$0xff]  }
 0x4a8   :  { %9141 = vmatmul.mubr.msk.bf16.vlgmr.msra.gmra.mrb[0].mxu1 %vm1509_vm2, %v12613_v37 }
 0x4a9   :  { %4698 = vmatpush1.bf16.msra.mxu1 %v11157_v2  ;;  %4729 = vmatprep.mubr.bf16.mxu1 %v11611_v27  ;;  %v11219_v2 = vld [vmem:[%s14148_s5 + $0x684] ss:$16 sps:$4 sm:$0xff]  }
 0x4aa   :  { %4699 = vmatprep.subr.bf16.mxu1 %v11162_v46  ;;  %v11217_v46 = vld [vmem:[%s14148_s5 + $0x680] ss:$16 sps:$4 sm:$0xff]  }
 0x4ad   :  { %4700 = vmatpush1.bf16.msra.mxu1 %v11160_v21  ;;  %v11222_v21 = vld [vmem:[%s14148_s5 + $0x6a4] ss:$16 sps:$4 sm:$0xff]  }
 0x4ae   :  { %4701 = vmatprep.subr.bf16.mxu1 %v11165_v47  ;;  %v11220_v47 = vld [vmem:[%s14148_s5 + $0x6a0] ss:$16 sps:$4 sm:$0xff]  }
 0x4b1   :  { %4702 = vmatpush1.bf16.msra.mxu1 %v11163_v20  ;;  %v11225_v20 = vld [vmem:[%s14148_s5 + $0x6c4] ss:$16 sps:$4 sm:$0xff]  }
 0x4b2   :  { %4703 = vmatprep.subr.bf16.mxu1 %v11168_v57  ;;  %v11223_v57 = vld [vmem:[%s14148_s5 + $0x6c0] ss:$16 sps:$4 sm:$0xff]  }
 0x4b5   :  { %4704 = vmatpush1.bf16.msra.mxu1 %v11166_v58  ;;  %v11226_v58 = vld [vmem:[%s14148_s5 + $0x6e0] ss:$16 sps:$4 sm:$0xff]  }
 0x4b6   :  { %4848 = vmatprep.subr.bf16.mxu1 %v11171_v8  ;;  %v11231_v8 = vld [vmem:[%s14148_s5 + $0x68c] ss:$16 sps:$4 sm:$0xff]  }
 0x4b8   :  { %9142 = vmatmul.mubr.msk.bf16.vlgmr.msra.gmra.mrb[4].mxu1 %vm1509_vm2, %v12613_v37  ;;  %v11180_v37 = vld [vmem:[%s14148_s5 + $0x5e4] ss:$16 sps:$4 sm:$0xff]  }
 0x4b9   :  { %4849 = vmatpush1.bf16.msra.mxu1 %v11169_v10  ;;  %4880 = vmatprep.mubr.bf16.mxu1 %v11611_v27  ;;  %v11229_v10 = vld [vmem:[%s14148_s5 + $0x688] ss:$16 sps:$4 sm:$0xff]  }
 0x4ba   :  { %4850 = vmatprep.subr.bf16.mxu1 %v11174_v16  ;;  %v11234_v16 = vld [vmem:[%s14148_s5 + $0x6ac] ss:$16 sps:$4 sm:$0xff]  }
 0x4bd   :  { %4851 = vmatpush1.bf16.msra.mxu1 %v11172_v17  ;;  %v11232_v17 = vld [vmem:[%s14148_s5 + $0x6a8] ss:$16 sps:$4 sm:$0xff]  }
 0x4be   :  { %4852 = vmatprep.subr.bf16.mxu1 %v11177_v18  ;;  %v11237_v18 = vld [vmem:[%s14148_s5 + $0x6cc] ss:$16 sps:$4 sm:$0xff]  }
 0x4c1   :  { %4853 = vmatpush1.bf16.msra.mxu1 %v11175_v22  ;;  %v11235_v22 = vld [vmem:[%s14148_s5 + $0x6c8] ss:$16 sps:$4 sm:$0xff]  }
 0x4c2   :  { %4854 = vmatprep.subr.bf16.mxu1 %v11180_v37  ;;  %v11240_v37 = vld [vmem:[%s14148_s5 + $0x6ec] ss:$16 sps:$4 sm:$0xff]  }
 0x4c5   :  { %4855 = vmatpush1.bf16.msra.mxu1 %v11178_v45  ;;  %v11238_v45 = vld [vmem:[%s14148_s5 + $0x6e8] ss:$16 sps:$4 sm:$0xff]  }
 0x4c6   :  { %4891 = vmatprep.subr.bf16.mxu1 %v11183_v24  ;;  %v11243_v24 = vld [vmem:[%s14148_s5 + $0x704] ss:$16 sps:$4 sm:$0xff]  }
 0x4c8   :  { %9175 = vmatmul.mubr.msk.bf16.vlgmr.msra.gmra.mrb[0].mxu1 %vm1509_vm2, %v12605_v1 }
 0x4c9   :  { %4892 = vmatpush1.bf16.msra.mxu1 %v11181_v26  ;;  %4923 = vmatprep.mubr.bf16.mxu1 %v11611_v27  ;;  %v11241_v26 = vld [vmem:[%s14148_s5 + $0x700] ss:$16 sps:$4 sm:$0xff]  }
 0x4ca   :  { %4893 = vmatprep.subr.bf16.mxu1 %v11186_v31  ;;  %v11246_v31 = vld [vmem:[%s14148_s5 + $0x724] ss:$16 sps:$4 sm:$0xff]  }
 0x4cd   :  { %4894 = vmatpush1.bf16.msra.mxu1 %v11184_v32  ;;  %v11244_v32 = vld [vmem:[%s14148_s5 + $0x720] ss:$16 sps:$4 sm:$0xff]  }
 0x4ce   :  { %4895 = vmatprep.subr.bf16.mxu1 %v11189_v4  ;;  %v11249_v4 = vld [vmem:[%s14148_s5 + $0x744] ss:$16 sps:$4 sm:$0xff]  }
 0x4d1   :  { %4896 = vmatpush1.bf16.msra.mxu1 %v11187_v33  ;;  %v11247_v33 = vld [vmem:[%s14148_s5 + $0x740] ss:$16 sps:$4 sm:$0xff]  }
 0x4d2   :  { %4897 = vmatprep.subr.bf16.mxu1 %v11192_v40  ;;  %v11250_v40 = vld [vmem:[%s14148_s5 + $0x760] ss:$16 sps:$4 sm:$0xff]  }
 0x4d5   :  { %4898 = vmatpush1.bf16.msra.mxu1 %v11190_v42  ;;  %v11255_v42 = vld [vmem:[%s14148_s5 + $0x70c] ss:$16 sps:$4 sm:$0xff]  }
 0x4d6   :  { %5042 = vmatprep.subr.bf16.mxu1 %v11195_v43  ;;  %v11253_v43 = vld [vmem:[%s14148_s5 + $0x708] ss:$16 sps:$4 sm:$0xff]  }
 0x4d8   :  { %9176 = vmatmul.mubr.msk.bf16.vlgmr.msra.gmra.mrb[4].mxu1 %vm1509_vm2, %v12605_v1  ;;  %v11204_v1 = vld [vmem:[%s14148_s5 + $0x664] ss:$16 sps:$4 sm:$0xff]  }
 0x4d9   :  { %5043 = vmatpush1.bf16.msra.mxu1 %v11193_v11  ;;  %5074 = vmatprep.mubr.bf16.mxu1 %v11611_v27  ;;  %v11258_v11 = vld [vmem:[%s14148_s5 + $0x72c] ss:$16 sps:$4 sm:$0xff]  }
 0x4da   :  { %5044 = vmatprep.subr.bf16.mxu1 %v11198_v48  ;;  %v11256_v48 = vld [vmem:[%s14148_s5 + $0x728] ss:$16 sps:$4 sm:$0xff]  }
 0x4dd   :  { %5045 = vmatpush1.bf16.msra.mxu1 %v11196_v50  ;;  %v11261_v50 = vld [vmem:[%s14148_s5 + $0x74c] ss:$16 sps:$4 sm:$0xff]  }
 0x4de   :  { %5046 = vmatprep.subr.bf16.mxu1 %v11201_v53  ;;  %v11259_v53 = vld [vmem:[%s14148_s5 + $0x748] ss:$16 sps:$4 sm:$0xff]  }
 0x4e1   :  { %5047 = vmatpush1.bf16.msra.mxu1 %v11199_v55  ;;  %v11264_v55 = vld [vmem:[%s14148_s5 + $0x76c] ss:$16 sps:$4 sm:$0xff]  }
 0x4e2   :  { %5048 = vmatprep.subr.bf16.mxu1 %v11204_v1  ;;  %v11262_v1 = vld [vmem:[%s14148_s5 + $0x768] ss:$16 sps:$4 sm:$0xff]  }
 0x4e5   :  { %5049 = vmatpush1.bf16.msra.mxu1 %v11202_v23  ;;  %v11267_v23 = vld [vmem:[%s14148_s5 + $0x784] ss:$16 sps:$4 sm:$0xff]  }
 0x4e6   :  { %5085 = vmatprep.subr.bf16.mxu1 %v11207_v5  ;;  %v11265_v5 = vld [vmem:[%s14148_s5 + $0x780] ss:$16 sps:$4 sm:$0xff]  }
 0x4e8   :  { %9209 = vmatmul.mubr.msk.bf16.vlgmr.msra.gmra.mrb[0].mxu1 %vm1509_vm2, %v12639_v36 }
 0x4e9   :  { %5086 = vmatpush1.bf16.msra.mxu1 %v11205_v63  ;;  %5117 = vmatprep.mubr.bf16.mxu1 %v11611_v27  ;;  %v11270_v63 = vld [vmem:[%s14148_s5 + $0x7a4] ss:$16 sps:$4 sm:$0xff]  }
 0x4ea   :  { %5087 = vmatprep.subr.bf16.mxu1 %v11210_v39  ;;  %v11268_v39 = vld [vmem:[%s14148_s5 + $0x7a0] ss:$16 sps:$4 sm:$0xff]  }
 0x4ed   :  { %5088 = vmatpush1.bf16.msra.mxu1 %v11208_v7  ;;  %v11273_v7 = vld [vmem:[%s14148_s5 + $0x7c4] ss:$16 sps:$4 sm:$0xff]  }
 0x4ee   :  { %5089 = vmatprep.subr.bf16.mxu1 %v11213_v13  ;;  %v11271_v13 = vld [vmem:[%s14148_s5 + $0x7c0] ss:$16 sps:$4 sm:$0xff]  }
 0x4f1   :  { %5090 = vmatpush1.bf16.msra.mxu1 %v11211_v61  ;;  %v11274_v61 = vld [vmem:[%s14148_s5 + $0x7e0] ss:$16 sps:$4 sm:$0xff]  }
 0x4f2   :  { %5091 = vmatprep.subr.bf16.mxu1 %v11216_v28  ;;  %v11279_v28 = vld [vmem:[%s14148_s5 + $0x78c] ss:$16 sps:$4 sm:$0xff]  }
 0x4f5   :  { %5092 = vmatpush1.bf16.msra.mxu1 %v11214_v44  ;;  %v11277_v44 = vld [vmem:[%s14148_s5 + $0x788] ss:$16 sps:$4 sm:$0xff]  }
 0x4f6   :  { %5236 = vmatprep.subr.bf16.mxu1 %v11219_v2  ;;  %v11282_v2 = vld [vmem:[%s14148_s5 + $0x7ac] ss:$16 sps:$4 sm:$0xff]  }
 0x4f8   :  { %9210 = vmatmul.mubr.msk.bf16.vlgmr.msra.gmra.mrb[4].mxu1 %vm1509_vm2, %v12639_v36  ;;  %v11228_v36 = vld [vmem:[%s14148_s5 + $0x6e4] ss:$16 sps:$4 sm:$0xff]  }
 0x4f9   :  { %5237 = vmatpush1.bf16.msra.mxu1 %v11217_v46  ;;  %5268 = vmatprep.mubr.bf16.mxu1 %v11611_v27  ;;  %v11280_v46 = vld [vmem:[%s14148_s5 + $0x7a8] ss:$16 sps:$4 sm:$0xff]  }
 0x4fa   :  { %5238 = vmatprep.subr.bf16.mxu1 %v11222_v21  ;;  %v11285_v21 = vld [vmem:[%s14148_s5 + $0x7cc] ss:$16 sps:$4 sm:$0xff]  }
 0x4fd   :  { %5239 = vmatpush1.bf16.msra.mxu1 %v11220_v47  ;;  %v11283_v47 = vld [vmem:[%s14148_s5 + $0x7c8] ss:$16 sps:$4 sm:$0xff]  }
 0x4fe   :  { %5240 = vmatprep.subr.bf16.mxu1 %v11225_v20  ;;  %v11288_v20 = vld [vmem:[%s14148_s5 + $0x7ec] ss:$16 sps:$4 sm:$0xff]  }
 0x501   :  { %5241 = vmatpush1.bf16.msra.mxu1 %v11223_v57  ;;  %v11286_v57 = vld [vmem:[%s14148_s5 + $0x7e8] ss:$16 sps:$4 sm:$0xff]  }
 0x502   :  { %5242 = vmatprep.subr.bf16.mxu1 %v11228_v36  ;;  %v11291_v36 = vld [vmem:[%s14148_s5 + $0x804] ss:$16 sps:$4 sm:$0xff]  }
 0x505   :  { %5243 = vmatpush1.bf16.msra.mxu1 %v11226_v58  ;;  %v11289_v58 = vld [vmem:[%s14148_s5 + $0x800] ss:$16 sps:$4 sm:$0xff]  }
 0x506   :  { %5279 = vmatprep.subr.bf16.mxu1 %v11231_v8  ;;  %v11294_v8 = vld [vmem:[%s14148_s5 + $0x824] ss:$16 sps:$4 sm:$0xff]  }
 0x508   :  { %9243 = vmatmul.mubr.msk.bf16.vlgmr.msra.gmra.mrb[0].mxu1 %vm1509_vm2, %v12634_v34 }
 0x509   :  { %5280 = vmatpush1.bf16.msra.mxu1 %v11229_v10  ;;  %5311 = vmatprep.mubr.bf16.mxu1 %v11611_v27  ;;  %v11292_v10 = vld [vmem:[%s14148_s5 + $0x820] ss:$16 sps:$4 sm:$0xff]  }
 0x50a   :  { %5281 = vmatprep.subr.bf16.mxu1 %v11234_v16  ;;  %v11297_v16 = vld [vmem:[%s14148_s5 + $0x844] ss:$16 sps:$4 sm:$0xff]  }
 0x50d   :  { %5282 = vmatpush1.bf16.msra.mxu1 %v11232_v17  ;;  %v11295_v17 = vld [vmem:[%s14148_s5 + $0x840] ss:$16 sps:$4 sm:$0xff]  }
 0x50e   :  { %5283 = vmatprep.subr.bf16.mxu1 %v11237_v18  ;;  %v11298_v18 = vld [vmem:[%s14148_s5 + $0x860] ss:$16 sps:$4 sm:$0xff]  }
 0x511   :  { %5284 = vmatpush1.bf16.msra.mxu1 %v11235_v22  ;;  %v11303_v22 = vld [vmem:[%s14148_s5 + $0x80c] ss:$16 sps:$4 sm:$0xff]  }
 0x512   :  { %5285 = vmatprep.subr.bf16.mxu1 %v11240_v37  ;;  %v11301_v37 = vld [vmem:[%s14148_s5 + $0x808] ss:$16 sps:$4 sm:$0xff]  }
 0x515   :  { %5286 = vmatpush1.bf16.msra.mxu1 %v11238_v45  ;;  %v11306_v45 = vld [vmem:[%s14148_s5 + $0x82c] ss:$16 sps:$4 sm:$0xff]  }
 0x516   :  { %5430 = vmatprep.subr.bf16.mxu1 %v11243_v24  ;;  %v11304_v24 = vld [vmem:[%s14148_s5 + $0x828] ss:$16 sps:$4 sm:$0xff]  }
 0x518   :  { %9244 = vmatmul.mubr.msk.bf16.vlgmr.msra.gmra.mrb[4].mxu1 %vm1509_vm2, %v12634_v34  ;;  %v11252_v34 = vld [vmem:[%s14148_s5 + $0x764] ss:$16 sps:$4 sm:$0xff]  }
 0x519   :  { %5431 = vmatpush1.bf16.msra.mxu1 %v11241_v26  ;;  %5462 = vmatprep.mubr.bf16.mxu1 %v11611_v27  ;;  %v11309_v26 = vld [vmem:[%s14148_s5 + $0x84c] ss:$16 sps:$4 sm:$0xff]  }
 0x51a   :  { %5432 = vmatprep.subr.bf16.mxu1 %v11246_v31  ;;  %v11307_v31 = vld [vmem:[%s14148_s5 + $0x848] ss:$16 sps:$4 sm:$0xff]  }
 0x51d   :  { %5433 = vmatpush1.bf16.msra.mxu1 %v11244_v32  ;;  %v11312_v32 = vld [vmem:[%s14148_s5 + $0x86c] ss:$16 sps:$4 sm:$0xff]  }
 0x51e   :  { %5434 = vmatprep.subr.bf16.mxu1 %v11249_v4  ;;  %v11310_v4 = vld [vmem:[%s14148_s5 + $0x868] ss:$16 sps:$4 sm:$0xff]  }
 0x521   :  { %5435 = vmatpush1.bf16.msra.mxu1 %v11247_v33  ;;  %v11315_v33 = vld [vmem:[%s14148_s5 + $0x884] ss:$16 sps:$4 sm:$0xff]  }
 0x522   :  { %5436 = vmatprep.subr.bf16.mxu1 %v11252_v34  ;;  %v11313_v34 = vld [vmem:[%s14148_s5 + $0x880] ss:$16 sps:$4 sm:$0xff]  }
 0x525   :  { %5437 = vmatpush1.bf16.msra.mxu1 %v11250_v40  ;;  %v11318_v40 = vld [vmem:[%s14148_s5 + $0x8a4] ss:$16 sps:$4 sm:$0xff]  }
 0x526   :  { %5473 = vmatprep.subr.bf16.mxu1 %v11255_v42  ;;  %v11316_v42 = vld [vmem:[%s14148_s5 + $0x8a0] ss:$16 sps:$4 sm:$0xff]  }
 0x528   :  { %9277 = vmatmul.mubr.msk.bf16.vlgmr.msra.gmra.mrb[0].mxu1 %vm1509_vm2, %v12661_v62 }
 0x529   :  { %5474 = vmatpush1.bf16.msra.mxu1 %v11253_v43  ;;  %5505 = vmatprep.mubr.bf16.mxu1 %v11611_v27  ;;  %v11321_v43 = vld [vmem:[%s14148_s5 + $0x8c4] ss:$16 sps:$4 sm:$0xff]  }
 0x52a   :  { %5475 = vmatprep.subr.bf16.mxu1 %v11258_v11  ;;  %v11319_v11 = vld [vmem:[%s14148_s5 + $0x8c0] ss:$16 sps:$4 sm:$0xff]  }
 0x52d   :  { %5476 = vmatpush1.bf16.msra.mxu1 %v11256_v48  ;;  %v11322_v48 = vld [vmem:[%s14148_s5 + $0x8e0] ss:$16 sps:$4 sm:$0xff]  }
 0x52e   :  { %5477 = vmatprep.subr.bf16.mxu1 %v11261_v50  ;;  %v11327_v50 = vld [vmem:[%s14148_s5 + $0x88c] ss:$16 sps:$4 sm:$0xff]  }
 0x531   :  { %5478 = vmatpush1.bf16.msra.mxu1 %v11259_v53  ;;  %v11325_v53 = vld [vmem:[%s14148_s5 + $0x888] ss:$16 sps:$4 sm:$0xff]  }
 0x532   :  { %5479 = vmatprep.subr.bf16.mxu1 %v11264_v55  ;;  %v11330_v55 = vld [vmem:[%s14148_s5 + $0x8ac] ss:$16 sps:$4 sm:$0xff]  }
 0x535   :  { %5480 = vmatpush1.bf16.msra.mxu1 %v11262_v1  ;;  %v11328_v1 = vld [vmem:[%s14148_s5 + $0x8a8] ss:$16 sps:$4 sm:$0xff]  }
 0x536   :  { %5624 = vmatprep.subr.bf16.mxu1 %v11267_v23  ;;  %v11333_v23 = vld [vmem:[%s14148_s5 + $0x8cc] ss:$16 sps:$4 sm:$0xff]  }
 0x538   :  { %9278 = vmatmul.mubr.msk.bf16.vlgmr.msra.gmra.mrb[4].mxu1 %vm1509_vm2, %v12661_v62  ;;  %v11276_v62 = vld [vmem:[%s14148_s5 + $0x7e4] ss:$16 sps:$4 sm:$0xff]  }
 0x539   :  { %5625 = vmatpush1.bf16.msra.mxu1 %v11265_v5  ;;  %5656 = vmatprep.mubr.bf16.mxu1 %v11611_v27  ;;  %v11331_v5 = vld [vmem:[%s14148_s5 + $0x8c8] ss:$16 sps:$4 sm:$0xff]  }
 0x53a   :  { %5626 = vmatprep.subr.bf16.mxu1 %v11270_v63  ;;  %v11336_v63 = vld [vmem:[%s14148_s5 + $0x8ec] ss:$16 sps:$4 sm:$0xff]  }
 0x53d   :  { %5627 = vmatpush1.bf16.msra.mxu1 %v11268_v39  ;;  %v11334_v39 = vld [vmem:[%s14148_s5 + $0x8e8] ss:$16 sps:$4 sm:$0xff]  }
 0x53e   :  { %5628 = vmatprep.subr.bf16.mxu1 %v11273_v7  ;;  %v11339_v7 = vld [vmem:[%s14148_s5 + $0x904] ss:$16 sps:$4 sm:$0xff]  }
 0x541   :  { %5629 = vmatpush1.bf16.msra.mxu1 %v11271_v13  ;;  %v11337_v13 = vld [vmem:[%s14148_s5 + $0x900] ss:$16 sps:$4 sm:$0xff]  }
 0x542   :  { %5630 = vmatprep.subr.bf16.mxu1 %v11276_v62  ;;  %v11342_v62 = vld [vmem:[%s14148_s5 + $0x924] ss:$16 sps:$4 sm:$0xff]  }
 0x545   :  { %5631 = vmatpush1.bf16.msra.mxu1 %v11274_v61  ;;  %v11340_v61 = vld [vmem:[%s14148_s5 + $0x920] ss:$16 sps:$4 sm:$0xff]  }
 0x546   :  { %5667 = vmatprep.subr.bf16.mxu1 %v11279_v28  ;;  %v11345_v28 = vld [vmem:[%s14148_s5 + $0x944] ss:$16 sps:$4 sm:$0xff]  }
 0x548   :  { %9311 = vmatmul.mubr.msk.bf16.vlgmr.msra.gmra.mrb[0].mxu1 %vm1509_vm2, %v12656_v49 }
 0x549   :  { %5668 = vmatpush1.bf16.msra.mxu1 %v11277_v44  ;;  %5699 = vmatprep.mubr.bf16.mxu1 %v11611_v27  ;;  %v11343_v44 = vld [vmem:[%s14148_s5 + $0x940] ss:$16 sps:$4 sm:$0xff]  }
 0x54a   :  { %5669 = vmatprep.subr.bf16.mxu1 %v11282_v2  ;;  %v11346_v2 = vld [vmem:[%s14148_s5 + $0x960] ss:$16 sps:$4 sm:$0xff]  }
 0x54d   :  { %5670 = vmatpush1.bf16.msra.mxu1 %v11280_v46  ;;  %v11351_v46 = vld [vmem:[%s14148_s5 + $0x90c] ss:$16 sps:$4 sm:$0xff]  }
 0x54e   :  { %5671 = vmatprep.subr.bf16.mxu1 %v11285_v21  ;;  %v11349_v21 = vld [vmem:[%s14148_s5 + $0x908] ss:$16 sps:$4 sm:$0xff]  }
 0x551   :  { %5672 = vmatpush1.bf16.msra.mxu1 %v11283_v47  ;;  %v11354_v47 = vld [vmem:[%s14148_s5 + $0x92c] ss:$16 sps:$4 sm:$0xff]  }
 0x552   :  { %5673 = vmatprep.subr.bf16.mxu1 %v11288_v20  ;;  %v11352_v20 = vld [vmem:[%s14148_s5 + $0x928] ss:$16 sps:$4 sm:$0xff]  }
 0x555   :  { %5674 = vmatpush1.bf16.msra.mxu1 %v11286_v57  ;;  %v11357_v57 = vld [vmem:[%s14148_s5 + $0x94c] ss:$16 sps:$4 sm:$0xff]  }
 0x556   :  { %5818 = vmatprep.subr.bf16.mxu1 %v11291_v36  ;;  %v11355_v36 = vld [vmem:[%s14148_s5 + $0x948] ss:$16 sps:$4 sm:$0xff]  }
 0x558   :  { %9312 = vmatmul.mubr.msk.bf16.vlgmr.msra.gmra.mrb[4].mxu1 %vm1509_vm2, %v12656_v49  ;;  %v11300_v49 = vld [vmem:[%s14148_s5 + $0x864] ss:$16 sps:$4 sm:$0xff]  }
 0x559   :  { %5819 = vmatpush1.bf16.msra.mxu1 %v11289_v58  ;;  %5850 = vmatprep.mubr.bf16.mxu1 %v11611_v27  ;;  %v11360_v58 = vld [vmem:[%s14148_s5 + $0x96c] ss:$16 sps:$4 sm:$0xff]  }
 0x55a   :  { %5820 = vmatprep.subr.bf16.mxu1 %v11294_v8  ;;  %v11358_v8 = vld [vmem:[%s14148_s5 + $0x968] ss:$16 sps:$4 sm:$0xff]  }
 0x55d   :  { %5821 = vmatpush1.bf16.msra.mxu1 %v11292_v10  ;;  %v11363_v10 = vld [vmem:[%s14148_s5 + $0x984] ss:$16 sps:$4 sm:$0xff]  }
 0x55e   :  { %5822 = vmatprep.subr.bf16.mxu1 %v11297_v16  ;;  %v11361_v16 = vld [vmem:[%s14148_s5 + $0x980] ss:$16 sps:$4 sm:$0xff]  }
 0x561   :  { %5823 = vmatpush1.bf16.msra.mxu1 %v11295_v17  ;;  %v11366_v17 = vld [vmem:[%s14148_s5 + $0x9a4] ss:$16 sps:$4 sm:$0xff]  }
 0x562   :  { %5824 = vmatprep.subr.bf16.mxu1 %v11300_v49  ;;  %v11364_v49 = vld [vmem:[%s14148_s5 + $0x9a0] ss:$16 sps:$4 sm:$0xff]  }
 0x565   :  { %5825 = vmatpush1.bf16.msra.mxu1 %v11298_v18  ;;  %v11369_v18 = vld [vmem:[%s14148_s5 + $0x9c4] ss:$16 sps:$4 sm:$0xff]  }
 0x566   :  { %5861 = vmatprep.subr.bf16.mxu1 %v11303_v22  ;;  %v11367_v22 = vld [vmem:[%s14148_s5 + $0x9c0] ss:$16 sps:$4 sm:$0xff]  }
 0x568   :  { %9345 = vmatmul.mubr.msk.bf16.vlgmr.msra.gmra.mrb[0].mxu1 %vm1509_vm2, %v12684_v38 }
 0x569   :  { %5862 = vmatpush1.bf16.msra.mxu1 %v11301_v37  ;;  %5893 = vmatprep.mubr.bf16.mxu1 %v11611_v27  ;;  %v11370_v37 = vld [vmem:[%s14148_s5 + $0x9e0] ss:$16 sps:$4 sm:$0xff]  }
 0x56a   :  { %5863 = vmatprep.subr.bf16.mxu1 %v11306_v45  ;;  %v11375_v45 = vld [vmem:[%s14148_s5 + $0x98c] ss:$16 sps:$4 sm:$0xff]  }
 0x56d   :  { %5864 = vmatpush1.bf16.msra.mxu1 %v11304_v24  ;;  %v11373_v24 = vld [vmem:[%s14148_s5 + $0x988] ss:$16 sps:$4 sm:$0xff]  }
 0x56e   :  { %5865 = vmatprep.subr.bf16.mxu1 %v11309_v26  ;;  %v11378_v26 = vld [vmem:[%s14148_s5 + $0x9ac] ss:$16 sps:$4 sm:$0xff]  }
 0x571   :  { %5866 = vmatpush1.bf16.msra.mxu1 %v11307_v31  ;;  %v11376_v31 = vld [vmem:[%s14148_s5 + $0x9a8] ss:$16 sps:$4 sm:$0xff]  }
 0x572   :  { %5867 = vmatprep.subr.bf16.mxu1 %v11312_v32  ;;  %v11381_v32 = vld [vmem:[%s14148_s5 + $0x9cc] ss:$16 sps:$4 sm:$0xff]  }
 0x575   :  { %5868 = vmatpush1.bf16.msra.mxu1 %v11310_v4  ;;  %v11379_v4 = vld [vmem:[%s14148_s5 + $0x9c8] ss:$16 sps:$4 sm:$0xff]  }
 0x576   :  { %6012 = vmatprep.subr.bf16.mxu1 %v11315_v33  ;;  %v11384_v33 = vld [vmem:[%s14148_s5 + $0x9ec] ss:$16 sps:$4 sm:$0xff]  }
 0x578   :  { %9346 = vmatmul.mubr.msk.bf16.vlgmr.msra.gmra.mrb[4].mxu1 %vm1509_vm2, %v12684_v38  ;;  %v11324_v38 = vld [vmem:[%s14148_s5 + $0x8e4] ss:$16 sps:$4 sm:$0xff]  }
 0x579   :  { %6013 = vmatpush1.bf16.msra.mxu1 %v11313_v34  ;;  %6044 = vmatprep.mubr.bf16.mxu1 %v11611_v27  ;;  %v11382_v34 = vld [vmem:[%s14148_s5 + $0x9e8] ss:$16 sps:$4 sm:$0xff]  }
 0x57a   :  { %6014 = vmatprep.subr.bf16.mxu1 %v11318_v40  ;;  %v11387_v40 = vld [vmem:[%s14148_s5 + $0xa04] ss:$16 sps:$4 sm:$0xff]  }
 0x57d   :  { %6015 = vmatpush1.bf16.msra.mxu1 %v11316_v42  ;;  %v11385_v42 = vld [vmem:[%s14148_s5 + $0xa00] ss:$16 sps:$4 sm:$0xff]  }
 0x57e   :  { %6016 = vmatprep.subr.bf16.mxu1 %v11321_v43  ;;  %v11390_v43 = vld [vmem:[%s14148_s5 + $0xa24] ss:$16 sps:$4 sm:$0xff]  }
 0x581   :  { %6017 = vmatpush1.bf16.msra.mxu1 %v11319_v11  ;;  %v11388_v11 = vld [vmem:[%s14148_s5 + $0xa20] ss:$16 sps:$4 sm:$0xff]  }
 0x582   :  { %6018 = vmatprep.subr.bf16.mxu1 %v11324_v38  ;;  %v11393_v38 = vld [vmem:[%s14148_s5 + $0xa44] ss:$16 sps:$4 sm:$0xff]  }
 0x585   :  { %6019 = vmatpush1.bf16.msra.mxu1 %v11322_v48  ;;  %v11391_v48 = vld [vmem:[%s14148_s5 + $0xa40] ss:$16 sps:$4 sm:$0xff]  }
 0x586   :  { %6055 = vmatprep.subr.bf16.mxu1 %v11327_v50  ;;  %v11394_v50 = vld [vmem:[%s14148_s5 + $0xa60] ss:$16 sps:$4 sm:$0xff]  }
 0x588   :  { %9379 = vmatmul.mubr.msk.bf16.vlgmr.msra.gmra.mrb[0].mxu1 %vm1509_vm2, %v12679_v19 }
 0x589   :  { %6056 = vmatpush1.bf16.msra.mxu1 %v11325_v53  ;;  %6087 = vmatprep.mubr.bf16.mxu1 %v11611_v27  ;;  %v11399_v53 = vld [vmem:[%s14148_s5 + $0xa0c] ss:$16 sps:$4 sm:$0xff]  }
 0x58a   :  { %6057 = vmatprep.subr.bf16.mxu1 %v11330_v55  ;;  %v11397_v55 = vld [vmem:[%s14148_s5 + $0xa08] ss:$16 sps:$4 sm:$0xff]  }
 0x58d   :  { %6058 = vmatpush1.bf16.msra.mxu1 %v11328_v1  ;;  %v11402_v1 = vld [vmem:[%s14148_s5 + $0xa2c] ss:$16 sps:$4 sm:$0xff]  }
 0x58e   :  { %6059 = vmatprep.subr.bf16.mxu1 %v11333_v23  ;;  %v11400_v23 = vld [vmem:[%s14148_s5 + $0xa28] ss:$16 sps:$4 sm:$0xff]  }
 0x591   :  { %6060 = vmatpush1.bf16.msra.mxu1 %v11331_v5  ;;  %v11405_v5 = vld [vmem:[%s14148_s5 + $0xa4c] ss:$16 sps:$4 sm:$0xff]  }
 0x592   :  { %6061 = vmatprep.subr.bf16.mxu1 %v11336_v63  ;;  %v11403_v63 = vld [vmem:[%s14148_s5 + $0xa48] ss:$16 sps:$4 sm:$0xff]  }
 0x595   :  { %6062 = vmatpush1.bf16.msra.mxu1 %v11334_v39  ;;  %v11408_v39 = vld [vmem:[%s14148_s5 + $0xa6c] ss:$16 sps:$4 sm:$0xff]  }
 0x596   :  { %6206 = vmatprep.subr.bf16.mxu1 %v11339_v7  ;;  %v11406_v7 = vld [vmem:[%s14148_s5 + $0xa68] ss:$16 sps:$4 sm:$0xff]  }
 0x598   :  { %9380 = vmatmul.mubr.msk.bf16.vlgmr.msra.gmra.mrb[4].mxu1 %vm1509_vm2, %v12679_v19  ;;  %v11348_v19 = vld [vmem:[%s14148_s5 + $0x964] ss:$16 sps:$4 sm:$0xff]  }
 0x599   :  { %6207 = vmatpush1.bf16.msra.mxu1 %v11337_v13  ;;  %6238 = vmatprep.mubr.bf16.mxu1 %v11611_v27  ;;  %v11411_v13 = vld [vmem:[%s14148_s5 + $0xa84] ss:$16 sps:$4 sm:$0xff]  }
 0x59a   :  { %6208 = vmatprep.subr.bf16.mxu1 %v11342_v62  ;;  %v11409_v62 = vld [vmem:[%s14148_s5 + $0xa80] ss:$16 sps:$4 sm:$0xff]  }
 0x59d   :  { %6209 = vmatpush1.bf16.msra.mxu1 %v11340_v61  ;;  %v11414_v61 = vld [vmem:[%s14148_s5 + $0xaa4] ss:$16 sps:$4 sm:$0xff]  }
 0x59e   :  { %6210 = vmatprep.subr.bf16.mxu1 %v11345_v28  ;;  %v11412_v28 = vld [vmem:[%s14148_s5 + $0xaa0] ss:$16 sps:$4 sm:$0xff]  }
 0x5a1   :  { %6211 = vmatpush1.bf16.msra.mxu1 %v11343_v44  ;;  %v11417_v44 = vld [vmem:[%s14148_s5 + $0xac4] ss:$16 sps:$4 sm:$0xff]  }
 0x5a2   :  { %6212 = vmatprep.subr.bf16.mxu1 %v11348_v19  ;;  %v11415_v19 = vld [vmem:[%s14148_s5 + $0xac0] ss:$16 sps:$4 sm:$0xff]  }
 0x5a5   :  { %6213 = vmatpush1.bf16.msra.mxu1 %v11346_v2  ;;  %v11418_v2 = vld [vmem:[%s14148_s5 + $0xae0] ss:$16 sps:$4 sm:$0xff]  }
 0x5a6   :  { %6249 = vmatprep.subr.bf16.mxu1 %v11351_v46  ;;  %v11423_v46 = vld [vmem:[%s14148_s5 + $0xa8c] ss:$16 sps:$4 sm:$0xff]  }
 0x5a8   :  { %9413 = vmatmul.mubr.msk.bf16.vlgmr.msra.gmra.mrb[0].mxu1 %vm1509_vm2, %v12704_v41 }
 0x5a9   :  { %6250 = vmatpush1.bf16.msra.mxu1 %v11349_v21  ;;  %6281 = vmatprep.mubr.bf16.mxu1 %v11611_v27  ;;  %v11421_v21 = vld [vmem:[%s14148_s5 + $0xa88] ss:$16 sps:$4 sm:$0xff]  }
 0x5aa   :  { %6251 = vmatprep.subr.bf16.mxu1 %v11354_v47  ;;  %v11426_v47 = vld [vmem:[%s14148_s5 + $0xaac] ss:$16 sps:$4 sm:$0xff]  }
 0x5ad   :  { %6252 = vmatpush1.bf16.msra.mxu1 %v11352_v20  ;;  %v11424_v20 = vld [vmem:[%s14148_s5 + $0xaa8] ss:$16 sps:$4 sm:$0xff]  }
 0x5ae   :  { %6253 = vmatprep.subr.bf16.mxu1 %v11357_v57  ;;  %v11429_v57 = vld [vmem:[%s14148_s5 + $0xacc] ss:$16 sps:$4 sm:$0xff]  }
 0x5b1   :  { %6254 = vmatpush1.bf16.msra.mxu1 %v11355_v36  ;;  %v11427_v36 = vld [vmem:[%s14148_s5 + $0xac8] ss:$16 sps:$4 sm:$0xff]  }
 0x5b2   :  { %6255 = vmatprep.subr.bf16.mxu1 %v11360_v58  ;;  %v11432_v58 = vld [vmem:[%s14148_s5 + $0xaec] ss:$16 sps:$4 sm:$0xff]  }
 0x5b5   :  { %6256 = vmatpush1.bf16.msra.mxu1 %v11358_v8  ;;  %v11430_v8 = vld [vmem:[%s14148_s5 + $0xae8] ss:$16 sps:$4 sm:$0xff]  }
 0x5b6   :  { %6400 = vmatprep.subr.bf16.mxu1 %v11363_v10  ;;  %v11435_v10 = vld [vmem:[%s14148_s5 + $0xb04] ss:$16 sps:$4 sm:$0xff]  }
 0x5b8   :  { %9414 = vmatmul.mubr.msk.bf16.vlgmr.msra.gmra.mrb[4].mxu1 %vm1509_vm2, %v12704_v41  ;;  %v11372_v41 = vld [vmem:[%s14148_s5 + $0x9e4] ss:$16 sps:$4 sm:$0xff]  }
 0x5b9   :  { %6401 = vmatpush1.bf16.msra.mxu1 %v11361_v16  ;;  %6432 = vmatprep.mubr.bf16.mxu1 %v11611_v27  ;;  %v11433_v16 = vld [vmem:[%s14148_s5 + $0xb00] ss:$16 sps:$4 sm:$0xff]  }
 0x5ba   :  { %6402 = vmatprep.subr.bf16.mxu1 %v11366_v17  ;;  %v11438_v17 = vld [vmem:[%s14148_s5 + $0xb24] ss:$16 sps:$4 sm:$0xff]  }
 0x5bd   :  { %6403 = vmatpush1.bf16.msra.mxu1 %v11364_v49  ;;  %v11436_v49 = vld [vmem:[%s14148_s5 + $0xb20] ss:$16 sps:$4 sm:$0xff]  }
 0x5be   :  { %6404 = vmatprep.subr.bf16.mxu1 %v11369_v18  ;;  %v11441_v18 = vld [vmem:[%s14148_s5 + $0xb44] ss:$16 sps:$4 sm:$0xff]  }
 0x5c1   :  { %6405 = vmatpush1.bf16.msra.mxu1 %v11367_v22  ;;  %v11439_v22 = vld [vmem:[%s14148_s5 + $0xb40] ss:$16 sps:$4 sm:$0xff]  }
 0x5c2   :  { %6406 = vmatprep.subr.bf16.mxu1 %v11372_v41  ;;  %v11442_v41 = vld [vmem:[%s14148_s5 + $0xb60] ss:$16 sps:$4 sm:$0xff]  }
 0x5c5   :  { %6407 = vmatpush1.bf16.msra.mxu1 %v11370_v37  ;;  %v11447_v37 = vld [vmem:[%s14148_s5 + $0xb0c] ss:$16 sps:$4 sm:$0xff]  }
 0x5c6   :  { %6443 = vmatprep.subr.bf16.mxu1 %v11375_v45  ;;  %v11445_v45 = vld [vmem:[%s14148_s5 + $0xb08] ss:$16 sps:$4 sm:$0xff]  }
 0x5c8   :  { %9447 = vmatmul.mubr.msk.bf16.vlgmr.msra.gmra.mrb[0].mxu1 %vm1509_vm2, %v12699_v35 }
 0x5c9   :  { %6444 = vmatpush1.bf16.msra.mxu1 %v11373_v24  ;;  %6475 = vmatprep.mubr.bf16.mxu1 %v11611_v27  ;;  %v11450_v24 = vld [vmem:[%s14148_s5 + $0xb2c] ss:$16 sps:$4 sm:$0xff]  }
 0x5ca   :  { %6445 = vmatprep.subr.bf16.mxu1 %v11378_v26  ;;  %v11448_v26 = vld [vmem:[%s14148_s5 + $0xb28] ss:$16 sps:$4 sm:$0xff]  }
 0x5cd   :  { %6446 = vmatpush1.bf16.msra.mxu1 %v11376_v31  ;;  %v11453_v31 = vld [vmem:[%s14148_s5 + $0xb4c] ss:$16 sps:$4 sm:$0xff]  }
 0x5ce   :  { %6447 = vmatprep.subr.bf16.mxu1 %v11381_v32  ;;  %v11451_v32 = vld [vmem:[%s14148_s5 + $0xb48] ss:$16 sps:$4 sm:$0xff]  }
 0x5d1   :  { %6448 = vmatpush1.bf16.msra.mxu1 %v11379_v4  ;;  %v11456_v4 = vld [vmem:[%s14148_s5 + $0xb6c] ss:$16 sps:$4 sm:$0xff]  }
 0x5d2   :  { %6449 = vmatprep.subr.bf16.mxu1 %v11384_v33  ;;  %v11454_v33 = vld [vmem:[%s14148_s5 + $0xb68] ss:$16 sps:$4 sm:$0xff]  }
 0x5d5   :  { %6450 = vmatpush1.bf16.msra.mxu1 %v11382_v34  ;;  %v11459_v34 = vld [vmem:[%s14148_s5 + $0xb84] ss:$16 sps:$4 sm:$0xff]  }
 0x5d6   :  { %6594 = vmatprep.subr.bf16.mxu1 %v11387_v40  ;;  %v11457_v40 = vld [vmem:[%s14148_s5 + $0xb80] ss:$16 sps:$4 sm:$0xff]  }
 0x5d8   :  { %9448 = vmatmul.mubr.msk.bf16.vlgmr.msra.gmra.mrb[4].mxu1 %vm1509_vm2, %v12699_v35  ;;  %v11396_v35 = vld [vmem:[%s14148_s5 + $0xa64] ss:$16 sps:$4 sm:$0xff]  }
 0x5d9   :  { %6595 = vmatpush1.bf16.msra.mxu1 %v11385_v42  ;;  %6626 = vmatprep.mubr.bf16.mxu1 %v11611_v27  ;;  %v11462_v42 = vld [vmem:[%s14148_s5 + $0xba4] ss:$16 sps:$4 sm:$0xff]  }
 0x5da   :  { %6596 = vmatprep.subr.bf16.mxu1 %v11390_v43  ;;  %v11460_v43 = vld [vmem:[%s14148_s5 + $0xba0] ss:$16 sps:$4 sm:$0xff]  }
 0x5dd   :  { %6597 = vmatpush1.bf16.msra.mxu1 %v11388_v11  ;;  %v11465_v11 = vld [vmem:[%s14148_s5 + $0xbc4] ss:$16 sps:$4 sm:$0xff]  }
 0x5de   :  { %6598 = vmatprep.subr.bf16.mxu1 %v11393_v38  ;;  %v11463_v38 = vld [vmem:[%s14148_s5 + $0xbc0] ss:$16 sps:$4 sm:$0xff]  }
 0x5e1   :  { %6599 = vmatpush1.bf16.msra.mxu1 %v11391_v48  ;;  %v11466_v48 = vld [vmem:[%s14148_s5 + $0xbe0] ss:$16 sps:$4 sm:$0xff]  }
 0x5e2   :  { %6600 = vmatprep.subr.bf16.mxu1 %v11396_v35  ;;  %v11471_v35 = vld [vmem:[%s14148_s5 + $0xb8c] ss:$16 sps:$4 sm:$0xff]  }
 0x5e5   :  { %6601 = vmatpush1.bf16.msra.mxu1 %v11394_v50  ;;  %v11469_v50 = vld [vmem:[%s14148_s5 + $0xb88] ss:$16 sps:$4 sm:$0xff]  }
 0x5e6   :  { %6637 = vmatprep.subr.bf16.mxu1 %v11399_v53  ;;  %v11474_v53 = vld [vmem:[%s14148_s5 + $0xbac] ss:$16 sps:$4 sm:$0xff]  }
 0x5e8   :  { %9481 = vmatmul.mubr.msk.bf16.vlgmr.msra.gmra.mrb[0].mxu1 %vm1509_vm2, %v12727_v12 }
 0x5e9   :  { %6638 = vmatpush1.bf16.msra.mxu1 %v11397_v55  ;;  %6669 = vmatprep.mubr.bf16.mxu1 %v11611_v27  ;;  %v11472_v55 = vld [vmem:[%s14148_s5 + $0xba8] ss:$16 sps:$4 sm:$0xff]  }
 0x5ea   :  { %6639 = vmatprep.subr.bf16.mxu1 %v11402_v1  ;;  %v11477_v1 = vld [vmem:[%s14148_s5 + $0xbcc] ss:$16 sps:$4 sm:$0xff]  }
 0x5ed   :  { %6640 = vmatpush1.bf16.msra.mxu1 %v11400_v23  ;;  %v11475_v23 = vld [vmem:[%s14148_s5 + $0xbc8] ss:$16 sps:$4 sm:$0xff]  }
 0x5ee   :  { %6641 = vmatprep.subr.bf16.mxu1 %v11405_v5  ;;  %v11480_v5 = vld [vmem:[%s14148_s5 + $0xbec] ss:$16 sps:$4 sm:$0xff]  }
 0x5f1   :  { %6642 = vmatpush1.bf16.msra.mxu1 %v11403_v63  ;;  %v11478_v63 = vld [vmem:[%s14148_s5 + $0xbe8] ss:$16 sps:$4 sm:$0xff]  }
 0x5f2   :  { %6643 = vmatprep.subr.bf16.mxu1 %v11408_v39  ;;  %v11483_v39 = vld [vmem:[%s14148_s5 + $0xc04] ss:$16 sps:$4 sm:$0xff]  }
 0x5f5   :  { %6644 = vmatpush1.bf16.msra.mxu1 %v11406_v7  ;;  %v11481_v7 = vld [vmem:[%s14148_s5 + $0xc00] ss:$16 sps:$4 sm:$0xff]  }
 0x5f6   :  { %6788 = vmatprep.subr.bf16.mxu1 %v11411_v13  ;;  %v11486_v13 = vld [vmem:[%s14148_s5 + $0xc24] ss:$16 sps:$4 sm:$0xff]  }
 0x5f8   :  { %9482 = vmatmul.mubr.msk.bf16.vlgmr.msra.gmra.mrb[4].mxu1 %vm1509_vm2, %v12727_v12  ;;  %v11420_v12 = vld [vmem:[%s14148_s5 + $0xae4] ss:$16 sps:$4 sm:$0xff]  }
 0x5f9   :  { %6789 = vmatpush1.bf16.msra.mxu1 %v11409_v62  ;;  %6820 = vmatprep.mubr.bf16.mxu1 %v11611_v27  ;;  %v11484_v62 = vld [vmem:[%s14148_s5 + $0xc20] ss:$16 sps:$4 sm:$0xff]  }
 0x5fa   :  { %6790 = vmatprep.subr.bf16.mxu1 %v11414_v61  ;;  %v11489_v61 = vld [vmem:[%s14148_s5 + $0xc44] ss:$16 sps:$4 sm:$0xff]  }
 0x5fd   :  { %6791 = vmatpush1.bf16.msra.mxu1 %v11412_v28  ;;  %v11577_v28 = vld [vmem:[%s14150_s7 + $0x40] sm:$0xff]  }
 0x5fe   :  { %6792 = vmatprep.subr.bf16.mxu1 %v11417_v44  ;;  %v11487_v44 = vld [vmem:[%s14148_s5 + $0xc40] ss:$16 sps:$4 sm:$0xff]   ;;  %9953 = vmatprep.subr.bf16.mxu0 %v11577_v28  ;;  %v11555_v28 = vld [vmem:[%s14148_s5 + $0xd84] ss:$16 sps:$4 sm:$0xff]  }
 0x601   :  { %6793 = vmatpush1.bf16.msra.mxu1 %v11415_v19  ;;  %v11579_v19 = vld [vmem:[%s14150_s7 + $0x48] sm:$0xff]  }
 0x602   :  { %6794 = vmatprep.subr.bf16.mxu1 %v11420_v12  ;;  %v11580_v12 = vld [vmem:[%s14150_s7 + $0x8] sm:$0xff]  }
 0x605   :  { %6795 = vmatpush1.bf16.msra.mxu1 %v11418_v2  ;;  %v11581_v2 = vld [vmem:[%s14150_s7 + $0x50] sm:$0xff]  }
 0x606   :  { %6831 = vmatprep.subr.bf16.mxu1 %v11423_v46  ;;  %v11492_v46 = vld [vmem:[%s14148_s5 + $0xc64] ss:$16 sps:$4 sm:$0xff]  }
 0x608   :  { %9515 = vmatmul.mubr.msk.bf16.vlgmr.msra.gmra.mrb[0].mxu1 %vm1509_vm2, %v12722_v6 }
 0x609   :  { %6832 = vmatpush1.bf16.msra.mxu1 %v11421_v21  ;;  %6863 = vmatprep.mubr.bf16.mxu1 %v11611_v27  ;;  %v11490_v21 = vld [vmem:[%s14148_s5 + $0xc60] ss:$16 sps:$4 sm:$0xff]  }
 0x60a   :  { %6833 = vmatprep.subr.bf16.mxu1 %v11426_v47  ;;  %v11495_v47 = vld [vmem:[%s14148_s5 + $0xc0c] ss:$16 sps:$4 sm:$0xff]  }
 0x60d   :  { %6834 = vmatpush1.bf16.msra.mxu1 %v11424_v20  ;;  %v11582_v20 = vld [vmem:[%s14150_s7 + $0x10] sm:$0xff]  }
 0x60e   :  { %6835 = vmatprep.subr.bf16.mxu1 %v11429_v57  ;;  %v11583_v57 = vld [vmem:[%s14150_s7 + $0x58] sm:$0xff]  }
 0x611   :  { %6836 = vmatpush1.bf16.msra.mxu1 %v11427_v36  ;;  %v11584_v36 = vld [vmem:[%s14150_s7 + $0x18] sm:$0xff]  }
 0x612   :  { %6837 = vmatprep.subr.bf16.mxu1 %v11432_v58  ;;  %v11493_v58 = vld [vmem:[%s14148_s5 + $0xc08] ss:$16 sps:$4 sm:$0xff]  }
 0x615   :  { %6838 = vmatpush1.bf16.msra.mxu1 %v11430_v8  ;;  %v11498_v8 = vld [vmem:[%s14148_s5 + $0xc2c] ss:$16 sps:$4 sm:$0xff]  }
 0x616   :  { %6982 = vmatprep.subr.bf16.mxu1 %v11435_v10  ;;  %v11585_v10 = vld [vmem:[%s14150_s7 + $0x60] sm:$0xff]  }
 0x618   :  { %9516 = vmatmul.mubr.msk.bf16.vlgmr.msra.gmra.mrb[4].mxu1 %vm1509_vm2, %v12722_v6  ;;  %v11444_v6 = vld [vmem:[%s14148_s5 + $0xb64] ss:$16 sps:$4 sm:$0xff]  }
 0x619   :  { %6983 = vmatpush1.bf16.msra.mxu1 %v11433_v16  ;;  %7014 = vmatprep.mubr.bf16.mxu1 %v11611_v27  ;;  %v11586_v16 = vld [vmem:[%s14150_s7 + $0x20] sm:$0xff]  }
 0x61a   :  { %6984 = vmatprep.subr.bf16.mxu1 %v11438_v17  ;;  %v11496_v17 = vld [vmem:[%s14148_s5 + $0xc28] ss:$16 sps:$4 sm:$0xff]  }
 0x61d   :  { %6985 = vmatpush1.bf16.msra.mxu1 %v11436_v49  ;;  %v11501_v49 = vld [vmem:[%s14148_s5 + $0xc4c] ss:$16 sps:$4 sm:$0xff]  }
 0x61e   :  { %6986 = vmatprep.subr.bf16.mxu1 %v11441_v18  ;;  %v11499_v18 = vld [vmem:[%s14148_s5 + $0xc48] ss:$16 sps:$4 sm:$0xff]  }
 0x621   :  { %6987 = vmatpush1.bf16.msra.mxu1 %v11439_v22  ;;  %v11504_v22 = vld [vmem:[%s14148_s5 + $0xc6c] ss:$16 sps:$4 sm:$0xff]  }
 0x622   :  { %6988 = vmatprep.subr.bf16.mxu1 %v11444_v6  ;;  %v11502_v6 = vld [vmem:[%s14148_s5 + $0xc68] ss:$16 sps:$4 sm:$0xff]  }
 0x625   :  { %6989 = vmatpush1.bf16.msra.mxu1 %v11442_v41  ;;  %v11507_v41 = vld [vmem:[%s14148_s5 + $0xc84] ss:$16 sps:$4 sm:$0xff]  }
 0x626   :  { %7025 = vmatprep.subr.bf16.mxu1 %v11447_v37  ;;  %v11505_v37 = vld [vmem:[%s14148_s5 + $0xc80] ss:$16 sps:$4 sm:$0xff]  }
 0x628   :  { %9549 = vmatmul.mubr.msk.bf16.vlgmr.msra.gmra.mrb[0].mxu1 %vm1509_vm2, %v12747_v15 }
 0x629   :  { %7026 = vmatpush1.bf16.msra.mxu1 %v11445_v45  ;;  %7057 = vmatprep.mubr.bf16.mxu1 %v11611_v27  ;;  %v11510_v45 = vld [vmem:[%s14148_s5 + $0xca4] ss:$16 sps:$4 sm:$0xff]  }
 0x62a   :  { %7027 = vmatprep.subr.bf16.mxu1 %v11450_v24  ;;  %v11508_v24 = vld [vmem:[%s14148_s5 + $0xca0] ss:$16 sps:$4 sm:$0xff]  }
 0x62d   :  { %7028 = vmatpush1.bf16.msra.mxu1 %v11448_v26  ;;  %v11513_v26 = vld [vmem:[%s14148_s5 + $0xcc4] ss:$16 sps:$4 sm:$0xff]  }
 0x62e   :  { %7029 = vmatprep.subr.bf16.mxu1 %v11453_v31  ;;  %v11511_v31 = vld [vmem:[%s14148_s5 + $0xcc0] ss:$16 sps:$4 sm:$0xff]  }
 0x631   :  { %7030 = vmatpush1.bf16.msra.mxu1 %v11451_v32  ;;  %v11514_v32 = vld [vmem:[%s14148_s5 + $0xce0] ss:$16 sps:$4 sm:$0xff]  }
 0x632   :  { %7031 = vmatprep.subr.bf16.mxu1 %v11456_v4  ;;  %v11519_v4 = vld [vmem:[%s14148_s5 + $0xc8c] ss:$16 sps:$4 sm:$0xff]  }
 0x635   :  { %7032 = vmatpush1.bf16.msra.mxu1 %v11454_v33  ;;  %v11517_v33 = vld [vmem:[%s14148_s5 + $0xc88] ss:$16 sps:$4 sm:$0xff]  }
 0x636   :  { %7176 = vmatprep.subr.bf16.mxu1 %v11459_v34  ;;  %v11522_v34 = vld [vmem:[%s14148_s5 + $0xcac] ss:$16 sps:$4 sm:$0xff]  }
 0x638   :  { %9550 = vmatmul.mubr.msk.bf16.vlgmr.msra.gmra.mrb[4].mxu1 %vm1509_vm2, %v12747_v15  ;;  %v11468_v15 = vld [vmem:[%s14148_s5 + $0xbe4] ss:$16 sps:$4 sm:$0xff]  }
 0x639   :  { %7177 = vmatpush1.bf16.msra.mxu1 %v11457_v40  ;;  %7208 = vmatprep.mubr.bf16.mxu1 %v11611_v27  ;;  %v11520_v40 = vld [vmem:[%s14148_s5 + $0xca8] ss:$16 sps:$4 sm:$0xff]  }
 0x63a   :  { %7178 = vmatprep.subr.bf16.mxu1 %v11462_v42  ;;  %v11525_v42 = vld [vmem:[%s14148_s5 + $0xccc] ss:$16 sps:$4 sm:$0xff]  }
 0x63d   :  { %7179 = vmatpush1.bf16.msra.mxu1 %v11460_v43  ;;  %v11523_v43 = vld [vmem:[%s14148_s5 + $0xcc8] ss:$16 sps:$4 sm:$0xff]  }
 0x63e   :  { %7180 = vmatprep.subr.bf16.mxu1 %v11465_v11  ;;  %v11528_v11 = vld [vmem:[%s14148_s5 + $0xcec] ss:$16 sps:$4 sm:$0xff]  }
 0x641   :  { %7181 = vmatpush1.bf16.msra.mxu1 %v11463_v38  ;;  %v11526_v38 = vld [vmem:[%s14148_s5 + $0xce8] ss:$16 sps:$4 sm:$0xff]  }
 0x642   :  { %7182 = vmatprep.subr.bf16.mxu1 %v11468_v15  ;;  %v11531_v15 = vld [vmem:[%s14148_s5 + $0xd04] ss:$16 sps:$4 sm:$0xff]  }
 0x645   :  { %7183 = vmatpush1.bf16.msra.mxu1 %v11466_v48  ;;  %v11529_v48 = vld [vmem:[%s14148_s5 + $0xd00] ss:$16 sps:$4 sm:$0xff]  }
 0x646   :  { %7219 = vmatprep.subr.bf16.mxu1 %v11471_v35  ;;  %v11534_v35 = vld [vmem:[%s14148_s5 + $0xd24] ss:$16 sps:$4 sm:$0xff]  }
 0x648   :  { %9583 = vmatmul.mubr.msk.bf16.vlgmr.msra.gmra.mrb[0].mxu1 %vm1509_vm2, %v12742_v9 }
 0x649   :  { %7220 = vmatpush1.bf16.msra.mxu1 %v11469_v50  ;;  %7251 = vmatprep.mubr.bf16.mxu1 %v11611_v27  ;;  %v11532_v50 = vld [vmem:[%s14148_s5 + $0xd20] ss:$16 sps:$4 sm:$0xff]  }
 0x64a   :  { %7221 = vmatprep.subr.bf16.mxu1 %v11474_v53  ;;  %v11537_v53 = vld [vmem:[%s14148_s5 + $0xd44] ss:$16 sps:$4 sm:$0xff]  }
 0x64d   :  { %7222 = vmatpush1.bf16.msra.mxu1 %v11472_v55  ;;  %v11535_v55 = vld [vmem:[%s14148_s5 + $0xd40] ss:$16 sps:$4 sm:$0xff]  }
 0x64e   :  { %7223 = vmatprep.subr.bf16.mxu1 %v11477_v1  ;;  %v11538_v1 = vld [vmem:[%s14148_s5 + $0xd60] ss:$16 sps:$4 sm:$0xff]  }
 0x651   :  { %7224 = vmatpush1.bf16.msra.mxu1 %v11475_v23  ;;  %v11543_v23 = vld [vmem:[%s14148_s5 + $0xd0c] ss:$16 sps:$4 sm:$0xff]  }
 0x652   :  { %7225 = vmatprep.subr.bf16.mxu1 %v11480_v5  ;;  %v11541_v5 = vld [vmem:[%s14148_s5 + $0xd08] ss:$16 sps:$4 sm:$0xff]  }
 0x655   :  { %7226 = vmatpush1.bf16.msra.mxu1 %v11478_v63  ;;  %v11546_v63 = vld [vmem:[%s14148_s5 + $0xd2c] ss:$16 sps:$4 sm:$0xff]  }
 0x656   :  { %7370 = vmatprep.subr.bf16.mxu1 %v11483_v39  ;;  %v11544_v39 = vld [vmem:[%s14148_s5 + $0xd28] ss:$16 sps:$4 sm:$0xff]  }
 0x658   :  { %9584 = vmatmul.mubr.msk.bf16.vlgmr.msra.gmra.mrb[4].mxu1 %vm1509_vm2, %v12742_v9  ;;  %v11578_v9 = vld [vmem:[%s14150_s7] sm:$0xff]  }
 0x659   :  { %7371 = vmatpush1.bf16.msra.mxu1 %v11481_v7  ;;  %7402 = vmatprep.mubr.bf16.mxu1 %v11611_v27  ;;  %v11549_v7 = vld [vmem:[%s14148_s5 + $0xd4c] ss:$16 sps:$4 sm:$0xff]  }
 0x65a   :  { %7372 = vmatprep.subr.bf16.mxu1 %v11486_v13  ;;  %9954 = vmatpush3.bf16.msra.mxu0 %v11578_v9  ;;  %v11547_v13 = vld [vmem:[%s14148_s5 + $0xd48] ss:$16 sps:$4 sm:$0xff]   ;;  %v11553_v9 = vld [vmem:[%s14148_s5 + $0xd80] ss:$16 sps:$4 sm:$0xff]  }
 0x65b   :  { %9955 = vmatprep.subr.bf16.mxu0 %v11579_v19  ;;  %v11556_v19 = vld [vmem:[%s14148_s5 + $0xda0] ss:$16 sps:$4 sm:$0xff]  }
 0x65d   :  { %7373 = vmatpush1.bf16.msra.mxu1 %v11484_v62  ;;  %v11552_v62 = vld [vmem:[%s14148_s5 + $0xd6c] ss:$16 sps:$4 sm:$0xff]  }
 0x65e   :  { %7374 = vmatprep.subr.bf16.mxu1 %v11489_v61  ;;  %9956 = vmatpush3.bf16.msra.mxu0 %v11580_v12  ;;  %v11550_v61 = vld [vmem:[%s14148_s5 + $0xd68] ss:$16 sps:$4 sm:$0xff]   ;;  %v11561_v12 = vld [vmem:[%s14148_s5 + $0xdc4] ss:$16 sps:$4 sm:$0xff]  }
 0x65f   :  { %9957 = vmatprep.subr.bf16.mxu0 %v11581_v2  ;;  %v11559_v2 = vld [vmem:[%s14148_s5 + $0xdc0] ss:$16 sps:$4 sm:$0xff]  }
 0x661   :  { %7375 = vmatpush1.bf16.msra.mxu1 %v11487_v44  ;;  %v11558_v44 = vld [vmem:[%s14148_s5 + $0xda4] ss:$16 sps:$4 sm:$0xff]  }
 0x662   :  { %7376 = vmatprep.subr.bf16.mxu1 %v11492_v46  ;;  %9958 = vmatpush3.bf16.msra.mxu0 %v11582_v20  ;;  %v11562_v46 = vld [vmem:[%s14148_s5 + $0xde0] ss:$16 sps:$4 sm:$0xff]   ;;  %v11570_v20 = vld [vmem:[%s14148_s5 + $0xdac] ss:$16 sps:$4 sm:$0xff]  }
 0x663   :  { %9959 = vmatprep.subr.bf16.mxu0 %v11583_v57  ;;  %v11568_v57 = vld [vmem:[%s14148_s5 + $0xda8] ss:$16 sps:$4 sm:$0xff]  }
 0x665   :  { %7377 = vmatpush1.bf16.msra.mxu1 %v11490_v21  ;;  %v11567_v21 = vld [vmem:[%s14148_s5 + $0xd8c] ss:$16 sps:$4 sm:$0xff]  }
 0x666   :  { %7413 = vmatprep.subr.bf16.mxu1 %v11495_v47  ;;  %9960 = vmatpush3.bf16.msra.mxu0 %v11584_v36  ;;  %v11565_v47 = vld [vmem:[%s14148_s5 + $0xd88] ss:$16 sps:$4 sm:$0xff]   ;;  %v11573_v36 = vld [vmem:[%s14148_s5 + $0xdcc] ss:$16 sps:$4 sm:$0xff]  }
 0x667   :  { %9961 = vmatprep.subr.bf16.mxu0 %v11585_v10  ;;  %v11587_v10 = vld [vmem:[%s14150_s7 + $0x68] sm:$0xff]  }
 0x668   :  { %9617 = vmatmul.mubr.msk.bf16.vlgmr.msra.gmra.mrb[0].mxu1 %vm1509_vm2, %v12770_v54 }
 0x669   :  { %7414 = vmatpush1.bf16.msra.mxu1 %v11493_v58  ;;  %7445 = vmatprep.mubr.bf16.mxu1 %v11611_v27  ;;  %v11571_v58 = vld [vmem:[%s14148_s5 + $0xdc8] ss:$16 sps:$4 sm:$0xff]  }
 0x66a   :  { %7415 = vmatprep.subr.bf16.mxu1 %v11498_v8  ;;  %9962 = vmatpush3.bf16.msra.mxu0 %v11586_v16  ;;  %v11576_v8 = vld [vmem:[%s14148_s5 + $0xdec] ss:$16 sps:$4 sm:$0xff]  }
 0x66b   :  { %v11588_v16 = vld [vmem:[%s14150_s7 + $0x28] sm:$0xff]   ;;  %9963 = vmatprep.subr.bf16.mxu0 %v11587_v10 }
 0x66d   :  { %7416 = vmatpush1.bf16.msra.mxu1 %v11496_v17  ;;  %v11589_v17 = vld [vmem:[%s14150_s7 + $0x70] sm:$0xff]  }
 0x66e   :  { %7417 = vmatprep.subr.bf16.mxu1 %v11501_v49  ;;  %9964 = vmatpush3.bf16.msra.mxu0 %v11588_v16  ;;  %v11590_v49 = vld [vmem:[%s14150_s7 + $0x30] sm:$0xff]  }
 0x66f   :  { %9965 = vmatprep.subr.bf16.mxu0 %v11589_v17 }
 0x671   :  { %7418 = vmatpush1.bf16.msra.mxu1 %v11499_v18  ;;  %v11592_v18 = vld [vmem:[%s14150_s7 + $0x38] sm:$0xff]  }
 0x672   :  { %7419 = vmatprep.subr.bf16.mxu1 %v11504_v22  ;;  %9966 = vmatpush3.bf16.msra.mxu0 %v11590_v49  ;;  %v11593_v22 = vld [vmem:[%s14150_s7 + $0xc0] sm:$0xff]  }
 0x675   :  { %7420 = vmatpush1.bf16.msra.mxu1 %v11502_v6  ;;  %v8048_v6 = vlaneseq }
 0x676   :  { %7564 = vmatprep.subr.bf16.mxu1 %v11507_v41 }
 0x677   :  { %v8049_v41 = vshrl.u32 %v8048_v6, 7  ;;  %v11603_v6 = vld [vmem:[%s14150_s7 + $0xe8] sm:$0xff]  }
 0x678   :  { %9618 = vmatmul.mubr.msk.bf16.vlgmr.msra.gmra.mrb[4].mxu1 %vm1509_vm2, %v12770_v54  ;;  %v11516_v54 = vld [vmem:[%s14148_s5 + $0xce4] ss:$16 sps:$4 sm:$0xff]  }
 0x679   :  { %7565 = vmatpush1.bf16.msra.mxu1 %v11505_v37  ;;  %7596 = vmatprep.mubr.bf16.mxu1 %v11611_v27  ;;  %v8050_v37 = vsub.s32 0, %v8049_v41 }
 0x67a   :  { %7566 = vmatprep.subr.bf16.mxu1 %v11510_v45  ;;  %v8046_v45 = vld [vmem:[%s14151_s6] sm:$0xf] }
 0x67d   :  { %7567 = vmatpush1.bf16.msra.mxu1 %v11508_v24  ;;  %v8054_v24 = vsub.s32 1, %v8049_v41 }
 0x67e   :  { %7568 = vmatprep.subr.bf16.mxu1 %v11513_v26  ;;  %v8051_v26 = vrot.slane %v8046_v45, %v8050_v37  ;;  %v11605_v37 = vld [vmem:[%s14150_s7 + $0xf0] sm:$0xff]  }
 0x681   :  { %7569 = vmatpush1.bf16.msra.mxu1 %v11511_v31 }
 0x682   :  { %7570 = vmatprep.subr.bf16.mxu1 %v11516_v54  ;;  %v8055_v54 = vrot.slane %v8046_v45, %v8054_v24  ;;  %v11607_v24 = vld [vmem:[%s14150_s7 + $0xf8] sm:$0xff]  }
 0x685   :  { %7571 = vmatpush1.bf16.msra.mxu1 %v11514_v32 }
 0x686   :  { %7607 = vmatprep.subr.bf16.mxu1 %v11519_v4 }
 0x688   :  { %9651 = vmatmul.mubr.msk.bf16.vlgmr.msra.gmra.mrb[0].mxu1 %vm1509_vm2, %v12765_v52 }
 0x689   :  { %7608 = vmatpush1.bf16.msra.mxu1 %v11517_v33  ;;  %7639 = vmatprep.mubr.bf16.mxu1 %v11611_v27 }
 0x68a   :  { %7609 = vmatprep.subr.bf16.mxu1 %v11522_v34 }
 0x68d   :  { %7610 = vmatpush1.bf16.msra.mxu1 %v11520_v40 }
 0x68e   :  { %7611 = vmatprep.subr.bf16.mxu1 %v11525_v42 }
 0x691   :  { %7612 = vmatpush1.bf16.msra.mxu1 %v11523_v43 }
 0x692   :  { %7613 = vmatprep.subr.bf16.mxu1 %v11528_v11 }
 0x695   :  { %7614 = vmatpush1.bf16.msra.mxu1 %v11526_v38 }
 0x696   :  { %7758 = vmatprep.subr.bf16.mxu1 %v11531_v15 }
 0x698   :  { %9652 = vmatmul.mubr.msk.bf16.vlgmr.msra.gmra.mrb[4].mxu1 %vm1509_vm2, %v12765_v52  ;;  %v11540_v52 = vld [vmem:[%s14148_s5 + $0xd64] ss:$16 sps:$4 sm:$0xff]  }
 0x699   :  { %7759 = vmatpush1.bf16.msra.mxu1 %v11529_v48  ;;  %7790 = vmatprep.mubr.bf16.mxu1 %v11611_v27 }
 0x69a   :  { %7760 = vmatprep.subr.bf16.mxu1 %v11534_v35 }
 0x69d   :  { %7761 = vmatpush1.bf16.msra.mxu1 %v11532_v50 }
 0x69e   :  { %7762 = vmatprep.subr.bf16.mxu1 %v11537_v53 }
 0x6a1   :  { %7763 = vmatpush1.bf16.msra.mxu1 %v11535_v55 }
 0x6a2   :  { %7764 = vmatprep.subr.bf16.mxu1 %v11540_v52 }
 0x6a5   :  { %7765 = vmatpush1.bf16.msra.mxu1 %v11538_v1 }
 0x6a6   :  { %7801 = vmatprep.subr.bf16.mxu1 %v11543_v23 }
 0x6a8   :  { %9685 = vmatmul.mubr.msk.bf16.vlgmr.msra.gmra.mrb[0].mxu1 %vm1509_vm2, %v12790_v51 }
 0x6a9   :  { %7802 = vmatpush1.bf16.msra.mxu1 %v11541_v5  ;;  %7833 = vmatprep.mubr.bf16.mxu1 %v11611_v27  ;;  %v8058_v5 = vsub.s32 2, %v8049_v41 }
 0x6aa   :  { %7803 = vmatprep.subr.bf16.mxu1 %v11546_v63  ;;  %v8062_v63 = vsub.s32 3, %v8049_v41  ;;  %v11604_v41 = vld [vmem:[%s14150_s7 + $0xa8] sm:$0xff]  }
 0x6ad   :  { %7804 = vmatpush1.bf16.msra.mxu1 %v11544_v39  ;;  %v11595_v39 = vld [vmem:[%s14150_s7 + $0xc8] sm:$0xff]  }
 0x6ae   :  { %7805 = vmatprep.subr.bf16.mxu1 %v11549_v7  ;;  %v8059_v7 = vrot.slane %v8046_v45, %v8058_v5 }
 0x6b1   :  { %7806 = vmatpush1.bf16.msra.mxu1 %v11547_v13  ;;  %v11596_v13 = vld [vmem:[%s14150_s7 + $0x88] sm:$0xff]  }
 0x6b2   :  { %7807 = vmatprep.subr.bf16.mxu1 %v11552_v62 }
 0x6b5   :  { %7808 = vmatpush1.bf16.msra.mxu1 %v11550_v61  ;;  %v8063_v61 = vrot.slane %v8046_v45, %v8062_v63  ;;  %v11606_v45 = vld [vmem:[%s14150_s7 + $0xb0] sm:$0xff]   ;;  %v9754_v63 = vld [vmem:[%s14154_s10] ss:$0 sm:$0xff] }
 0x6b6   :  { %7952 = vmatprep.subr.bf16.mxu1 %v11555_v28  ;;  %v11597_v28 = vld [vmem:[%s14150_s7 + $0xd0] sm:$0xff]  }
 0x6b8   :  { %9686 = vmatmul.mubr.msk.bf16.vlgmr.msra.gmra.mrb[4].mxu1 %vm1509_vm2, %v12790_v51  ;;  %v11564_v51 = vld [vmem:[%s14148_s5 + $0xde4] ss:$16 sps:$4 sm:$0xff]  }
 0x6b9   :  { %7953 = vmatpush1.bf16.msra.mxu1 %v11553_v9  ;;  %7984 = vmatprep.mubr.bf16.mxu1 %v11611_v27 }
 0x6ba   :  { %7954 = vmatprep.subr.bf16.mxu1 %v11558_v44 }
 0x6bd   :  { %7955 = vmatpush1.bf16.msra.mxu1 %v11556_v19 }
 0x6be   :  { %7956 = vmatprep.subr.bf16.mxu1 %v11561_v12 }
 0x6c1   :  { %7957 = vmatpush1.bf16.msra.mxu1 %v11559_v2 }
 0x6c2   :  { %7958 = vmatprep.subr.bf16.mxu1 %v11564_v51 }
 0x6c5   :  { %7959 = vmatpush1.bf16.msra.mxu1 %v11562_v46 }
 0x6c6   :  { %7995 = vmatprep.subr.bf16.mxu1 %v11567_v21  ;;  %v11598_v21 = vld [vmem:[%s14150_s7 + $0x90] sm:$0xff]  }
 0x6c8   :  { %9719 = vmatmul.mubr.msk.bf16.vlgmr.msra.gmra.mrb[0].mxu1 %vm1509_vm2, %v12785_v14 }
 0x6c9   :  { %7996 = vmatpush1.bf16.msra.mxu1 %v11565_v47  ;;  %8027 = vmatprep.mubr.bf16.mxu1 %v11611_v27  ;;  %v11574_v27 = vld [vmem:[%s14148_s5 + $0xde8] ss:$16 sps:$4 sm:$0xff]  }
 0x6ca   :  { %7997 = vmatprep.subr.bf16.mxu1 %v11570_v20 }
 0x6cd   :  { %7998 = vmatpush1.bf16.msra.mxu1 %v11568_v57 }
 0x6ce   :  { %7999 = vmatprep.subr.bf16.mxu1 %v11573_v36 }
 0x6d1   :  { %8000 = vmatpush1.bf16.msra.mxu1 %v11571_v58 }
 0x6d2   :  { %8001 = vmatprep.subr.bf16.mxu1 %v11576_v8  ;;  %v11600_v8 = vld [vmem:[%s14150_s7 + $0x98] sm:$0xff]  }
 0x6d5   :  { %8002 = vmatpush1.bf16.msra.mxu1 %v11574_v27  ;;  %v11601_v27 = vld [vmem:[%s14150_s7 + $0xe0] sm:$0xff]  }
 0x6d8   :  { %9720 = vmatmul.mubr.msk.bf16.vlgmr.msra.gmra.mrb[4].mxu1 %vm1509_vm2, %v12785_v14  ;;  %v11591_v14 = vld [vmem:[%s14150_s7 + $0x78] sm:$0xff]  }
 0x6d9   :  { %9967 = vmatprep.subr.bf16.mxu0 %v11591_v14 }
 0x6da   :  { %9968 = vmatpush3.bf16.msra.mxu0 %v11592_v18 }
 0x6db   :  { %9975 = vmatprep.subr.bf16.mxu0 %v11593_v22  ;;  %v11602_v22 = vld [vmem:[%s14150_s7 + $0xa0] sm:$0xff]  }
 0x79b   :  { %v7986_v31 = vpop.f32.mrb[0].mxu1 }
 0x79c   :  { %v10398_v32 = vadd.f32 %v7986_v31, %v13029_v56  ;;  %v7988_v4 = vpop.f32.mrb[1].mxu1  ;;  %v11609_v31 = vld [vmem:[%s14152_s9] sm:$0xff]  }
 0x79d   :  { %v10399_v33 = vadd.f32 %v7988_v4, %v13034_v25  ;;  %v7990_v34 = vpop.f32.mrb[2].mxu1 }
 0x79e   :  { %v8068_v40 = vadd.f32 %v10398_v32, %v8051_v26  ;;  %v10400_v42 = vadd.f32 %v7990_v34, %v13036_v0  ;;  %v7992_v43 = vpop.f32.mrb[3].mxu1  ;;  %v11610_v32 = vld [vmem:[%s14152_s9 + $0x8] sm:$0xff]  }
 0x79f   :  { %v8069_v11 = vadd.f32 %v10399_v33, %v8055_v54  ;;  %v10401_v38 = vadd.f32 %v7992_v43, %v13038_v3  ;;  %v11594_v3 = vld [vmem:[%s14150_s7 + $0x80] sm:$0xff]  }
 0x7a0   :  { %v8084_v15 = vmul.f32 0.01, %v8068_v40  ;;  %v8072_v48 = vadd.f32 %v10400_v42, %v8051_v26  ;;  %vm8076_vm3 = vcmp.gt.f32.partialorder %v8068_v40, 0.0  ;;  %v11608_v26 = vld [vmem:[%s14150_s7 + $0xb8] sm:$0xff]  }
 0x7a1   :  { %v8085_v35 = vmul.f32 0.01, %v8069_v11  ;;  %v8073_v50 = vadd.f32 %v10401_v38, %v8055_v54  ;;  %vm8077_vm4 = vcmp.gt.f32.partialorder %v8069_v11, 0.0  ;;  %v11612_v54 = vmov 0.0  }
 0x7a2   :  { %vm8080_vm5 = vcmp.gt.f32.partialorder %v8072_v48, 0.0  ;;  %v8088_v53 = vmul.f32 0.01, %v8072_v48  ;;  %v8092_v55 = vsel %vm8076_vm3, %v8068_v40, %v8084_v15 }
 0x7a3   :  { %vm8081_vm6 = vcmp.gt.f32.partialorder %v8073_v50, 0.0  ;;  %v8089_v56 = vmul.f32 0.01, %v8073_v50  ;;  %v8093_v52 = vsel %vm8077_vm4, %v8069_v11, %v8085_v35  ;;  %v9721_v11 = vld [vmem:[%s14153_s8] ss:$0 sm:$0xff] }
 0x7a4   :  { %v8096_v25 = vsel %vm8080_vm5, %v8072_v48, %v8088_v53 }
 0x7a5   :  { %v8097_v1 = vsel %vm8081_vm6, %v8073_v50, %v8089_v56  ;;  %v8100_v23 = vpack.c.bf16 %v8096_v25, %v8092_v55 }
 0x7a6   :  { %v8101_v0 = vpack.c.bf16 %v8097_v1, %v8093_v52 }
 0x7a8   :  { %8399 = vmatprep.mubr.bf16.mxu0 %v8101_v0 }
 0x7a9   :  { %8400 = vmatmul.mubr.bf16.vlgmr.msra.gmra.mrb[124].mxu0 %v8100_v23 }
 0x7aa   :  { %9976 = vmatpush3.bf16.msra.mxu0 %v11594_v3 }
 0x7ab   :  { %v8029_v62 = vpop.f32.mrb[4].mxu1  ;;  %9977 = vmatprep.subr.bf16.mxu0 %v11595_v39 }
 0x7ac   :  { %v10402_v9 = vadd.f32 %v8029_v62, %v13064_v29  ;;  %v8031_v44 = vpop.f32.mrb[5].mxu1  ;;  %v11599_v29 = vld [vmem:[%s14150_s7 + $0xd8] sm:$0xff]  }
 0x7ad   :  { %v10403_v19 = vadd.f32 %v8031_v44, %v13069_v59  ;;  %v8033_v12 = vpop.f32.mrb[6].mxu1 }
 0x7ae   :  { %v8070_v2 = vadd.f32 %v10402_v9, %v8059_v7  ;;  %v10404_v51 = vadd.f32 %v8033_v12, %v13071_v60  ;;  %9978 = vmatpush3.bf16.msra.mxu0 %v11596_v13  ;;  %v8035_v46 = vpop.f32.mrb[7].mxu1 }
 0x7af   :  { %v8071_v47 = vadd.f32 %v10403_v19, %v8063_v61  ;;  %v10405_v20 = vadd.f32 %v8035_v46, %v13073_v30  ;;  %9979 = vmatprep.subr.bf16.mxu0 %v11597_v28 }
 0x7b0   :  { %v8086_v57 = vmul.f32 0.01, %v8070_v2  ;;  %v8074_v59 = vadd.f32 %v10404_v51, %v8059_v7  ;;  %vm8078_vm7 = vcmp.gt.f32.partialorder %v8070_v2, 0.0 }
 0x7b1   :  { %v8087_v36 = vmul.f32 0.01, %v8071_v47  ;;  %v8075_v58 = vadd.f32 %v10405_v20, %v8063_v61  ;;  %vm8079_vm8 = vcmp.gt.f32.partialorder %v8071_v47, 0.0 }
 0x7b2   :  { %vm8082_vm9 = vcmp.gt.f32.partialorder %v8074_v59, 0.0  ;;  %v8090_v60 = vmul.f32 0.01, %v8074_v59  ;;  %9980 = vmatpush3.bf16.msra.mxu0 %v11598_v21  ;;  %v8094_v10 = vsel %vm8078_vm7, %v8070_v2, %v8086_v57 }
 0x7b3   :  { %vm8083_vm10 = vcmp.gt.f32.partialorder %v8075_v58, 0.0  ;;  %v8091_v30 = vmul.f32 0.01, %v8075_v58  ;;  %9981 = vmatprep.subr.bf16.mxu0 %v11599_v29  ;;  %v8095_v17 = vsel %vm8079_vm8, %v8071_v47, %v8087_v36 }
 0x7b4   :  { %v8098_v16 = vsel %vm8082_vm9, %v8074_v59, %v8090_v60 }
 0x7b5   :  { %v8099_v49 = vsel %vm8083_vm10, %v8075_v58, %v8091_v30  ;;  %v8102_v14 = vpack.c.bf16 %v8098_v16, %v8094_v10 }
 0x7b6   :  { %9982 = vmatpush3.bf16.msra.mxu0 %v11600_v8  ;;  %v8103_v18 = vpack.c.bf16 %v8099_v49, %v8095_v17 }
 0x7b7   :  { %9983 = vmatprep.subr.bf16.mxu0 %v11601_v27 }
 0x7b8   :  { %8440 = vmatprep.mubr.bf16.mxu0 %v8103_v18 }
 0x7ba   :  { %9984 = vmatpush3.bf16.msra.mxu0 %v11602_v22 }
 0x7bb   :  { %9985 = vmatprep.subr.bf16.mxu0 %v11603_v6 }
 0x7be   :  { %9986 = vmatpush3.bf16.msra.mxu0 %v11604_v41 }
 0x7bf   :  { %9987 = vmatprep.subr.bf16.mxu0 %v11605_v37 }
 0x7c2   :  { %9988 = vmatpush3.bf16.msra.mxu0 %v11606_v45 }
 0x7c3   :  { %9989 = vmatprep.subr.bf16.mxu0 %v11607_v24 }
 0x7c6   :  { %9990 = vmatpush3.bf16.msra.mxu0 %v11608_v26 }
 0x7c7   :  { %10390 = vmatprep.subr.bf16.mxu0 %v11612_v54 }
 0x7c9   :  { %8441 = vmatmul.mubr.bf16.vlgmr.msra.gmra.mrb[128].mxu0 %v8102_v14 }
 0x7ca   :  { %10391 = vmatpush3.bf16.msra.mxu0 %v11609_v31  ;;  %10394 = vmatprep.mubr.msk.bf16.mxu0 %vm11613_vm11, %v11612_v54 }
 0x7cb   :  { %10392 = vmatprep.subr.bf16.mxu0 %v11612_v54 }
 0x7ce   :  { %10393 = vmatpush3.bf16.msra.mxu0 %v11610_v32 }
 0x87c   :  { %v9969_v4 = vpop.f32.mrb[124].mxu0 }
 0x87d   :  { %v9970_v33 = vpop.f32.mrb[125].mxu0 }
 0x87e   :  { %v9971_v34 = vadd.f32 %v9970_v33, %v9969_v4  ;;  %v9972_v40 = vpop.f32.mrb[126].mxu0 }
 0x87f   :  { %v9973_v42 = vpop.f32.mrb[127].mxu0 }
 0x880   :  { %v9974_v43 = vadd.f32 %v9973_v42, %v9972_v40  ;;  %v8402_v48 = vadd.f32 %v9971_v34, %v9721_v11 }
 0x882   :  { %v8405_v56 = vadd.f32 %v9974_v43, %v9721_v11 }
 0x89c   :  { %v9991_v38 = vpop.f32.mrb[128].mxu0 }
 0x89d   :  { %v9992_v15 = vpop.f32.mrb[129].mxu0 }
 0x89e   :  { %v9993_v35 = vadd.f32 %v9992_v15, %v9991_v38  ;;  %v9994_v50 = vpop.f32.mrb[130].mxu0 }
 0x89f   :  { %v9995_v53 = vpop.f32.mrb[131].mxu0 }
 0x8a0   :  { %v8443_v55 = vadd.f32 %v9993_v35, %v8402_v48  ;;  %v9996_v25 = vadd.f32 %v9995_v53, %v9994_v50 }
 0x8a2   :  { %v8451_v52 = vmul.f32 0.01, %v8443_v55  ;;  %v8446_v1 = vadd.f32 %v9996_v25, %v8405_v56  ;;  %vm8449_vm12 = vcmp.gt.f32.partialorder %v8443_v55, 0.0 }
 0x8a4   :  { %vm8450_vm13 = vcmp.gt.f32.partialorder %v8446_v1, 0.0  ;;  %v8452_v23 = vmul.f32 0.01, %v8446_v1  ;;  %v8453_v0 = vsel %vm8449_vm12, %v8443_v55, %v8451_v52 }
 0x8a6   :  { %v8454_v3 = vsel %vm8450_vm13, %v8446_v1, %v8452_v23 }
 0x8a7   :  { %v8455_v5 = vpack.c.bf16 %v8454_v3, %v8453_v0 }
 0x8a9   :  { %10395 = vmatmul.mubr.msk.bf16.vlgmr.msra.gmra.mrb[132].mxu0 %vm8479_vm14, %v8455_v5 }
 0x97c   :  { %v8517_v39 = vpop.f32.mrb[132].mxu0 }
 0x97d   :  { %v8518_v7 = vadd.f32 %v9754_v63, %v8517_v39  ;;  %v10396_v13 = vpop.f32.mrb[133].mxu0 }
 0x97e   :  { %v8520_v62 = vpop.f32.mrb[134].mxu0 }
 0x97f   :  { %8524 = vst [vmem:[%s14155_s11] sm:$0xff] %v8518_v7  ;;  %v8521_v61 = vadd.f32 %v9754_v63, %v8520_v62  ;;  %v10397_v28 = vpop.f32.mrb[135].mxu0 }
 0x981   :  { %8525 = vst [vmem:[%s14155_s11 + $0x8] sm:$0xff] %v8521_v61 }

</bundles_post_ra>
